<compile_context>
chip_gen: v6e
topology: v6e:2x2x1
jax: 0.10.0
libtpu: 0.0.40
codegen_flags: <defaults>
</compile_context>

<pallas_src>
import functools
import math

import jax
import jax.numpy as jnp
from jax import lax
from jax.experimental import pallas as pl
from jax.experimental.pallas import tpu as pltpu

# ----------------------------- model config ---------------------------------
VOCAB = 64
VOCAB_PAD = 128           # lane-dense padded logits width (sliced back to VOCAB)
MAX_LEN = 16
HIDDEN = 32
N_LAYERS = 2
N_HEADS = 4
HEAD_DIM = HIDDEN // N_HEADS
BATCH = 2
SEQ = 8
LN_EPS = 1e-5


# ----------------------------- helpers (in-kernel) --------------------------
def _layer_norm(x, gamma, beta, eps=LN_EPS):
    mu = jnp.mean(x, axis=-1, keepdims=True)
    var = jnp.mean((x - mu) ** 2, axis=-1, keepdims=True)
    return (x - mu) * lax.rsqrt(var + eps) * gamma + beta


def _mish(x):
    return x * jnp.tanh(jax.nn.softplus(x))


# ----------------------------- fused Pallas kernel ---------------------------
def _fused_forward_kernel(
    ids_ref, pos_ref,                  # (B*S, 1) int32 token / position ids
    wemb_ref, pemb_ref,                # (VOCAB, H), (MAX_LEN, H)
    ln1g_ref, ln1b_ref,                # (L, 1, H)
    wq_ref, bq_ref, wk_ref, bk_ref, wv_ref, bv_ref, wp_ref, bp_ref,
    ln2g_ref, ln2b_ref,
    w1_ref, b1_ref, w2_ref, b2_ref,
    lnfg_ref, lnfb_ref,                # (1, H)
    woutT_ref,                         # (H, VOCAB_PAD) zero-padded tied embedding
    out_ref,                           # (B*S, VOCAB_PAD)
    *, batch, seq,
):
    bs = batch * seq

    # ---- fused embedding gather (one-hot matmuls -> MXU); emb_dropout = id ----
    word_oh = (ids_ref[...] ==
               lax.broadcasted_iota(jnp.int32, (bs, VOCAB), 1)).astype(jnp.float32)
    pos_oh = (pos_ref[...] ==
              lax.broadcasted_iota(jnp.int32, (bs, MAX_LEN), 1)).astype(jnp.float32)
    h = (jnp.dot(word_oh, wemb_ref[...], preferred_element_type=jnp.float32) +
         jnp.dot(pos_oh, pemb_ref[...], preferred_element_type=jnp.float32))   # (BS, H)

    # ---- hoisted once, shared across all layers ----
    row = lax.broadcasted_iota(jnp.int32, (seq, seq), 0)
    col = lax.broadcasted_iota(jnp.int32, (seq, seq), 1)
    causal = (row >= col)[None, :, :]                   # (1, S, S)
    neg = jnp.float32(-10000.0)
    scale = jnp.float32(1.0 / math.sqrt(HEAD_DIM))
    # TODO(synk): optional external attention mask (forward arg `mask`) not wired in.

    for li in range(N_LAYERS):                          # static unroll; weights live in VMEM
        # ---- ln1 + causal multi-head self-attention (2-D projections) ----
        hn = _layer_norm(h, ln1g_ref[li], ln1b_ref[li])
        q = jnp.dot(hn, wq_ref[li], preferred_element_type=jnp.float32) + bq_ref[li]
        k = jnp.dot(hn, wk_ref[li], preferred_element_type=jnp.float32) + bk_ref[li]
        v = jnp.dot(hn, wv_ref[li], preferred_element_type=jnp.float32) + bv_ref[li]
        # only the leading (sublane) axis is split: cheap reshape, lanes untouched
        q3 = q.reshape(batch, seq, HIDDEN)
        k3 = k.reshape(batch, seq, HIDDEN)
        v3 = v.reshape(batch, seq, HIDDEN)
        wp_l = wp_ref[li]                               # (H, H)

        attn_out = jnp.zeros((bs, HIDDEN), jnp.float32)
        for hi in range(N_HEADS):                       # static unroll; no lane concatenate:
            sl = slice(hi * HEAD_DIM, (hi + 1) * HEAD_DIM)   # head merge folded into proj
            qh, kh, vh = q3[:, :, sl], k3[:, :, sl], v3[:, :, sl]
            s = jnp.einsum('bsd,btd->bst', qh, kh,
                           preferred_element_type=jnp.float32) * scale
            s = jnp.where(causal, s, neg)
            # softmax with approx reciprocal: division moves to the idle EUP slot
            e = jnp.exp(s - jnp.max(s, axis=-1, keepdims=True))
            p = e * pl.reciprocal(jnp.sum(e, axis=-1, keepdims=True), approx=True)
            ctx = jnp.einsum('bst,btd->bsd', p, vh,
                             preferred_element_type=jnp.float32)     # (B, S, HD)
            attn_out = attn_out + jnp.dot(
                ctx.reshape(bs, HEAD_DIM), wp_l[sl, :],
                preferred_element_type=jnp.float32)
        h = h + attn_out + bp_ref[li]                   # residual (resid_dropout = id)

        # ---- ln2 + feed-forward (mish) ----
        hn2 = _layer_norm(h, ln2g_ref[li], ln2b_ref[li])
        f = jnp.dot(hn2, w1_ref[li], preferred_element_type=jnp.float32) + b1_ref[li]
        f = _mish(f)
        f = jnp.dot(f, w2_ref[li], preferred_element_type=jnp.float32) + b2_ref[li]
        h = h + f                                       # residual (dropout = id)

    # ---- final LN + tied-embedding logits; lane-dense 128-wide store ----
    hf = _layer_norm(h, lnfg_ref[...], lnfb_ref[...])
    out_ref[...] = jnp.dot(hf, woutT_ref[...], preferred_element_type=jnp.float32)


# ----------------------------- wrapper ----------------------------------------
def _vmem_spec():
    return pl.BlockSpec(memory_space=pltpu.MemorySpace.VMEM)


@jax.jit
def generative_transformer_forward(params, input_ids, position_ids=None):
    B, S = input_ids.shape
    if position_ids is None:
        position_ids = jnp.broadcast_to(
            jnp.arange(S, dtype=jnp.int32)[None, :], (B, S))
    ids2 = input_ids.reshape(B * S, 1).astype(jnp.int32)
    pos2 = position_ids.reshape(B * S, 1).astype(jnp.int32)

    stk, fin = params['stacked'], params['final']
    args = (ids2, pos2, params['word_emb'], params['pos_emb'],
            stk['ln1_g'], stk['ln1_b'],
            stk['wq'], stk['bq'], stk['wk'], stk['bk'], stk['wv'], stk['bv'],
            stk['wp'], stk['bp'],
            stk['ln2_g'], stk['ln2_b'],
            stk['w1'], stk['b1'], stk['w2'], stk['b2'],
            fin['ln_g'], fin['ln_b'], fin['wout_pad'])

    kernel = functools.partial(_fused_forward_kernel, batch=B, seq=S)
    logits_pad = pl.pallas_call(
        kernel,
        out_shape=jax.ShapeDtypeStruct((B * S, VOCAB_PAD), jnp.float32),
        in_specs=[_vmem_spec() for _ in args],
        out_specs=_vmem_spec(),
    )(*args)
    # slice off the lane padding and restore (B, S, VOCAB)
    return logits_pad[:, :VOCAB].reshape(B, S, VOCAB)


# ----------------------------- parameter init ---------------------------------
def init_params(key):
    keys = iter(jax.random.split(key, 64))

    def normal(shape):
        return 0.02 * jax.random.normal(next(keys), shape, dtype=jnp.float32)

    # embeddings (padding_idx = 0 row zeroed, matching PyTorch init_weights)
    word_emb = normal((VOCAB, HIDDEN)).at[0].set(0.0)
    pos_emb = normal((MAX_LEN, HIDDEN)).at[0].set(0.0)

    def stack_linear_T():
        # PyTorch Linear stores W as (out, in) and computes x @ W.T + b; we store
        # the (in, out) transpose so the kernel does x @ W + b, stacked over layers.
        return jnp.stack([normal((HIDDEN, HIDDEN)).T for _ in range(N_LAYERS)], 0)

    zeros_b = jnp.zeros((N_LAYERS, 1, HIDDEN), jnp.float32)
    ones_g = jnp.ones((N_LAYERS, 1, HIDDEN), jnp.float32)

    stacked = dict(
        ln1_g=ones_g, ln1_b=zeros_b,
        wq=stack_linear_T(), bq=zeros_b,
        wk=stack_linear_T(), bk=zeros_b,
        wv=stack_linear_T(), bv=zeros_b,
        wp=stack_linear_T(), bp=zeros_b,
        ln2_g=ones_g, ln2_b=zeros_b,
        w1=stack_linear_T(), b1=zeros_b,
        w2=stack_linear_T(), b2=zeros_b,
    )

    # tied output embeddings: h @ word_emb.T, zero-padded to a lane-dense 128 width
    wout_pad = jnp.zeros((HIDDEN, VOCAB_PAD), jnp.float32).at[:, :VOCAB].set(word_emb.T)
    final = dict(ln_g=jnp.ones((1, HIDDEN), jnp.float32),
                 ln_b=jnp.zeros((1, HIDDEN), jnp.float32),
                 wout_pad=wout_pad)
    return dict(word_emb=word_emb, pos_emb=pos_emb, stacked=stacked, final=final)


if __name__ == "__main__":
    key = jax.random.PRNGKey(0)
    pkey, dkey = jax.random.split(key)
    params = init_params(pkey)
    input_ids = jax.random.randint(dkey, (BATCH, SEQ), 0, VOCAB, dtype=jnp.int32)
    logits = generative_transformer_forward(params, input_ids)
    jax.block_until_ready(logits)
    assert logits.shape == (BATCH, SEQ, VOCAB)
    assert bool(jnp.all(jnp.isfinite(logits)))
    print("KERNEL_OK")
</pallas_src>

<mosaic_0001>
module attributes {stable_mosaic.version = 11 : i64} {
  func.func @_fused_forward_kernel(%arg0: memref<16x1xi32, #tpu.memory_space<vmem>>, %arg1: memref<16x1xi32, #tpu.memory_space<vmem>>, %arg2: memref<64x32xf32, #tpu.memory_space<vmem>>, %arg3: memref<16x32xf32, #tpu.memory_space<vmem>>, %arg4: memref<2x1x32xf32, #tpu.memory_space<vmem>>, %arg5: memref<2x1x32xf32, #tpu.memory_space<vmem>>, %arg6: memref<2x32x32xf32, #tpu.memory_space<vmem>>, %arg7: memref<2x1x32xf32, #tpu.memory_space<vmem>>, %arg8: memref<2x32x32xf32, #tpu.memory_space<vmem>>, %arg9: memref<2x1x32xf32, #tpu.memory_space<vmem>>, %arg10: memref<2x32x32xf32, #tpu.memory_space<vmem>>, %arg11: memref<2x1x32xf32, #tpu.memory_space<vmem>>, %arg12: memref<2x32x32xf32, #tpu.memory_space<vmem>>, %arg13: memref<2x1x32xf32, #tpu.memory_space<vmem>>, %arg14: memref<2x1x32xf32, #tpu.memory_space<vmem>>, %arg15: memref<2x1x32xf32, #tpu.memory_space<vmem>>, %arg16: memref<2x32x32xf32, #tpu.memory_space<vmem>>, %arg17: memref<2x1x32xf32, #tpu.memory_space<vmem>>, %arg18: memref<2x32x32xf32, #tpu.memory_space<vmem>>, %arg19: memref<2x1x32xf32, #tpu.memory_space<vmem>>, %arg20: memref<1x32xf32, #tpu.memory_space<vmem>>, %arg21: memref<1x32xf32, #tpu.memory_space<vmem>>, %arg22: memref<32x128xf32, #tpu.memory_space<vmem>>, %arg23: memref<16x128xf32, #tpu.memory_space<vmem>>) attributes {dimension_semantics = [], scalar_prefetch = 0 : i64, scratch_operands = 0 : i64, tpu.core_type = #tpu.core_type<tc>} {
    %c0 = arith.constant 0 : index
    %c0_0 = arith.constant 0 : index
    %0 = vector.load %arg0[%c0, %c0_0] : memref<16x1xi32, #tpu.memory_space<vmem>>, vector<16x1xi32>
    %1 = tpu.iota {dimensions = array<i32: 1>} : vector<16x64xi32>
    %2 = vector.broadcast %0 : vector<16x1xi32> to vector<16x64xi32>
    %3 = arith.cmpi eq, %2, %1 : vector<16x64xi32>
    %4 = arith.extui %3 : vector<16x64xi1> to vector<16x64xi32>
    %5 = arith.sitofp %4 : vector<16x64xi32> to vector<16x64xf32>
    %c0_1 = arith.constant 0 : index
    %c0_2 = arith.constant 0 : index
    %6 = vector.load %arg1[%c0_1, %c0_2] : memref<16x1xi32, #tpu.memory_space<vmem>>, vector<16x1xi32>
    %7 = tpu.iota {dimensions = array<i32: 1>} : vector<16x16xi32>
    %8 = vector.broadcast %6 : vector<16x1xi32> to vector<16x16xi32>
    %9 = arith.cmpi eq, %8, %7 : vector<16x16xi32>
    %10 = arith.extui %9 : vector<16x16xi1> to vector<16x16xi32>
    %11 = arith.sitofp %10 : vector<16x16xi32> to vector<16x16xf32>
    %c0_3 = arith.constant 0 : index
    %c0_4 = arith.constant 0 : index
    %12 = vector.load %arg2[%c0_3, %c0_4] : memref<64x32xf32, #tpu.memory_space<vmem>>, vector<64x32xf32>
    %cst = arith.constant dense<0.000000e+00> : vector<16x32xf32>
    %13 = tpu.matmul %5, %12, %cst {dimension_numbers = #tpu.dot_dimension_numbers<[1], [0], [0], [1], [0, 0, 1, 1], [], []>} : vector<16x64xf32>, vector<64x32xf32>, vector<16x32xf32> -> vector<16x32xf32>
    %c0_5 = arith.constant 0 : index
    %c0_6 = arith.constant 0 : index
    %14 = vector.load %arg3[%c0_5, %c0_6] : memref<16x32xf32, #tpu.memory_space<vmem>>, vector<16x32xf32>
    %cst_7 = arith.constant dense<0.000000e+00> : vector<16x32xf32>
    %15 = tpu.matmul %11, %14, %cst_7 {dimension_numbers = #tpu.dot_dimension_numbers<[1], [0], [0], [1], [0, 0, 1, 1], [], []>} : vector<16x16xf32>, vector<16x32xf32>, vector<16x32xf32> -> vector<16x32xf32>
    %16 = arith.addf %13, %15 : vector<16x32xf32>
    %17 = tpu.iota {dimensions = array<i32: 0>} : vector<8x8xi32>
    %18 = tpu.iota {dimensions = array<i32: 1>} : vector<8x8xi32>
    %19 = arith.cmpi sge, %17, %18 : vector<8x8xi32>
    %20 = vector.shape_cast %19 : vector<8x8xi1> to vector<1x8x8xi1>
    %c0_8 = arith.constant 0 : index
    %c0_9 = arith.constant 0 : index
    %c0_10 = arith.constant 0 : index
    %21 = vector.load %arg4[%c0_8, %c0_9, %c0_10] : memref<2x1x32xf32, #tpu.memory_space<vmem>>, vector<1x1x32xf32>
    %22 = vector.shape_cast %21 : vector<1x1x32xf32> to vector<1x32xf32>
    %c0_11 = arith.constant 0 : index
    %c0_12 = arith.constant 0 : index
    %c0_13 = arith.constant 0 : index
    %23 = vector.load %arg5[%c0_11, %c0_12, %c0_13] : memref<2x1x32xf32, #tpu.memory_space<vmem>>, vector<1x1x32xf32>
    %24 = vector.shape_cast %23 : vector<1x1x32xf32> to vector<1x32xf32>
    %cst_14 = arith.constant dense<0.000000e+00> : vector<16xf32>
    %25 = vector.multi_reduction <add>, %16, %cst_14 [1] : vector<16x32xf32> to vector<16xf32>
    %26 = vector.shape_cast %25 : vector<16xf32> to vector<16x1xf32>
    %cst_15 = arith.constant 3.200000e+01 : f32
    %27 = vector.broadcast %cst_15 : f32 to vector<16x1xf32>
    %28 = arith.divf %26, %27 : vector<16x1xf32>
    %29 = vector.broadcast %28 : vector<16x1xf32> to vector<16x32xf32>
    %30 = arith.subf %16, %29 : vector<16x32xf32>
    %31 = arith.mulf %30, %30 : vector<16x32xf32>
    %cst_16 = arith.constant dense<0.000000e+00> : vector<16xf32>
    %32 = vector.multi_reduction <add>, %31, %cst_16 [1] : vector<16x32xf32> to vector<16xf32>
    %33 = vector.shape_cast %32 : vector<16xf32> to vector<16x1xf32>
    %cst_17 = arith.constant 3.200000e+01 : f32
    %34 = vector.broadcast %cst_17 : f32 to vector<16x1xf32>
    %35 = arith.divf %33, %34 : vector<16x1xf32>
    %36 = vector.broadcast %28 : vector<16x1xf32> to vector<16x32xf32>
    %37 = arith.subf %16, %36 : vector<16x32xf32>
    %cst_18 = arith.constant 9.99999974E-6 : f32
    %38 = vector.broadcast %cst_18 : f32 to vector<16x1xf32>
    %39 = arith.addf %35, %38 : vector<16x1xf32>
    %40 = math.rsqrt %39 : vector<16x1xf32>
    %41 = vector.broadcast %40 : vector<16x1xf32> to vector<16x32xf32>
    %42 = arith.mulf %37, %41 : vector<16x32xf32>
    %43 = vector.broadcast %22 : vector<1x32xf32> to vector<16x32xf32>
    %44 = arith.mulf %42, %43 : vector<16x32xf32>
    %45 = vector.broadcast %24 : vector<1x32xf32> to vector<16x32xf32>
    %46 = arith.addf %44, %45 : vector<16x32xf32>
    %c0_19 = arith.constant 0 : index
    %c0_20 = arith.constant 0 : index
    %c0_21 = arith.constant 0 : index
    %47 = vector.load %arg6[%c0_19, %c0_20, %c0_21] : memref<2x32x32xf32, #tpu.memory_space<vmem>>, vector<1x32x32xf32>
    %48 = vector.shape_cast %47 : vector<1x32x32xf32> to vector<32x32xf32>
    %cst_22 = arith.constant dense<0.000000e+00> : vector<16x32xf32>
    %49 = tpu.matmul %46, %48, %cst_22 {dimension_numbers = #tpu.dot_dimension_numbers<[1], [0], [0], [1], [0, 0, 1, 1], [], []>} : vector<16x32xf32>, vector<32x32xf32>, vector<16x32xf32> -> vector<16x32xf32>
    %c0_23 = arith.constant 0 : index
    %c0_24 = arith.constant 0 : index
    %c0_25 = arith.constant 0 : index
    %50 = vector.load %arg7[%c0_23, %c0_24, %c0_25] : memref<2x1x32xf32, #tpu.memory_space<vmem>>, vector<1x1x32xf32>
    %51 = vector.shape_cast %50 : vector<1x1x32xf32> to vector<1x32xf32>
    %52 = vector.broadcast %51 : vector<1x32xf32> to vector<16x32xf32>
    %53 = arith.addf %49, %52 : vector<16x32xf32>
    %c0_26 = arith.constant 0 : index
    %c0_27 = arith.constant 0 : index
    %c0_28 = arith.constant 0 : index
    %54 = vector.load %arg8[%c0_26, %c0_27, %c0_28] : memref<2x32x32xf32, #tpu.memory_space<vmem>>, vector<1x32x32xf32>
    %55 = vector.shape_cast %54 : vector<1x32x32xf32> to vector<32x32xf32>
    %cst_29 = arith.constant dense<0.000000e+00> : vector<16x32xf32>
    %56 = tpu.matmul %46, %55, %cst_29 {dimension_numbers = #tpu.dot_dimension_numbers<[1], [0], [0], [1], [0, 0, 1, 1], [], []>} : vector<16x32xf32>, vector<32x32xf32>, vector<16x32xf32> -> vector<16x32xf32>
    %c0_30 = arith.constant 0 : index
    %c0_31 = arith.constant 0 : index
    %c0_32 = arith.constant 0 : index
    %57 = vector.load %arg9[%c0_30, %c0_31, %c0_32] : memref<2x1x32xf32, #tpu.memory_space<vmem>>, vector<1x1x32xf32>
    %58 = vector.shape_cast %57 : vector<1x1x32xf32> to vector<1x32xf32>
    %59 = vector.broadcast %58 : vector<1x32xf32> to vector<16x32xf32>
    %60 = arith.addf %56, %59 : vector<16x32xf32>
    %c0_33 = arith.constant 0 : index
    %c0_34 = arith.constant 0 : index
    %c0_35 = arith.constant 0 : index
    %61 = vector.load %arg10[%c0_33, %c0_34, %c0_35] : memref<2x32x32xf32, #tpu.memory_space<vmem>>, vector<1x32x32xf32>
    %62 = vector.shape_cast %61 : vector<1x32x32xf32> to vector<32x32xf32>
    %cst_36 = arith.constant dense<0.000000e+00> : vector<16x32xf32>
    %63 = tpu.matmul %46, %62, %cst_36 {dimension_numbers = #tpu.dot_dimension_numbers<[1], [0], [0], [1], [0, 0, 1, 1], [], []>} : vector<16x32xf32>, vector<32x32xf32>, vector<16x32xf32> -> vector<16x32xf32>
    %c0_37 = arith.constant 0 : index
    %c0_38 = arith.constant 0 : index
    %c0_39 = arith.constant 0 : index
    %64 = vector.load %arg11[%c0_37, %c0_38, %c0_39] : memref<2x1x32xf32, #tpu.memory_space<vmem>>, vector<1x1x32xf32>
    %65 = vector.shape_cast %64 : vector<1x1x32xf32> to vector<1x32xf32>
    %66 = vector.broadcast %65 : vector<1x32xf32> to vector<16x32xf32>
    %67 = arith.addf %63, %66 : vector<16x32xf32>
    %68 = vector.shape_cast %53 : vector<16x32xf32> to vector<2x8x32xf32>
    %69 = vector.shape_cast %60 : vector<16x32xf32> to vector<2x8x32xf32>
    %70 = vector.shape_cast %67 : vector<16x32xf32> to vector<2x8x32xf32>
    %c0_40 = arith.constant 0 : index
    %c0_41 = arith.constant 0 : index
    %c0_42 = arith.constant 0 : index
    %71 = vector.load %arg12[%c0_40, %c0_41, %c0_42] : memref<2x32x32xf32, #tpu.memory_space<vmem>>, vector<1x32x32xf32>
    %72 = vector.shape_cast %71 : vector<1x32x32xf32> to vector<32x32xf32>
    %cst_43 = arith.constant 0.000000e+00 : f32
    %73 = vector.broadcast %cst_43 : f32 to vector<16x32xf32>
    %74 = vector.extract_strided_slice %68 {offsets = [0, 0, 0], sizes = [2, 8, 8], strides = [1, 1, 1]} : vector<2x8x32xf32> to vector<2x8x8xf32>
    %75 = vector.extract_strided_slice %69 {offsets = [0, 0, 0], sizes = [2, 8, 8], strides = [1, 1, 1]} : vector<2x8x32xf32> to vector<2x8x8xf32>
    %76 = vector.extract_strided_slice %70 {offsets = [0, 0, 0], sizes = [2, 8, 8], strides = [1, 1, 1]} : vector<2x8x32xf32> to vector<2x8x8xf32>
    "tpu.trace_start"() <{level = 10 : i32, message = "bsd,btd->bst"}> : () -> ()
    %cst_44 = arith.constant dense<0.000000e+00> : vector<2x8x8xf32>
    %77 = tpu.matmul %74, %75, %cst_44 {dimension_numbers = #tpu.dot_dimension_numbers<[2], [2], [1], [1], [0, 0, 0, 1, 1, 1], [0], [0]>} : vector<2x8x8xf32>, vector<2x8x8xf32>, vector<2x8x8xf32> -> vector<2x8x8xf32>
    "tpu.trace_stop"() : () -> ()
    %cst_45 = arith.constant 0.353553385 : f32
    %78 = vector.broadcast %cst_45 : f32 to vector<2x8x8xf32>
    %79 = arith.mulf %77, %78 : vector<2x8x8xf32>
    %cst_46 = arith.constant -1.000000e+04 : f32
    %80 = vector.shape_cast %20 : vector<1x8x8xi1> to vector<1x8x8xi1>
    %81 = vector.broadcast %80 : vector<1x8x8xi1> to vector<2x8x8xi1>
    %82 = vector.broadcast %cst_46 : f32 to vector<2x8x8xf32>
    %83 = arith.select %81, %79, %82 : vector<2x8x8xi1>, vector<2x8x8xf32>
    %cst_47 = arith.constant dense<0xFF800000> : vector<2x8xf32>
    %84 = vector.multi_reduction <maximumf>, %83, %cst_47 [2] : vector<2x8x8xf32> to vector<2x8xf32>
    %85 = vector.shape_cast %84 : vector<2x8xf32> to vector<2x8x1xf32>
    %86 = vector.broadcast %85 : vector<2x8x1xf32> to vector<2x8x8xf32>
    %87 = arith.subf %83, %86 : vector<2x8x8xf32>
    %88 = math.exp %87 : vector<2x8x8xf32>
    %cst_48 = arith.constant dense<0.000000e+00> : vector<2x8xf32>
    %89 = vector.multi_reduction <add>, %88, %cst_48 [2] : vector<2x8x8xf32> to vector<2x8xf32>
    %90 = vector.shape_cast %89 : vector<2x8xf32> to vector<2x8x1xf32>
    %91 = tpu.reciprocal %90 {approx = true} : vector<2x8x1xf32> -> vector<2x8x1xf32>
    %92 = vector.broadcast %91 : vector<2x8x1xf32> to vector<2x8x8xf32>
    %93 = arith.mulf %88, %92 : vector<2x8x8xf32>
    "tpu.trace_start"() <{level = 10 : i32, message = "bst,btd->bsd"}> : () -> ()
    %cst_49 = arith.constant dense<0.000000e+00> : vector<2x8x8xf32>
    %94 = tpu.matmul %93, %76, %cst_49 {dimension_numbers = #tpu.dot_dimension_numbers<[2], [1], [1], [2], [0, 0, 0, 1, 1, 2], [0], [0]>} : vector<2x8x8xf32>, vector<2x8x8xf32>, vector<2x8x8xf32> -> vector<2x8x8xf32>
    "tpu.trace_stop"() : () -> ()
    %95 = vector.shape_cast %94 : vector<2x8x8xf32> to vector<16x8xf32>
    %96 = vector.extract_strided_slice %72 {offsets = [0, 0], sizes = [8, 32], strides = [1, 1]} : vector<32x32xf32> to vector<8x32xf32>
    %cst_50 = arith.constant dense<0.000000e+00> : vector<16x32xf32>
    %97 = tpu.matmul %95, %96, %cst_50 {dimension_numbers = #tpu.dot_dimension_numbers<[1], [0], [0], [1], [0, 0, 1, 1], [], []>} : vector<16x8xf32>, vector<8x32xf32>, vector<16x32xf32> -> vector<16x32xf32>
    %98 = arith.addf %73, %97 : vector<16x32xf32>
    %99 = vector.extract_strided_slice %68 {offsets = [0, 0, 8], sizes = [2, 8, 8], strides = [1, 1, 1]} : vector<2x8x32xf32> to vector<2x8x8xf32>
    %100 = vector.extract_strided_slice %69 {offsets = [0, 0, 8], sizes = [2, 8, 8], strides = [1, 1, 1]} : vector<2x8x32xf32> to vector<2x8x8xf32>
    %101 = vector.extract_strided_slice %70 {offsets = [0, 0, 8], sizes = [2, 8, 8], strides = [1, 1, 1]} : vector<2x8x32xf32> to vector<2x8x8xf32>
    "tpu.trace_start"() <{level = 10 : i32, message = "bsd,btd->bst"}> : () -> ()
    %cst_51 = arith.constant dense<0.000000e+00> : vector<2x8x8xf32>
    %102 = tpu.matmul %99, %100, %cst_51 {dimension_numbers = #tpu.dot_dimension_numbers<[2], [2], [1], [1], [0, 0, 0, 1, 1, 1], [0], [0]>} : vector<2x8x8xf32>, vector<2x8x8xf32>, vector<2x8x8xf32> -> vector<2x8x8xf32>
    "tpu.trace_stop"() : () -> ()
    %cst_52 = arith.constant 0.353553385 : f32
    %103 = vector.broadcast %cst_52 : f32 to vector<2x8x8xf32>
    %104 = arith.mulf %102, %103 : vector<2x8x8xf32>
    %cst_53 = arith.constant -1.000000e+04 : f32
    %105 = vector.shape_cast %20 : vector<1x8x8xi1> to vector<1x8x8xi1>
    %106 = vector.broadcast %105 : vector<1x8x8xi1> to vector<2x8x8xi1>
    %107 = vector.broadcast %cst_53 : f32 to vector<2x8x8xf32>
    %108 = arith.select %106, %104, %107 : vector<2x8x8xi1>, vector<2x8x8xf32>
    %cst_54 = arith.constant dense<0xFF800000> : vector<2x8xf32>
    %109 = vector.multi_reduction <maximumf>, %108, %cst_54 [2] : vector<2x8x8xf32> to vector<2x8xf32>
    %110 = vector.shape_cast %109 : vector<2x8xf32> to vector<2x8x1xf32>
    %111 = vector.broadcast %110 : vector<2x8x1xf32> to vector<2x8x8xf32>
    %112 = arith.subf %108, %111 : vector<2x8x8xf32>
    %113 = math.exp %112 : vector<2x8x8xf32>
    %cst_55 = arith.constant dense<0.000000e+00> : vector<2x8xf32>
    %114 = vector.multi_reduction <add>, %113, %cst_55 [2] : vector<2x8x8xf32> to vector<2x8xf32>
    %115 = vector.shape_cast %114 : vector<2x8xf32> to vector<2x8x1xf32>
    %116 = tpu.reciprocal %115 {approx = true} : vector<2x8x1xf32> -> vector<2x8x1xf32>
    %117 = vector.broadcast %116 : vector<2x8x1xf32> to vector<2x8x8xf32>
    %118 = arith.mulf %113, %117 : vector<2x8x8xf32>
    "tpu.trace_start"() <{level = 10 : i32, message = "bst,btd->bsd"}> : () -> ()
    %cst_56 = arith.constant dense<0.000000e+00> : vector<2x8x8xf32>
    %119 = tpu.matmul %118, %101, %cst_56 {dimension_numbers = #tpu.dot_dimension_numbers<[2], [1], [1], [2], [0, 0, 0, 1, 1, 2], [0], [0]>} : vector<2x8x8xf32>, vector<2x8x8xf32>, vector<2x8x8xf32> -> vector<2x8x8xf32>
    "tpu.trace_stop"() : () -> ()
    %120 = vector.shape_cast %119 : vector<2x8x8xf32> to vector<16x8xf32>
    %121 = vector.extract_strided_slice %72 {offsets = [8, 0], sizes = [8, 32], strides = [1, 1]} : vector<32x32xf32> to vector<8x32xf32>
    %cst_57 = arith.constant dense<0.000000e+00> : vector<16x32xf32>
    %122 = tpu.matmul %120, %121, %cst_57 {dimension_numbers = #tpu.dot_dimension_numbers<[1], [0], [0], [1], [0, 0, 1, 1], [], []>} : vector<16x8xf32>, vector<8x32xf32>, vector<16x32xf32> -> vector<16x32xf32>
    %123 = arith.addf %98, %122 : vector<16x32xf32>
    %124 = vector.extract_strided_slice %68 {offsets = [0, 0, 16], sizes = [2, 8, 8], strides = [1, 1, 1]} : vector<2x8x32xf32> to vector<2x8x8xf32>
    %125 = vector.extract_strided_slice %69 {offsets = [0, 0, 16], sizes = [2, 8, 8], strides = [1, 1, 1]} : vector<2x8x32xf32> to vector<2x8x8xf32>
    %126 = vector.extract_strided_slice %70 {offsets = [0, 0, 16], sizes = [2, 8, 8], strides = [1, 1, 1]} : vector<2x8x32xf32> to vector<2x8x8xf32>
    "tpu.trace_start"() <{level = 10 : i32, message = "bsd,btd->bst"}> : () -> ()
    %cst_58 = arith.constant dense<0.000000e+00> : vector<2x8x8xf32>
    %127 = tpu.matmul %124, %125, %cst_58 {dimension_numbers = #tpu.dot_dimension_numbers<[2], [2], [1], [1], [0, 0, 0, 1, 1, 1], [0], [0]>} : vector<2x8x8xf32>, vector<2x8x8xf32>, vector<2x8x8xf32> -> vector<2x8x8xf32>
    "tpu.trace_stop"() : () -> ()
    %cst_59 = arith.constant 0.353553385 : f32
    %128 = vector.broadcast %cst_59 : f32 to vector<2x8x8xf32>
    %129 = arith.mulf %127, %128 : vector<2x8x8xf32>
    %cst_60 = arith.constant -1.000000e+04 : f32
    %130 = vector.shape_cast %20 : vector<1x8x8xi1> to vector<1x8x8xi1>
    %131 = vector.broadcast %130 : vector<1x8x8xi1> to vector<2x8x8xi1>
    %132 = vector.broadcast %cst_60 : f32 to vector<2x8x8xf32>
    %133 = arith.select %131, %129, %132 : vector<2x8x8xi1>, vector<2x8x8xf32>
    %cst_61 = arith.constant dense<0xFF800000> : vector<2x8xf32>
    %134 = vector.multi_reduction <maximumf>, %133, %cst_61 [2] : vector<2x8x8xf32> to vector<2x8xf32>
    %135 = vector.shape_cast %134 : vector<2x8xf32> to vector<2x8x1xf32>
    %136 = vector.broadcast %135 : vector<2x8x1xf32> to vector<2x8x8xf32>
    %137 = arith.subf %133, %136 : vector<2x8x8xf32>
    %138 = math.exp %137 : vector<2x8x8xf32>
    %cst_62 = arith.constant dense<0.000000e+00> : vector<2x8xf32>
    %139 = vector.multi_reduction <add>, %138, %cst_62 [2] : vector<2x8x8xf32> to vector<2x8xf32>
    %140 = vector.shape_cast %139 : vector<2x8xf32> to vector<2x8x1xf32>
    %141 = tpu.reciprocal %140 {approx = true} : vector<2x8x1xf32> -> vector<2x8x1xf32>
    %142 = vector.broadcast %141 : vector<2x8x1xf32> to vector<2x8x8xf32>
    %143 = arith.mulf %138, %142 : vector<2x8x8xf32>
    "tpu.trace_start"() <{level = 10 : i32, message = "bst,btd->bsd"}> : () -> ()
    %cst_63 = arith.constant dense<0.000000e+00> : vector<2x8x8xf32>
    %144 = tpu.matmul %143, %126, %cst_63 {dimension_numbers = #tpu.dot_dimension_numbers<[2], [1], [1], [2], [0, 0, 0, 1, 1, 2], [0], [0]>} : vector<2x8x8xf32>, vector<2x8x8xf32>, vector<2x8x8xf32> -> vector<2x8x8xf32>
    "tpu.trace_stop"() : () -> ()
    %145 = vector.shape_cast %144 : vector<2x8x8xf32> to vector<16x8xf32>
    %146 = vector.extract_strided_slice %72 {offsets = [16, 0], sizes = [8, 32], strides = [1, 1]} : vector<32x32xf32> to vector<8x32xf32>
    %cst_64 = arith.constant dense<0.000000e+00> : vector<16x32xf32>
    %147 = tpu.matmul %145, %146, %cst_64 {dimension_numbers = #tpu.dot_dimension_numbers<[1], [0], [0], [1], [0, 0, 1, 1], [], []>} : vector<16x8xf32>, vector<8x32xf32>, vector<16x32xf32> -> vector<16x32xf32>
    %148 = arith.addf %123, %147 : vector<16x32xf32>
    %149 = vector.extract_strided_slice %68 {offsets = [0, 0, 24], sizes = [2, 8, 8], strides = [1, 1, 1]} : vector<2x8x32xf32> to vector<2x8x8xf32>
    %150 = vector.extract_strided_slice %69 {offsets = [0, 0, 24], sizes = [2, 8, 8], strides = [1, 1, 1]} : vector<2x8x32xf32> to vector<2x8x8xf32>
    %151 = vector.extract_strided_slice %70 {offsets = [0, 0, 24], sizes = [2, 8, 8], strides = [1, 1, 1]} : vector<2x8x32xf32> to vector<2x8x8xf32>
    "tpu.trace_start"() <{level = 10 : i32, message = "bsd,btd->bst"}> : () -> ()
    %cst_65 = arith.constant dense<0.000000e+00> : vector<2x8x8xf32>
    %152 = tpu.matmul %149, %150, %cst_65 {dimension_numbers = #tpu.dot_dimension_numbers<[2], [2], [1], [1], [0, 0, 0, 1, 1, 1], [0], [0]>} : vector<2x8x8xf32>, vector<2x8x8xf32>, vector<2x8x8xf32> -> vector<2x8x8xf32>
    "tpu.trace_stop"() : () -> ()
    %cst_66 = arith.constant 0.353553385 : f32
    %153 = vector.broadcast %cst_66 : f32 to vector<2x8x8xf32>
    %154 = arith.mulf %152, %153 : vector<2x8x8xf32>
    %cst_67 = arith.constant -1.000000e+04 : f32
    %155 = vector.shape_cast %20 : vector<1x8x8xi1> to vector<1x8x8xi1>
    %156 = vector.broadcast %155 : vector<1x8x8xi1> to vector<2x8x8xi1>
    %157 = vector.broadcast %cst_67 : f32 to vector<2x8x8xf32>
    %158 = arith.select %156, %154, %157 : vector<2x8x8xi1>, vector<2x8x8xf32>
    %cst_68 = arith.constant dense<0xFF800000> : vector<2x8xf32>
    %159 = vector.multi_reduction <maximumf>, %158, %cst_68 [2] : vector<2x8x8xf32> to vector<2x8xf32>
    %160 = vector.shape_cast %159 : vector<2x8xf32> to vector<2x8x1xf32>
    %161 = vector.broadcast %160 : vector<2x8x1xf32> to vector<2x8x8xf32>
    %162 = arith.subf %158, %161 : vector<2x8x8xf32>
    %163 = math.exp %162 : vector<2x8x8xf32>
    %cst_69 = arith.constant dense<0.000000e+00> : vector<2x8xf32>
    %164 = vector.multi_reduction <add>, %163, %cst_69 [2] : vector<2x8x8xf32> to vector<2x8xf32>
    %165 = vector.shape_cast %164 : vector<2x8xf32> to vector<2x8x1xf32>
    %166 = tpu.reciprocal %165 {approx = true} : vector<2x8x1xf32> -> vector<2x8x1xf32>
    %167 = vector.broadcast %166 : vector<2x8x1xf32> to vector<2x8x8xf32>
    %168 = arith.mulf %163, %167 : vector<2x8x8xf32>
    "tpu.trace_start"() <{level = 10 : i32, message = "bst,btd->bsd"}> : () -> ()
    %cst_70 = arith.constant dense<0.000000e+00> : vector<2x8x8xf32>
    %169 = tpu.matmul %168, %151, %cst_70 {dimension_numbers = #tpu.dot_dimension_numbers<[2], [1], [1], [2], [0, 0, 0, 1, 1, 2], [0], [0]>} : vector<2x8x8xf32>, vector<2x8x8xf32>, vector<2x8x8xf32> -> vector<2x8x8xf32>
    "tpu.trace_stop"() : () -> ()
    %170 = vector.shape_cast %169 : vector<2x8x8xf32> to vector<16x8xf32>
    %171 = vector.extract_strided_slice %72 {offsets = [24, 0], sizes = [8, 32], strides = [1, 1]} : vector<32x32xf32> to vector<8x32xf32>
    %cst_71 = arith.constant dense<0.000000e+00> : vector<16x32xf32>
    %172 = tpu.matmul %170, %171, %cst_71 {dimension_numbers = #tpu.dot_dimension_numbers<[1], [0], [0], [1], [0, 0, 1, 1], [], []>} : vector<16x8xf32>, vector<8x32xf32>, vector<16x32xf32> -> vector<16x32xf32>
    %173 = arith.addf %148, %172 : vector<16x32xf32>
    %174 = arith.addf %16, %173 : vector<16x32xf32>
    %c0_72 = arith.constant 0 : index
    %c0_73 = arith.constant 0 : index
    %c0_74 = arith.constant 0 : index
    %175 = vector.load %arg13[%c0_72, %c0_73, %c0_74] : memref<2x1x32xf32, #tpu.memory_space<vmem>>, vector<1x1x32xf32>
    %176 = vector.shape_cast %175 : vector<1x1x32xf32> to vector<1x32xf32>
    %177 = vector.broadcast %176 : vector<1x32xf32> to vector<16x32xf32>
    %178 = arith.addf %174, %177 : vector<16x32xf32>
    %c0_75 = arith.constant 0 : index
    %c0_76 = arith.constant 0 : index
    %c0_77 = arith.constant 0 : index
    %179 = vector.load %arg14[%c0_75, %c0_76, %c0_77] : memref<2x1x32xf32, #tpu.memory_space<vmem>>, vector<1x1x32xf32>
    %180 = vector.shape_cast %179 : vector<1x1x32xf32> to vector<1x32xf32>
    %c0_78 = arith.constant 0 : index
    %c0_79 = arith.constant 0 : index
    %c0_80 = arith.constant 0 : index
    %181 = vector.load %arg15[%c0_78, %c0_79, %c0_80] : memref<2x1x32xf32, #tpu.memory_space<vmem>>, vector<1x1x32xf32>
    %182 = vector.shape_cast %181 : vector<1x1x32xf32> to vector<1x32xf32>
    %cst_81 = arith.constant dense<0.000000e+00> : vector<16xf32>
    %183 = vector.multi_reduction <add>, %178, %cst_81 [1] : vector<16x32xf32> to vector<16xf32>
    %184 = vector.shape_cast %183 : vector<16xf32> to vector<16x1xf32>
    %cst_82 = arith.constant 3.200000e+01 : f32
    %185 = vector.broadcast %cst_82 : f32 to vector<16x1xf32>
    %186 = arith.divf %184, %185 : vector<16x1xf32>
    %187 = vector.broadcast %186 : vector<16x1xf32> to vector<16x32xf32>
    %188 = arith.subf %178, %187 : vector<16x32xf32>
    %189 = arith.mulf %188, %188 : vector<16x32xf32>
    %cst_83 = arith.constant dense<0.000000e+00> : vector<16xf32>
    %190 = vector.multi_reduction <add>, %189, %cst_83 [1] : vector<16x32xf32> to vector<16xf32>
    %191 = vector.shape_cast %190 : vector<16xf32> to vector<16x1xf32>
    %cst_84 = arith.constant 3.200000e+01 : f32
    %192 = vector.broadcast %cst_84 : f32 to vector<16x1xf32>
    %193 = arith.divf %191, %192 : vector<16x1xf32>
    %194 = vector.broadcast %186 : vector<16x1xf32> to vector<16x32xf32>
    %195 = arith.subf %178, %194 : vector<16x32xf32>
    %cst_85 = arith.constant 9.99999974E-6 : f32
    %196 = vector.broadcast %cst_85 : f32 to vector<16x1xf32>
    %197 = arith.addf %193, %196 : vector<16x1xf32>
    %198 = math.rsqrt %197 : vector<16x1xf32>
    %199 = vector.broadcast %198 : vector<16x1xf32> to vector<16x32xf32>
    %200 = arith.mulf %195, %199 : vector<16x32xf32>
    %201 = vector.broadcast %180 : vector<1x32xf32> to vector<16x32xf32>
    %202 = arith.mulf %200, %201 : vector<16x32xf32>
    %203 = vector.broadcast %182 : vector<1x32xf32> to vector<16x32xf32>
    %204 = arith.addf %202, %203 : vector<16x32xf32>
    %c0_86 = arith.constant 0 : index
    %c0_87 = arith.constant 0 : index
    %c0_88 = arith.constant 0 : index
    %205 = vector.load %arg16[%c0_86, %c0_87, %c0_88] : memref<2x32x32xf32, #tpu.memory_space<vmem>>, vector<1x32x32xf32>
    %206 = vector.shape_cast %205 : vector<1x32x32xf32> to vector<32x32xf32>
    %cst_89 = arith.constant dense<0.000000e+00> : vector<16x32xf32>
    %207 = tpu.matmul %204, %206, %cst_89 {dimension_numbers = #tpu.dot_dimension_numbers<[1], [0], [0], [1], [0, 0, 1, 1], [], []>} : vector<16x32xf32>, vector<32x32xf32>, vector<16x32xf32> -> vector<16x32xf32>
    %c0_90 = arith.constant 0 : index
    %c0_91 = arith.constant 0 : index
    %c0_92 = arith.constant 0 : index
    %208 = vector.load %arg17[%c0_90, %c0_91, %c0_92] : memref<2x1x32xf32, #tpu.memory_space<vmem>>, vector<1x1x32xf32>
    %209 = vector.shape_cast %208 : vector<1x1x32xf32> to vector<1x32xf32>
    %210 = vector.broadcast %209 : vector<1x32xf32> to vector<16x32xf32>
    %211 = arith.addf %207, %210 : vector<16x32xf32>
    %cst_93 = arith.constant 0.000000e+00 : f32
    %212 = vector.broadcast %cst_93 : f32 to vector<16x32xf32>
    %213 = arith.maximumf %211, %212 : vector<16x32xf32>
    %214 = vector.broadcast %cst_93 : f32 to vector<16x32xf32>
    %215 = arith.subf %211, %214 : vector<16x32xf32>
    %216 = arith.cmpf one, %215, %215 : vector<16x32xf32>
    %217 = vector.broadcast %cst_93 : f32 to vector<16x32xf32>
    %218 = arith.addf %211, %217 : vector<16x32xf32>
    %219 = math.absf %215 : vector<16x32xf32>
    %cst_94 = arith.constant 0.000000e+00 : f32
    %220 = vector.broadcast %cst_94 : f32 to vector<16x32xf32>
    %221 = arith.subf %220, %219 : vector<16x32xf32>
    %222 = math.exp %221 : vector<16x32xf32>
    %223 = math.log1p %222 : vector<16x32xf32>
    %224 = arith.addf %213, %223 : vector<16x32xf32>
    %225 = arith.select %216, %218, %224 : vector<16x32xi1>, vector<16x32xf32>
    %226 = math.tanh %225 : vector<16x32xf32>
    %227 = arith.mulf %211, %226 : vector<16x32xf32>
    %c0_95 = arith.constant 0 : index
    %c0_96 = arith.constant 0 : index
    %c0_97 = arith.constant 0 : index
    %228 = vector.load %arg18[%c0_95, %c0_96, %c0_97] : memref<2x32x32xf32, #tpu.memory_space<vmem>>, vector<1x32x32xf32>
    %229 = vector.shape_cast %228 : vector<1x32x32xf32> to vector<32x32xf32>
    %cst_98 = arith.constant dense<0.000000e+00> : vector<16x32xf32>
    %230 = tpu.matmul %227, %229, %cst_98 {dimension_numbers = #tpu.dot_dimension_numbers<[1], [0], [0], [1], [0, 0, 1, 1], [], []>} : vector<16x32xf32>, vector<32x32xf32>, vector<16x32xf32> -> vector<16x32xf32>
    %c0_99 = arith.constant 0 : index
    %c0_100 = arith.constant 0 : index
    %c0_101 = arith.constant 0 : index
    %231 = vector.load %arg19[%c0_99, %c0_100, %c0_101] : memref<2x1x32xf32, #tpu.memory_space<vmem>>, vector<1x1x32xf32>
    %232 = vector.shape_cast %231 : vector<1x1x32xf32> to vector<1x32xf32>
    %233 = vector.broadcast %232 : vector<1x32xf32> to vector<16x32xf32>
    %234 = arith.addf %230, %233 : vector<16x32xf32>
    %235 = arith.addf %178, %234 : vector<16x32xf32>
    %c1 = arith.constant 1 : index
    %c0_102 = arith.constant 0 : index
    %c0_103 = arith.constant 0 : index
    %236 = vector.load %arg4[%c1, %c0_102, %c0_103] : memref<2x1x32xf32, #tpu.memory_space<vmem>>, vector<1x1x32xf32>
    %237 = vector.shape_cast %236 : vector<1x1x32xf32> to vector<1x32xf32>
    %c1_104 = arith.constant 1 : index
    %c0_105 = arith.constant 0 : index
    %c0_106 = arith.constant 0 : index
    %238 = vector.load %arg5[%c1_104, %c0_105, %c0_106] : memref<2x1x32xf32, #tpu.memory_space<vmem>>, vector<1x1x32xf32>
    %239 = vector.shape_cast %238 : vector<1x1x32xf32> to vector<1x32xf32>
    %cst_107 = arith.constant dense<0.000000e+00> : vector<16xf32>
    %240 = vector.multi_reduction <add>, %235, %cst_107 [1] : vector<16x32xf32> to vector<16xf32>
    %241 = vector.shape_cast %240 : vector<16xf32> to vector<16x1xf32>
    %cst_108 = arith.constant 3.200000e+01 : f32
    %242 = vector.broadcast %cst_108 : f32 to vector<16x1xf32>
    %243 = arith.divf %241, %242 : vector<16x1xf32>
    %244 = vector.broadcast %243 : vector<16x1xf32> to vector<16x32xf32>
    %245 = arith.subf %235, %244 : vector<16x32xf32>
    %246 = arith.mulf %245, %245 : vector<16x32xf32>
    %cst_109 = arith.constant dense<0.000000e+00> : vector<16xf32>
    %247 = vector.multi_reduction <add>, %246, %cst_109 [1] : vector<16x32xf32> to vector<16xf32>
    %248 = vector.shape_cast %247 : vector<16xf32> to vector<16x1xf32>
    %cst_110 = arith.constant 3.200000e+01 : f32
    %249 = vector.broadcast %cst_110 : f32 to vector<16x1xf32>
    %250 = arith.divf %248, %249 : vector<16x1xf32>
    %251 = vector.broadcast %243 : vector<16x1xf32> to vector<16x32xf32>
    %252 = arith.subf %235, %251 : vector<16x32xf32>
    %cst_111 = arith.constant 9.99999974E-6 : f32
    %253 = vector.broadcast %cst_111 : f32 to vector<16x1xf32>
    %254 = arith.addf %250, %253 : vector<16x1xf32>
    %255 = math.rsqrt %254 : vector<16x1xf32>
    %256 = vector.broadcast %255 : vector<16x1xf32> to vector<16x32xf32>
    %257 = arith.mulf %252, %256 : vector<16x32xf32>
    %258 = vector.broadcast %237 : vector<1x32xf32> to vector<16x32xf32>
    %259 = arith.mulf %257, %258 : vector<16x32xf32>
    %260 = vector.broadcast %239 : vector<1x32xf32> to vector<16x32xf32>
    %261 = arith.addf %259, %260 : vector<16x32xf32>
    %c1_112 = arith.constant 1 : index
    %c0_113 = arith.constant 0 : index
    %c0_114 = arith.constant 0 : index
    %262 = vector.load %arg6[%c1_112, %c0_113, %c0_114] : memref<2x32x32xf32, #tpu.memory_space<vmem>>, vector<1x32x32xf32>
    %263 = vector.shape_cast %262 : vector<1x32x32xf32> to vector<32x32xf32>
    %cst_115 = arith.constant dense<0.000000e+00> : vector<16x32xf32>
    %264 = tpu.matmul %261, %263, %cst_115 {dimension_numbers = #tpu.dot_dimension_numbers<[1], [0], [0], [1], [0, 0, 1, 1], [], []>} : vector<16x32xf32>, vector<32x32xf32>, vector<16x32xf32> -> vector<16x32xf32>
    %c1_116 = arith.constant 1 : index
    %c0_117 = arith.constant 0 : index
    %c0_118 = arith.constant 0 : index
    %265 = vector.load %arg7[%c1_116, %c0_117, %c0_118] : memref<2x1x32xf32, #tpu.memory_space<vmem>>, vector<1x1x32xf32>
    %266 = vector.shape_cast %265 : vector<1x1x32xf32> to vector<1x32xf32>
    %267 = vector.broadcast %266 : vector<1x32xf32> to vector<16x32xf32>
    %268 = arith.addf %264, %267 : vector<16x32xf32>
    %c1_119 = arith.constant 1 : index
    %c0_120 = arith.constant 0 : index
    %c0_121 = arith.constant 0 : index
    %269 = vector.load %arg8[%c1_119, %c0_120, %c0_121] : memref<2x32x32xf32, #tpu.memory_space<vmem>>, vector<1x32x32xf32>
    %270 = vector.shape_cast %269 : vector<1x32x32xf32> to vector<32x32xf32>
    %cst_122 = arith.constant dense<0.000000e+00> : vector<16x32xf32>
    %271 = tpu.matmul %261, %270, %cst_122 {dimension_numbers = #tpu.dot_dimension_numbers<[1], [0], [0], [1], [0, 0, 1, 1], [], []>} : vector<16x32xf32>, vector<32x32xf32>, vector<16x32xf32> -> vector<16x32xf32>
    %c1_123 = arith.constant 1 : index
    %c0_124 = arith.constant 0 : index
    %c0_125 = arith.constant 0 : index
    %272 = vector.load %arg9[%c1_123, %c0_124, %c0_125] : memref<2x1x32xf32, #tpu.memory_space<vmem>>, vector<1x1x32xf32>
    %273 = vector.shape_cast %272 : vector<1x1x32xf32> to vector<1x32xf32>
    %274 = vector.broadcast %273 : vector<1x32xf32> to vector<16x32xf32>
    %275 = arith.addf %271, %274 : vector<16x32xf32>
    %c1_126 = arith.constant 1 : index
    %c0_127 = arith.constant 0 : index
    %c0_128 = arith.constant 0 : index
    %276 = vector.load %arg10[%c1_126, %c0_127, %c0_128] : memref<2x32x32xf32, #tpu.memory_space<vmem>>, vector<1x32x32xf32>
    %277 = vector.shape_cast %276 : vector<1x32x32xf32> to vector<32x32xf32>
    %cst_129 = arith.constant dense<0.000000e+00> : vector<16x32xf32>
    %278 = tpu.matmul %261, %277, %cst_129 {dimension_numbers = #tpu.dot_dimension_numbers<[1], [0], [0], [1], [0, 0, 1, 1], [], []>} : vector<16x32xf32>, vector<32x32xf32>, vector<16x32xf32> -> vector<16x32xf32>
    %c1_130 = arith.constant 1 : index
    %c0_131 = arith.constant 0 : index
    %c0_132 = arith.constant 0 : index
    %279 = vector.load %arg11[%c1_130, %c0_131, %c0_132] : memref<2x1x32xf32, #tpu.memory_space<vmem>>, vector<1x1x32xf32>
    %280 = vector.shape_cast %279 : vector<1x1x32xf32> to vector<1x32xf32>
    %281 = vector.broadcast %280 : vector<1x32xf32> to vector<16x32xf32>
    %282 = arith.addf %278, %281 : vector<16x32xf32>
    %283 = vector.shape_cast %268 : vector<16x32xf32> to vector<2x8x32xf32>
    %284 = vector.shape_cast %275 : vector<16x32xf32> to vector<2x8x32xf32>
    %285 = vector.shape_cast %282 : vector<16x32xf32> to vector<2x8x32xf32>
    %c1_133 = arith.constant 1 : index
    %c0_134 = arith.constant 0 : index
    %c0_135 = arith.constant 0 : index
    %286 = vector.load %arg12[%c1_133, %c0_134, %c0_135] : memref<2x32x32xf32, #tpu.memory_space<vmem>>, vector<1x32x32xf32>
    %287 = vector.shape_cast %286 : vector<1x32x32xf32> to vector<32x32xf32>
    %cst_136 = arith.constant 0.000000e+00 : f32
    %288 = vector.broadcast %cst_136 : f32 to vector<16x32xf32>
    %289 = vector.extract_strided_slice %283 {offsets = [0, 0, 0], sizes = [2, 8, 8], strides = [1, 1, 1]} : vector<2x8x32xf32> to vector<2x8x8xf32>
    %290 = vector.extract_strided_slice %284 {offsets = [0, 0, 0], sizes = [2, 8, 8], strides = [1, 1, 1]} : vector<2x8x32xf32> to vector<2x8x8xf32>
    %291 = vector.extract_strided_slice %285 {offsets = [0, 0, 0], sizes = [2, 8, 8], strides = [1, 1, 1]} : vector<2x8x32xf32> to vector<2x8x8xf32>
    "tpu.trace_start"() <{level = 10 : i32, message = "bsd,btd->bst"}> : () -> ()
    %cst_137 = arith.constant dense<0.000000e+00> : vector<2x8x8xf32>
    %292 = tpu.matmul %289, %290, %cst_137 {dimension_numbers = #tpu.dot_dimension_numbers<[2], [2], [1], [1], [0, 0, 0, 1, 1, 1], [0], [0]>} : vector<2x8x8xf32>, vector<2x8x8xf32>, vector<2x8x8xf32> -> vector<2x8x8xf32>
    "tpu.trace_stop"() : () -> ()
    %cst_138 = arith.constant 0.353553385 : f32
    %293 = vector.broadcast %cst_138 : f32 to vector<2x8x8xf32>
    %294 = arith.mulf %292, %293 : vector<2x8x8xf32>
    %cst_139 = arith.constant -1.000000e+04 : f32
    %295 = vector.shape_cast %20 : vector<1x8x8xi1> to vector<1x8x8xi1>
    %296 = vector.broadcast %295 : vector<1x8x8xi1> to vector<2x8x8xi1>
    %297 = vector.broadcast %cst_139 : f32 to vector<2x8x8xf32>
    %298 = arith.select %296, %294, %297 : vector<2x8x8xi1>, vector<2x8x8xf32>
    %cst_140 = arith.constant dense<0xFF800000> : vector<2x8xf32>
    %299 = vector.multi_reduction <maximumf>, %298, %cst_140 [2] : vector<2x8x8xf32> to vector<2x8xf32>
    %300 = vector.shape_cast %299 : vector<2x8xf32> to vector<2x8x1xf32>
    %301 = vector.broadcast %300 : vector<2x8x1xf32> to vector<2x8x8xf32>
    %302 = arith.subf %298, %301 : vector<2x8x8xf32>
    %303 = math.exp %302 : vector<2x8x8xf32>
    %cst_141 = arith.constant dense<0.000000e+00> : vector<2x8xf32>
    %304 = vector.multi_reduction <add>, %303, %cst_141 [2] : vector<2x8x8xf32> to vector<2x8xf32>
    %305 = vector.shape_cast %304 : vector<2x8xf32> to vector<2x8x1xf32>
    %306 = tpu.reciprocal %305 {approx = true} : vector<2x8x1xf32> -> vector<2x8x1xf32>
    %307 = vector.broadcast %306 : vector<2x8x1xf32> to vector<2x8x8xf32>
    %308 = arith.mulf %303, %307 : vector<2x8x8xf32>
    "tpu.trace_start"() <{level = 10 : i32, message = "bst,btd->bsd"}> : () -> ()
    %cst_142 = arith.constant dense<0.000000e+00> : vector<2x8x8xf32>
    %309 = tpu.matmul %308, %291, %cst_142 {dimension_numbers = #tpu.dot_dimension_numbers<[2], [1], [1], [2], [0, 0, 0, 1, 1, 2], [0], [0]>} : vector<2x8x8xf32>, vector<2x8x8xf32>, vector<2x8x8xf32> -> vector<2x8x8xf32>
    "tpu.trace_stop"() : () -> ()
    %310 = vector.shape_cast %309 : vector<2x8x8xf32> to vector<16x8xf32>
    %311 = vector.extract_strided_slice %287 {offsets = [0, 0], sizes = [8, 32], strides = [1, 1]} : vector<32x32xf32> to vector<8x32xf32>
    %cst_143 = arith.constant dense<0.000000e+00> : vector<16x32xf32>
    %312 = tpu.matmul %310, %311, %cst_143 {dimension_numbers = #tpu.dot_dimension_numbers<[1], [0], [0], [1], [0, 0, 1, 1], [], []>} : vector<16x8xf32>, vector<8x32xf32>, vector<16x32xf32> -> vector<16x32xf32>
    %313 = arith.addf %288, %312 : vector<16x32xf32>
    %314 = vector.extract_strided_slice %283 {offsets = [0, 0, 8], sizes = [2, 8, 8], strides = [1, 1, 1]} : vector<2x8x32xf32> to vector<2x8x8xf32>
    %315 = vector.extract_strided_slice %284 {offsets = [0, 0, 8], sizes = [2, 8, 8], strides = [1, 1, 1]} : vector<2x8x32xf32> to vector<2x8x8xf32>
    %316 = vector.extract_strided_slice %285 {offsets = [0, 0, 8], sizes = [2, 8, 8], strides = [1, 1, 1]} : vector<2x8x32xf32> to vector<2x8x8xf32>
    "tpu.trace_start"() <{level = 10 : i32, message = "bsd,btd->bst"}> : () -> ()
    %cst_144 = arith.constant dense<0.000000e+00> : vector<2x8x8xf32>
    %317 = tpu.matmul %314, %315, %cst_144 {dimension_numbers = #tpu.dot_dimension_numbers<[2], [2], [1], [1], [0, 0, 0, 1, 1, 1], [0], [0]>} : vector<2x8x8xf32>, vector<2x8x8xf32>, vector<2x8x8xf32> -> vector<2x8x8xf32>
    "tpu.trace_stop"() : () -> ()
    %cst_145 = arith.constant 0.353553385 : f32
    %318 = vector.broadcast %cst_145 : f32 to vector<2x8x8xf32>
    %319 = arith.mulf %317, %318 : vector<2x8x8xf32>
    %cst_146 = arith.constant -1.000000e+04 : f32
    %320 = vector.shape_cast %20 : vector<1x8x8xi1> to vector<1x8x8xi1>
    %321 = vector.broadcast %320 : vector<1x8x8xi1> to vector<2x8x8xi1>
    %322 = vector.broadcast %cst_146 : f32 to vector<2x8x8xf32>
    %323 = arith.select %321, %319, %322 : vector<2x8x8xi1>, vector<2x8x8xf32>
    %cst_147 = arith.constant dense<0xFF800000> : vector<2x8xf32>
    %324 = vector.multi_reduction <maximumf>, %323, %cst_147 [2] : vector<2x8x8xf32> to vector<2x8xf32>
    %325 = vector.shape_cast %324 : vector<2x8xf32> to vector<2x8x1xf32>
    %326 = vector.broadcast %325 : vector<2x8x1xf32> to vector<2x8x8xf32>
    %327 = arith.subf %323, %326 : vector<2x8x8xf32>
    %328 = math.exp %327 : vector<2x8x8xf32>
    %cst_148 = arith.constant dense<0.000000e+00> : vector<2x8xf32>
    %329 = vector.multi_reduction <add>, %328, %cst_148 [2] : vector<2x8x8xf32> to vector<2x8xf32>
    %330 = vector.shape_cast %329 : vector<2x8xf32> to vector<2x8x1xf32>
    %331 = tpu.reciprocal %330 {approx = true} : vector<2x8x1xf32> -> vector<2x8x1xf32>
    %332 = vector.broadcast %331 : vector<2x8x1xf32> to vector<2x8x8xf32>
    %333 = arith.mulf %328, %332 : vector<2x8x8xf32>
    "tpu.trace_start"() <{level = 10 : i32, message = "bst,btd->bsd"}> : () -> ()
    %cst_149 = arith.constant dense<0.000000e+00> : vector<2x8x8xf32>
    %334 = tpu.matmul %333, %316, %cst_149 {dimension_numbers = #tpu.dot_dimension_numbers<[2], [1], [1], [2], [0, 0, 0, 1, 1, 2], [0], [0]>} : vector<2x8x8xf32>, vector<2x8x8xf32>, vector<2x8x8xf32> -> vector<2x8x8xf32>
    "tpu.trace_stop"() : () -> ()
    %335 = vector.shape_cast %334 : vector<2x8x8xf32> to vector<16x8xf32>
    %336 = vector.extract_strided_slice %287 {offsets = [8, 0], sizes = [8, 32], strides = [1, 1]} : vector<32x32xf32> to vector<8x32xf32>
    %cst_150 = arith.constant dense<0.000000e+00> : vector<16x32xf32>
    %337 = tpu.matmul %335, %336, %cst_150 {dimension_numbers = #tpu.dot_dimension_numbers<[1], [0], [0], [1], [0, 0, 1, 1], [], []>} : vector<16x8xf32>, vector<8x32xf32>, vector<16x32xf32> -> vector<16x32xf32>
    %338 = arith.addf %313, %337 : vector<16x32xf32>
    %339 = vector.extract_strided_slice %283 {offsets = [0, 0, 16], sizes = [2, 8, 8], strides = [1, 1, 1]} : vector<2x8x32xf32> to vector<2x8x8xf32>
    %340 = vector.extract_strided_slice %284 {offsets = [0, 0, 16], sizes = [2, 8, 8], strides = [1, 1, 1]} : vector<2x8x32xf32> to vector<2x8x8xf32>
    %341 = vector.extract_strided_slice %285 {offsets = [0, 0, 16], sizes = [2, 8, 8], strides = [1, 1, 1]} : vector<2x8x32xf32> to vector<2x8x8xf32>
    "tpu.trace_start"() <{level = 10 : i32, message = "bsd,btd->bst"}> : () -> ()
    %cst_151 = arith.constant dense<0.000000e+00> : vector<2x8x8xf32>
    %342 = tpu.matmul %339, %340, %cst_151 {dimension_numbers = #tpu.dot_dimension_numbers<[2], [2], [1], [1], [0, 0, 0, 1, 1, 1], [0], [0]>} : vector<2x8x8xf32>, vector<2x8x8xf32>, vector<2x8x8xf32> -> vector<2x8x8xf32>
    "tpu.trace_stop"() : () -> ()
    %cst_152 = arith.constant 0.353553385 : f32
    %343 = vector.broadcast %cst_152 : f32 to vector<2x8x8xf32>
    %344 = arith.mulf %342, %343 : vector<2x8x8xf32>
    %cst_153 = arith.constant -1.000000e+04 : f32
    %345 = vector.shape_cast %20 : vector<1x8x8xi1> to vector<1x8x8xi1>
    %346 = vector.broadcast %345 : vector<1x8x8xi1> to vector<2x8x8xi1>
    %347 = vector.broadcast %cst_153 : f32 to vector<2x8x8xf32>
    %348 = arith.select %346, %344, %347 : vector<2x8x8xi1>, vector<2x8x8xf32>
    %cst_154 = arith.constant dense<0xFF800000> : vector<2x8xf32>
    %349 = vector.multi_reduction <maximumf>, %348, %cst_154 [2] : vector<2x8x8xf32> to vector<2x8xf32>
    %350 = vector.shape_cast %349 : vector<2x8xf32> to vector<2x8x1xf32>
    %351 = vector.broadcast %350 : vector<2x8x1xf32> to vector<2x8x8xf32>
    %352 = arith.subf %348, %351 : vector<2x8x8xf32>
    %353 = math.exp %352 : vector<2x8x8xf32>
    %cst_155 = arith.constant dense<0.000000e+00> : vector<2x8xf32>
    %354 = vector.multi_reduction <add>, %353, %cst_155 [2] : vector<2x8x8xf32> to vector<2x8xf32>
    %355 = vector.shape_cast %354 : vector<2x8xf32> to vector<2x8x1xf32>
    %356 = tpu.reciprocal %355 {approx = true} : vector<2x8x1xf32> -> vector<2x8x1xf32>
    %357 = vector.broadcast %356 : vector<2x8x1xf32> to vector<2x8x8xf32>
    %358 = arith.mulf %353, %357 : vector<2x8x8xf32>
    "tpu.trace_start"() <{level = 10 : i32, message = "bst,btd->bsd"}> : () -> ()
    %cst_156 = arith.constant dense<0.000000e+00> : vector<2x8x8xf32>
    %359 = tpu.matmul %358, %341, %cst_156 {dimension_numbers = #tpu.dot_dimension_numbers<[2], [1], [1], [2], [0, 0, 0, 1, 1, 2], [0], [0]>} : vector<2x8x8xf32>, vector<2x8x8xf32>, vector<2x8x8xf32> -> vector<2x8x8xf32>
    "tpu.trace_stop"() : () -> ()
    %360 = vector.shape_cast %359 : vector<2x8x8xf32> to vector<16x8xf32>
    %361 = vector.extract_strided_slice %287 {offsets = [16, 0], sizes = [8, 32], strides = [1, 1]} : vector<32x32xf32> to vector<8x32xf32>
    %cst_157 = arith.constant dense<0.000000e+00> : vector<16x32xf32>
    %362 = tpu.matmul %360, %361, %cst_157 {dimension_numbers = #tpu.dot_dimension_numbers<[1], [0], [0], [1], [0, 0, 1, 1], [], []>} : vector<16x8xf32>, vector<8x32xf32>, vector<16x32xf32> -> vector<16x32xf32>
    %363 = arith.addf %338, %362 : vector<16x32xf32>
    %364 = vector.extract_strided_slice %283 {offsets = [0, 0, 24], sizes = [2, 8, 8], strides = [1, 1, 1]} : vector<2x8x32xf32> to vector<2x8x8xf32>
    %365 = vector.extract_strided_slice %284 {offsets = [0, 0, 24], sizes = [2, 8, 8], strides = [1, 1, 1]} : vector<2x8x32xf32> to vector<2x8x8xf32>
    %366 = vector.extract_strided_slice %285 {offsets = [0, 0, 24], sizes = [2, 8, 8], strides = [1, 1, 1]} : vector<2x8x32xf32> to vector<2x8x8xf32>
    "tpu.trace_start"() <{level = 10 : i32, message = "bsd,btd->bst"}> : () -> ()
    %cst_158 = arith.constant dense<0.000000e+00> : vector<2x8x8xf32>
    %367 = tpu.matmul %364, %365, %cst_158 {dimension_numbers = #tpu.dot_dimension_numbers<[2], [2], [1], [1], [0, 0, 0, 1, 1, 1], [0], [0]>} : vector<2x8x8xf32>, vector<2x8x8xf32>, vector<2x8x8xf32> -> vector<2x8x8xf32>
    "tpu.trace_stop"() : () -> ()
    %cst_159 = arith.constant 0.353553385 : f32
    %368 = vector.broadcast %cst_159 : f32 to vector<2x8x8xf32>
    %369 = arith.mulf %367, %368 : vector<2x8x8xf32>
    %cst_160 = arith.constant -1.000000e+04 : f32
    %370 = vector.shape_cast %20 : vector<1x8x8xi1> to vector<1x8x8xi1>
    %371 = vector.broadcast %370 : vector<1x8x8xi1> to vector<2x8x8xi1>
    %372 = vector.broadcast %cst_160 : f32 to vector<2x8x8xf32>
    %373 = arith.select %371, %369, %372 : vector<2x8x8xi1>, vector<2x8x8xf32>
    %cst_161 = arith.constant dense<0xFF800000> : vector<2x8xf32>
    %374 = vector.multi_reduction <maximumf>, %373, %cst_161 [2] : vector<2x8x8xf32> to vector<2x8xf32>
    %375 = vector.shape_cast %374 : vector<2x8xf32> to vector<2x8x1xf32>
    %376 = vector.broadcast %375 : vector<2x8x1xf32> to vector<2x8x8xf32>
    %377 = arith.subf %373, %376 : vector<2x8x8xf32>
    %378 = math.exp %377 : vector<2x8x8xf32>
    %cst_162 = arith.constant dense<0.000000e+00> : vector<2x8xf32>
    %379 = vector.multi_reduction <add>, %378, %cst_162 [2] : vector<2x8x8xf32> to vector<2x8xf32>
    %380 = vector.shape_cast %379 : vector<2x8xf32> to vector<2x8x1xf32>
    %381 = tpu.reciprocal %380 {approx = true} : vector<2x8x1xf32> -> vector<2x8x1xf32>
    %382 = vector.broadcast %381 : vector<2x8x1xf32> to vector<2x8x8xf32>
    %383 = arith.mulf %378, %382 : vector<2x8x8xf32>
    "tpu.trace_start"() <{level = 10 : i32, message = "bst,btd->bsd"}> : () -> ()
    %cst_163 = arith.constant dense<0.000000e+00> : vector<2x8x8xf32>
    %384 = tpu.matmul %383, %366, %cst_163 {dimension_numbers = #tpu.dot_dimension_numbers<[2], [1], [1], [2], [0, 0, 0, 1, 1, 2], [0], [0]>} : vector<2x8x8xf32>, vector<2x8x8xf32>, vector<2x8x8xf32> -> vector<2x8x8xf32>
    "tpu.trace_stop"() : () -> ()
    %385 = vector.shape_cast %384 : vector<2x8x8xf32> to vector<16x8xf32>
    %386 = vector.extract_strided_slice %287 {offsets = [24, 0], sizes = [8, 32], strides = [1, 1]} : vector<32x32xf32> to vector<8x32xf32>
    %cst_164 = arith.constant dense<0.000000e+00> : vector<16x32xf32>
    %387 = tpu.matmul %385, %386, %cst_164 {dimension_numbers = #tpu.dot_dimension_numbers<[1], [0], [0], [1], [0, 0, 1, 1], [], []>} : vector<16x8xf32>, vector<8x32xf32>, vector<16x32xf32> -> vector<16x32xf32>
    %388 = arith.addf %363, %387 : vector<16x32xf32>
    %389 = arith.addf %235, %388 : vector<16x32xf32>
    %c1_165 = arith.constant 1 : index
    %c0_166 = arith.constant 0 : index
    %c0_167 = arith.constant 0 : index
    %390 = vector.load %arg13[%c1_165, %c0_166, %c0_167] : memref<2x1x32xf32, #tpu.memory_space<vmem>>, vector<1x1x32xf32>
    %391 = vector.shape_cast %390 : vector<1x1x32xf32> to vector<1x32xf32>
    %392 = vector.broadcast %391 : vector<1x32xf32> to vector<16x32xf32>
    %393 = arith.addf %389, %392 : vector<16x32xf32>
    %c1_168 = arith.constant 1 : index
    %c0_169 = arith.constant 0 : index
    %c0_170 = arith.constant 0 : index
    %394 = vector.load %arg14[%c1_168, %c0_169, %c0_170] : memref<2x1x32xf32, #tpu.memory_space<vmem>>, vector<1x1x32xf32>
    %395 = vector.shape_cast %394 : vector<1x1x32xf32> to vector<1x32xf32>
    %c1_171 = arith.constant 1 : index
    %c0_172 = arith.constant 0 : index
    %c0_173 = arith.constant 0 : index
    %396 = vector.load %arg15[%c1_171, %c0_172, %c0_173] : memref<2x1x32xf32, #tpu.memory_space<vmem>>, vector<1x1x32xf32>
    %397 = vector.shape_cast %396 : vector<1x1x32xf32> to vector<1x32xf32>
    %cst_174 = arith.constant dense<0.000000e+00> : vector<16xf32>
    %398 = vector.multi_reduction <add>, %393, %cst_174 [1] : vector<16x32xf32> to vector<16xf32>
    %399 = vector.shape_cast %398 : vector<16xf32> to vector<16x1xf32>
    %cst_175 = arith.constant 3.200000e+01 : f32
    %400 = vector.broadcast %cst_175 : f32 to vector<16x1xf32>
    %401 = arith.divf %399, %400 : vector<16x1xf32>
    %402 = vector.broadcast %401 : vector<16x1xf32> to vector<16x32xf32>
    %403 = arith.subf %393, %402 : vector<16x32xf32>
    %404 = arith.mulf %403, %403 : vector<16x32xf32>
    %cst_176 = arith.constant dense<0.000000e+00> : vector<16xf32>
    %405 = vector.multi_reduction <add>, %404, %cst_176 [1] : vector<16x32xf32> to vector<16xf32>
    %406 = vector.shape_cast %405 : vector<16xf32> to vector<16x1xf32>
    %cst_177 = arith.constant 3.200000e+01 : f32
    %407 = vector.broadcast %cst_177 : f32 to vector<16x1xf32>
    %408 = arith.divf %406, %407 : vector<16x1xf32>
    %409 = vector.broadcast %401 : vector<16x1xf32> to vector<16x32xf32>
    %410 = arith.subf %393, %409 : vector<16x32xf32>
    %cst_178 = arith.constant 9.99999974E-6 : f32
    %411 = vector.broadcast %cst_178 : f32 to vector<16x1xf32>
    %412 = arith.addf %408, %411 : vector<16x1xf32>
    %413 = math.rsqrt %412 : vector<16x1xf32>
    %414 = vector.broadcast %413 : vector<16x1xf32> to vector<16x32xf32>
    %415 = arith.mulf %410, %414 : vector<16x32xf32>
    %416 = vector.broadcast %395 : vector<1x32xf32> to vector<16x32xf32>
    %417 = arith.mulf %415, %416 : vector<16x32xf32>
    %418 = vector.broadcast %397 : vector<1x32xf32> to vector<16x32xf32>
    %419 = arith.addf %417, %418 : vector<16x32xf32>
    %c1_179 = arith.constant 1 : index
    %c0_180 = arith.constant 0 : index
    %c0_181 = arith.constant 0 : index
    %420 = vector.load %arg16[%c1_179, %c0_180, %c0_181] : memref<2x32x32xf32, #tpu.memory_space<vmem>>, vector<1x32x32xf32>
    %421 = vector.shape_cast %420 : vector<1x32x32xf32> to vector<32x32xf32>
    %cst_182 = arith.constant dense<0.000000e+00> : vector<16x32xf32>
    %422 = tpu.matmul %419, %421, %cst_182 {dimension_numbers = #tpu.dot_dimension_numbers<[1], [0], [0], [1], [0, 0, 1, 1], [], []>} : vector<16x32xf32>, vector<32x32xf32>, vector<16x32xf32> -> vector<16x32xf32>
    %c1_183 = arith.constant 1 : index
    %c0_184 = arith.constant 0 : index
    %c0_185 = arith.constant 0 : index
    %423 = vector.load %arg17[%c1_183, %c0_184, %c0_185] : memref<2x1x32xf32, #tpu.memory_space<vmem>>, vector<1x1x32xf32>
    %424 = vector.shape_cast %423 : vector<1x1x32xf32> to vector<1x32xf32>
    %425 = vector.broadcast %424 : vector<1x32xf32> to vector<16x32xf32>
    %426 = arith.addf %422, %425 : vector<16x32xf32>
    %cst_186 = arith.constant 0.000000e+00 : f32
    %427 = vector.broadcast %cst_186 : f32 to vector<16x32xf32>
    %428 = arith.maximumf %426, %427 : vector<16x32xf32>
    %429 = vector.broadcast %cst_186 : f32 to vector<16x32xf32>
    %430 = arith.subf %426, %429 : vector<16x32xf32>
    %431 = arith.cmpf one, %430, %430 : vector<16x32xf32>
    %432 = vector.broadcast %cst_186 : f32 to vector<16x32xf32>
    %433 = arith.addf %426, %432 : vector<16x32xf32>
    %434 = math.absf %430 : vector<16x32xf32>
    %cst_187 = arith.constant 0.000000e+00 : f32
    %435 = vector.broadcast %cst_187 : f32 to vector<16x32xf32>
    %436 = arith.subf %435, %434 : vector<16x32xf32>
    %437 = math.exp %436 : vector<16x32xf32>
    %438 = math.log1p %437 : vector<16x32xf32>
    %439 = arith.addf %428, %438 : vector<16x32xf32>
    %440 = arith.select %431, %433, %439 : vector<16x32xi1>, vector<16x32xf32>
    %441 = math.tanh %440 : vector<16x32xf32>
    %442 = arith.mulf %426, %441 : vector<16x32xf32>
    %c1_188 = arith.constant 1 : index
    %c0_189 = arith.constant 0 : index
    %c0_190 = arith.constant 0 : index
    %443 = vector.load %arg18[%c1_188, %c0_189, %c0_190] : memref<2x32x32xf32, #tpu.memory_space<vmem>>, vector<1x32x32xf32>
    %444 = vector.shape_cast %443 : vector<1x32x32xf32> to vector<32x32xf32>
    %cst_191 = arith.constant dense<0.000000e+00> : vector<16x32xf32>
    %445 = tpu.matmul %442, %444, %cst_191 {dimension_numbers = #tpu.dot_dimension_numbers<[1], [0], [0], [1], [0, 0, 1, 1], [], []>} : vector<16x32xf32>, vector<32x32xf32>, vector<16x32xf32> -> vector<16x32xf32>
    %c1_192 = arith.constant 1 : index
    %c0_193 = arith.constant 0 : index
    %c0_194 = arith.constant 0 : index
    %446 = vector.load %arg19[%c1_192, %c0_193, %c0_194] : memref<2x1x32xf32, #tpu.memory_space<vmem>>, vector<1x1x32xf32>
    %447 = vector.shape_cast %446 : vector<1x1x32xf32> to vector<1x32xf32>
    %448 = vector.broadcast %447 : vector<1x32xf32> to vector<16x32xf32>
    %449 = arith.addf %445, %448 : vector<16x32xf32>
    %450 = arith.addf %393, %449 : vector<16x32xf32>
    %c0_195 = arith.constant 0 : index
    %c0_196 = arith.constant 0 : index
    %451 = vector.load %arg20[%c0_195, %c0_196] : memref<1x32xf32, #tpu.memory_space<vmem>>, vector<1x32xf32>
    %c0_197 = arith.constant 0 : index
    %c0_198 = arith.constant 0 : index
    %452 = vector.load %arg21[%c0_197, %c0_198] : memref<1x32xf32, #tpu.memory_space<vmem>>, vector<1x32xf32>
    %cst_199 = arith.constant dense<0.000000e+00> : vector<16xf32>
    %453 = vector.multi_reduction <add>, %450, %cst_199 [1] : vector<16x32xf32> to vector<16xf32>
    %454 = vector.shape_cast %453 : vector<16xf32> to vector<16x1xf32>
    %cst_200 = arith.constant 3.200000e+01 : f32
    %455 = vector.broadcast %cst_200 : f32 to vector<16x1xf32>
    %456 = arith.divf %454, %455 : vector<16x1xf32>
    %457 = vector.broadcast %456 : vector<16x1xf32> to vector<16x32xf32>
    %458 = arith.subf %450, %457 : vector<16x32xf32>
    %459 = arith.mulf %458, %458 : vector<16x32xf32>
    %cst_201 = arith.constant dense<0.000000e+00> : vector<16xf32>
    %460 = vector.multi_reduction <add>, %459, %cst_201 [1] : vector<16x32xf32> to vector<16xf32>
    %461 = vector.shape_cast %460 : vector<16xf32> to vector<16x1xf32>
    %cst_202 = arith.constant 3.200000e+01 : f32
    %462 = vector.broadcast %cst_202 : f32 to vector<16x1xf32>
    %463 = arith.divf %461, %462 : vector<16x1xf32>
    %464 = vector.broadcast %456 : vector<16x1xf32> to vector<16x32xf32>
    %465 = arith.subf %450, %464 : vector<16x32xf32>
    %cst_203 = arith.constant 9.99999974E-6 : f32
    %466 = vector.broadcast %cst_203 : f32 to vector<16x1xf32>
    %467 = arith.addf %463, %466 : vector<16x1xf32>
    %468 = math.rsqrt %467 : vector<16x1xf32>
    %469 = vector.broadcast %468 : vector<16x1xf32> to vector<16x32xf32>
    %470 = arith.mulf %465, %469 : vector<16x32xf32>
    %471 = vector.broadcast %451 : vector<1x32xf32> to vector<16x32xf32>
    %472 = arith.mulf %470, %471 : vector<16x32xf32>
    %473 = vector.broadcast %452 : vector<1x32xf32> to vector<16x32xf32>
    %474 = arith.addf %472, %473 : vector<16x32xf32>
    %c0_204 = arith.constant 0 : index
    %c0_205 = arith.constant 0 : index
    %475 = vector.load %arg22[%c0_204, %c0_205] : memref<32x128xf32, #tpu.memory_space<vmem>>, vector<32x128xf32>
    %cst_206 = arith.constant dense<0.000000e+00> : vector<16x128xf32>
    %476 = tpu.matmul %474, %475, %cst_206 {dimension_numbers = #tpu.dot_dimension_numbers<[1], [0], [0], [1], [0, 0, 1, 1], [], []>} : vector<16x32xf32>, vector<32x128xf32>, vector<16x128xf32> -> vector<16x128xf32>
    %c0_207 = arith.constant 0 : index
    %c0_208 = arith.constant 0 : index
    %477 = vector.load %arg23[%c0_207, %c0_208] : memref<16x128xf32, #tpu.memory_space<vmem>>, vector<16x128xf32>
    tpu.vector_store %arg23[%c0_207, %c0_208], %476 {strides = array<i32>} : memref<16x128xf32, #tpu.memory_space<vmem>>, vector<16x128xf32>,
    return
  }
}

</mosaic_0001>

<bundles_post_ra>
// kernel: generative_transformer_forward.1
= control target key start
LH: loop header
LB: loop body
LE: loop exit
PB: predicated region body
PF: predicated region fallthrough
CT: control target
= control target key end

     0   :  { %s7100_s0 = inlined_call_operand.vmem [shape: s32[16,1], index: 0, kind: input, shape index: {}]   ;;  %s7101_s1 = inlined_call_operand.vmem [shape: s32[16,1], index: 1, kind: input, shape index: {}]   ;;  %s7102_s2 = inlined_call_operand.vmem [shape: f32[64,32], index: 2, kind: input, shape index: {}]   ;;  %s7103_s3 = inlined_call_operand.hbm [shape: f32[16,32], index: 3, kind: input, shape index: {}]   ;;  %s7104_s4 = inlined_call_operand.hbm [shape: f32[2,1,32], index: 4, kind: input, shape index: {}]   ;;  %s7105_s5 = inlined_call_operand.hbm [shape: f32[2,1,32], index: 5, kind: input, shape index: {}]   ;;  %s7106_s6 = inlined_call_operand.vmem [shape: f32[2,32,32], index: 6, kind: input, shape index: {}]   ;;  %s7107_s7 = inlined_call_operand.hbm [shape: f32[2,1,32], index: 7, kind: input, shape index: {}]   ;;  %s7108_s8 = inlined_call_operand.vmem [shape: f32[2,32,32], index: 8, kind: input, shape index: {}]   ;;  %s7109_s9 = inlined_call_operand.hbm [shape: f32[2,1,32], index: 9, kind: input, shape index: {}]   ;;  %s7110_s10 = inlined_call_operand.hbm [shape: f32[2,32,32], index: 10, kind: input, shape index: {}]   ;;  %s7111_s11 = inlined_call_operand.hbm [shape: f32[2,1,32], index: 11, kind: input, shape index: {}]   ;;  %s7112_s12 = inlined_call_operand.hbm [shape: f32[2,32,32], index: 12, kind: input, shape index: {}]   ;;  %s7113_s13 = inlined_call_operand.hbm [shape: f32[2,1,32], index: 13, kind: input, shape index: {}]   ;;  %s7114_s14 = inlined_call_operand.hbm [shape: f32[2,1,32], index: 14, kind: input, shape index: {}]   ;;  %s7115_s15 = inlined_call_operand.hbm [shape: f32[2,1,32], index: 15, kind: input, shape index: {}]   ;;  %s7116_s16 = inlined_call_operand.hbm [shape: f32[2,32,32], index: 16, kind: input, shape index: {}]   ;;  %s7117_s17 = inlined_call_operand.hbm [shape: f32[2,1,32], index: 17, kind: input, shape index: {}]   ;;  %s7118_s18 = inlined_call_operand.hbm [shape: f32[2,32,32], index: 18, kind: input, shape index: {}]   ;;  %s7119_s19 = inlined_call_operand.hbm [shape: f32[2,1,32], index: 19, kind: input, shape index: {}]   ;;  %s7120_s20 = inlined_call_operand.vmem [shape: f32[1,32], index: 20, kind: input, shape index: {}]   ;;  %s7121_s21 = inlined_call_operand.hbm [shape: f32[1,32], index: 21, kind: input, shape index: {}]   ;;  %s7122_s22 = inlined_call_operand.hbm [shape: f32[32,128], index: 22, kind: input, shape index: {}]   ;;  %s7123_s23 = inlined_call_operand.vmem [shape: f32[16,128], index: 23, kind: output, shape index: {}]  }
   0x1   :  { %7128 = sst [smem:[#allocation37_spill]] %s7100_s0 }
   0x2   :  { %7129 = sst [smem:[#allocation38_spill]] %s7101_s1 }
   0x3   :  { %7130 = sst [smem:[#allocation39_spill]] %s7102_s2 }
   0x4   :  { %7131 = sst [smem:[#allocation40_spill]] %s7103_s3 }
   0x5   :  { %7132 = sst [smem:[#allocation41_spill]] %s7104_s4 }
   0x6   :  { %7133 = sst [smem:[#allocation42_spill]] %s7105_s5 }
   0x7   :  { %7134 = sst [smem:[#allocation43_spill]] %s7106_s6 }
   0x8   :  { %7135 = sst [smem:[#allocation44_spill]] %s7107_s7 }
   0x9   :  { %28 = vsyncpa [#allocation3], 0 }
   0xa   :  { %29 = vsyncpa [#allocation5], 0 }
   0xb   :  { %30 = vsyncpa [#allocation8], 0 }
   0xc   :  { %31 = vsyncpa [#allocation11], 0 }
   0xd   :  { %32 = vsyncpa [#allocation14], 0 }
   0xe   :  { %33 = vsyncpa [#allocation17], 0 }
   0xf   :  { %34 = vsyncpa [#allocation20], 0 }
  0x10   :  { %35 = vsyncpa [#allocation23], 0 }
  0x11   :  { %36 = vsyncpa [#allocation26], 0  ;;  %s6306_s4 = smov [#allocation4]  }
  0x12   :  { %s60_s30 = sshll.u32 %s6306_s4, 4  ;;  %s61_s30 = int_to_ptr.vmem [resolvable:$true] %s60_s30 }
  0x13   :  { %s5956_s24 = scalar_lea.vmem %s61_s30, 32  ;;  %p5961_p1 = scmp.lt.s32.totalorder %s61_s30, %s61_s30 }
  0x14   :  { %p5957_p0 = scmp.ne.s32.totalorder %s61_s30, %s5956_s24  ;;  %p5962_p2 = scmp.lt.s32.totalorder %s5956_s24, %s5956_s24 }
  0x16   :  { %p5963_p3 = por %p5962_p2, %p5961_p1 }
  0x18   :  { %p5964_p4 = pnand %p5963_p3, %p5957_p0 }
  0x1a   :  { %5967 = shalt.err (!%p5964_p4)
}
  0x1b   :  { %s6307_s25 = smov 16   ;;  %s6308_s5 = smov 1  }
  0x1c   :  { %s7136_s2 = sld [smem:[#allocation41_spill]]  ;;  %s6309_s6 = smov [#allocation7]  }
  0x1d   :  { %s86_s27 = sshll.u32 %s6309_s6, 4  ;;  %s87_s27 = int_to_ptr.vmem [resolvable:$true] %s86_s27 }
  0x1e   :  { %s5976_s7 = scalar_lea.vmem %s87_s27, 32  ;;  %p5981_p6 = scmp.lt.s32.totalorder %s87_s27, %s87_s27 }
  0x1f   :  { %p5977_p5 = scmp.ne.s32.totalorder %s87_s27, %s5976_s7  ;;  %p5982_p7 = scmp.lt.s32.totalorder %s5976_s7, %s5976_s7 }
  0x21   :  { %p5983_p8 = por %p5982_p7, %p5981_p6 }
  0x22   :  { %66 = dma.hbm_to_vmem [thread:$0]  %s7136_s2, 32, %s61_s30, [#allocation5], %s6307_s25, %s6307_s25, %s6308_s5  }
  0x23   :  { %p5984_p9 = pnand %p5983_p8, %p5977_p5 }
  0x25   :  { %5987 = shalt.err (!%p5984_p9)
}
  0x26   :  { %s7137_s3 = sld [smem:[#allocation44_spill]]  ;;  %s6310_s0 = smov [#allocation10]  }
  0x27   :  { %s112_s4 = sshll.u32 %s6310_s0, 4  ;;  %s6311_s30 = smov [#allocation13]   ;;  %s113_s4 = int_to_ptr.vmem [resolvable:$true] %s112_s4 }
  0x28   :  { %s136_s24 = sshll.u32 %s6311_s30, 4  ;;  %s5996_s1 = scalar_lea.vmem %s113_s4, 1024  ;;  %s137_s24 = int_to_ptr.vmem [resolvable:$true] %s136_s24 }
  0x29   :  { %p5997_p10 = scmp.ne.s32.totalorder %s113_s4, %s5996_s1  ;;  %p6001_p11 = scmp.lt.s32.totalorder %s113_s4, %s113_s4 }
  0x2a   :  { %p6002_p12 = scmp.lt.s32.totalorder %s5996_s1, %s5996_s1 }
  0x2c   :  { %92 = dma.hbm_to_vmem [thread:$0]  %s7137_s3, 32, %s87_s27, [#allocation8], %s6307_s25, %s6307_s25, %s6308_s5  }
  0x2d   :  { %p6003_p13 = por %p6002_p12, %p6001_p11 }
  0x2f   :  { %p6004_p0 = pnand %p6003_p13, %p5997_p10 }
  0x31   :  { %6007 = shalt.err (!%p6004_p0)
}
  0x32   :  { %s6312_s26 = smov 128   ;;  %s6313_s2 = smov 8  }
  0x33   :  { %118 = dma.hbm_to_vmem [thread:$0]  %s7110_s10, 1024, %s113_s4, [#allocation11], %s6312_s26, %s6312_s26, %s6313_s2  }
  0x34   :  { %s6016_s7 = scalar_lea.vmem %s137_s24, 1024  ;;  %p6021_p2 = scmp.lt.s32.totalorder %s137_s24, %s137_s24 }
  0x35   :  { %p6017_p1 = scmp.ne.s32.totalorder %s137_s24, %s6016_s7  ;;  %p6022_p3 = scmp.lt.s32.totalorder %s6016_s7, %s6016_s7 }
  0x37   :  { %p6023_p4 = por %p6022_p3, %p6021_p2 }
  0x39   :  { %p6024_p5 = pnand %p6023_p4, %p6017_p1 }
  0x3b   :  { %6027 = shalt.err (!%p6024_p5)
}
  0x3c   :  { %142 = dma.hbm_to_vmem [thread:$0]  %s7112_s12, 1024, %s137_s24, [#allocation14], %s6312_s26, %s6312_s26, %s6313_s2  }
  0x3d   :  { %s6314_s3 = smov [#allocation16]   ;;  %s6315_s30 = smov [#allocation19]  }
  0x3e   :  { %s160_s0 = sshll.u32 %s6314_s3, 4  ;;  %s184_s1 = sshll.u32 %s6315_s30, 4  ;;  %s161_s0 = int_to_ptr.vmem [resolvable:$true] %s160_s0  ;;  %s185_s1 = int_to_ptr.vmem [resolvable:$true] %s184_s1 }
  0x3f   :  { %s6036_s10 = scalar_lea.vmem %s161_s0, 32  ;;  %p6041_p7 = scmp.lt.s32.totalorder %s161_s0, %s161_s0 }
  0x40   :  { %p6037_p6 = scmp.ne.s32.totalorder %s161_s0, %s6036_s10  ;;  %p6042_p8 = scmp.lt.s32.totalorder %s6036_s10, %s6036_s10 }
  0x42   :  { %p6043_p9 = por %p6042_p8, %p6041_p7 }
  0x44   :  { %p6044_p10 = pnand %p6043_p9, %p6037_p6 }
  0x46   :  { %6047 = shalt.err (!%p6044_p10)
}
  0x47   :  { %166 = dma.hbm_to_vmem [thread:$0]  %s7114_s14, 32, %s161_s0, [#allocation17], %s6307_s25, %s6307_s25, %s6308_s5  }
  0x48   :  { %s6056_s12 = scalar_lea.vmem %s185_s1, 1024  ;;  %p6061_p12 = scmp.lt.s32.totalorder %s185_s1, %s185_s1 }
  0x49   :  { %p6057_p11 = scmp.ne.s32.totalorder %s185_s1, %s6056_s12  ;;  %p6062_p13 = scmp.lt.s32.totalorder %s6056_s12, %s6056_s12 }
  0x4b   :  { %p6063_p0 = por %p6062_p13, %p6061_p12 }
  0x4d   :  { %p6064_p1 = pnand %p6063_p0, %p6057_p11 }
  0x4f   :  { %6067 = shalt.err (!%p6064_p1)
}
  0x50   :  { %190 = dma.hbm_to_vmem [thread:$0]  %s7116_s16, 1024, %s185_s1, [#allocation20], %s6312_s26, %s6312_s26, %s6313_s2  }
  0x51   :  { %s6316_s7 = smov [#allocation22]   ;;  %s6317_s29 = smov [#allocation25]  }
  0x52   :  { %s208_s28 = sshll.u32 %s6316_s7, 4  ;;  %s235_s3 = sshll.u32 %s6317_s29, 4  ;;  %s209_s28 = int_to_ptr.vmem [resolvable:$true] %s208_s28  ;;  %s236_s3 = int_to_ptr.vmem [resolvable:$true] %s235_s3 }
  0x53   :  { %s6076_s14 = scalar_lea.vmem %s209_s28, 1024  ;;  %p6081_p3 = scmp.lt.s32.totalorder %s209_s28, %s209_s28 }
  0x54   :  { %p6077_p2 = scmp.ne.s32.totalorder %s209_s28, %s6076_s14  ;;  %p6082_p4 = scmp.lt.s32.totalorder %s6076_s14, %s6076_s14 }
  0x56   :  { %p6083_p5 = por %p6082_p4, %p6081_p3 }
  0x58   :  { %p6084_p6 = pnand %p6083_p5, %p6077_p2 }
  0x5a   :  { %6087 = shalt.err (!%p6084_p6)
}
  0x5b   :  { %214 = dma.hbm_to_vmem [thread:$0]  %s7118_s18, 1024, %s209_s28, [#allocation23], %s6312_s26, %s6312_s26, %s6313_s2  }
  0x5c   :  { %s6096_s16 = scalar_lea.vmem %s236_s3, 16  ;;  %s6100_s1 = scalar_lea.vmem %s236_s3, 32 }
  0x5d   :  { %p6097_p7 = scmp.ne.s32.totalorder %s236_s3, %s6096_s16  ;;  %p6101_p8 = scmp.lt.s32.totalorder %s236_s3, %s236_s3 }
  0x5e   :  { %p6102_p9 = scmp.lt.s32.totalorder %s6100_s1, %s6096_s16 }
  0x60   :  { %p6103_p10 = por %p6102_p9, %p6101_p8 }
  0x62   :  { %p6104_p11 = pnand %p6103_p10, %p6097_p7 }
  0x64   :  { %6107 = shalt.err (!%p6104_p11)
}
  0x65   :  { %238 = dma.hbm_to_vmem [thread:$0]  %s7121_s21, 16, %s236_s3, [#allocation26]  }
  0x66   :  { %s6318_s6 = smov [#allocation2]   ;;  %s6319_s24 = smov [#allocation6]  }
  0x67   :  { %s48_s12 = sshll.u32 %s6318_s6, 4  ;;  %s72_s27 = sshll.u32 %s6319_s24, 4  ;;  %s49_s12 = int_to_ptr.vmem [resolvable:$true] %s48_s12  ;;  %s73_s27 = int_to_ptr.vmem [resolvable:$true] %s72_s27 }
  0x68   :  { %s6116_s7 = scalar_lea.vmem %s49_s12, 256  ;;  %p6121_p13 = scmp.lt.s32.totalorder %s49_s12, %s49_s12 }
  0x69   :  { %p6117_p12 = scmp.ne.s32.totalorder %s49_s12, %s6116_s7  ;;  %p6122_p0 = scmp.lt.s32.totalorder %s6116_s7, %s6116_s7 }
  0x6b   :  { %p6123_p1 = por %p6122_p0, %p6121_p13 }
  0x6d   :  { %p6124_p2 = pnand %p6123_p1, %p6117_p12 }
  0x6f   :  { %6127 = shalt.err (!%p6124_p2)
}
  0x70   :  { %s7138_s29 = sld [smem:[#allocation40_spill]]  ;;  %s6136_s21 = scalar_lea.vmem %s73_s27, 32 }
  0x71   :  { %p6137_p3 = scmp.ne.s32.totalorder %s73_s27, %s6136_s21  ;;  %p6141_p4 = scmp.lt.s32.totalorder %s73_s27, %s73_s27 }
  0x72   :  { %p6142_p5 = scmp.lt.s32.totalorder %s6136_s21, %s6136_s21 }
  0x74   :  { %p6143_p6 = por %p6142_p5, %p6141_p4 }
  0x76   :  { %54 = dma.hbm_to_vmem [thread:$0]  %s7138_s29, 256, %s49_s12, [#allocation3], %s6312_s26, %s6312_s26, %s6313_s2  }
  0x77   :  { %p6144_p7 = pnand %p6143_p6, %p6137_p3 }
  0x79   :  { %6147 = shalt.err (!%p6144_p7)
}
  0x7a   :  { %s7139_s0 = sld [smem:[#allocation42_spill]]  ;;  %s6320_s30 = smov [#allocation9]  }
  0x7b   :  { %s100_s16 = sshll.u32 %s6320_s30, 4  ;;  %s6321_s1 = smov [#allocation12]   ;;  %s101_s16 = int_to_ptr.vmem [resolvable:$true] %s100_s16 }
  0x7c   :  { %s124_s10 = sshll.u32 %s6321_s1, 4  ;;  %s6156_s4 = scalar_lea.vmem %s101_s16, 32  ;;  %s125_s10 = int_to_ptr.vmem [resolvable:$true] %s124_s10 }
  0x7d   :  { %p6157_p8 = scmp.ne.s32.totalorder %s101_s16, %s6156_s4  ;;  %p6161_p9 = scmp.lt.s32.totalorder %s101_s16, %s101_s16 }
  0x7e   :  { %p6162_p10 = scmp.lt.s32.totalorder %s6156_s4, %s6156_s4 }
  0x80   :  { %78 = dma.hbm_to_vmem [thread:$0]  %s7139_s0, 32, %s73_s27, [#allocation5], %s6307_s25, %s6307_s25, %s6308_s5  }
  0x81   :  { %p6163_p11 = por %p6162_p10, %p6161_p9 }
  0x83   :  { %p6164_p12 = pnand %p6163_p11, %p6157_p8 }
  0x85   :  { %6167 = shalt.err (!%p6164_p12)
}
  0x86   :  { %106 = dma.hbm_to_vmem [thread:$0]  %s7109_s9, 32, %s101_s16, [#allocation8], %s6307_s25, %s6307_s25, %s6308_s5  }
  0x87   :  { %s6176_s24 = scalar_lea.vmem %s125_s10, 32  ;;  %p6181_p0 = scmp.lt.s32.totalorder %s125_s10, %s125_s10 }
  0x88   :  { %p6177_p13 = scmp.ne.s32.totalorder %s125_s10, %s6176_s24  ;;  %p6182_p1 = scmp.lt.s32.totalorder %s6176_s24, %s6176_s24 }
  0x8a   :  { %p6183_p2 = por %p6182_p1, %p6181_p0 }
  0x8c   :  { %p6184_p3 = pnand %p6183_p2, %p6177_p13 }
  0x8e   :  { %6187 = shalt.err (!%p6184_p3)
}
  0x8f   :  { %130 = dma.hbm_to_vmem [thread:$0]  %s7111_s11, 32, %s125_s10, [#allocation11], %s6307_s25, %s6307_s25, %s6308_s5  }
  0x90   :  { %s6322_s18 = smov [#allocation15]   ;;  %s6323_s29 = smov [#allocation18]  }
  0x91   :  { %s148_s28 = sshll.u32 %s6322_s18, 4  ;;  %s172_s21 = sshll.u32 %s6323_s29, 4  ;;  %s149_s28 = int_to_ptr.vmem [resolvable:$true] %s148_s28  ;;  %s173_s21 = int_to_ptr.vmem [resolvable:$true] %s172_s21 }
  0x92   :  { %s6196_s9 = scalar_lea.vmem %s149_s28, 32  ;;  %p6201_p5 = scmp.lt.s32.totalorder %s149_s28, %s149_s28 }
  0x93   :  { %p6197_p4 = scmp.ne.s32.totalorder %s149_s28, %s6196_s9  ;;  %p6202_p6 = scmp.lt.s32.totalorder %s6196_s9, %s6196_s9 }
  0x95   :  { %p6203_p7 = por %p6202_p6, %p6201_p5 }
  0x97   :  { %p6204_p8 = pnand %p6203_p7, %p6197_p4 }
  0x99   :  { %6207 = shalt.err (!%p6204_p8)
}
  0x9a   :  { %154 = dma.hbm_to_vmem [thread:$0]  %s7113_s13, 32, %s149_s28, [#allocation14], %s6307_s25, %s6307_s25, %s6308_s5  }
  0x9b   :  { %s6216_s11 = scalar_lea.vmem %s173_s21, 32  ;;  %p6221_p10 = scmp.lt.s32.totalorder %s173_s21, %s173_s21 }
  0x9c   :  { %p6217_p9 = scmp.ne.s32.totalorder %s173_s21, %s6216_s11  ;;  %p6222_p11 = scmp.lt.s32.totalorder %s6216_s11, %s6216_s11 }
  0x9e   :  { %p6223_p12 = por %p6222_p11, %p6221_p10 }
  0xa0   :  { %p6224_p13 = pnand %p6223_p12, %p6217_p9 }
  0xa2   :  { %6227 = shalt.err (!%p6224_p13)
}
  0xa3   :  { %178 = dma.hbm_to_vmem [thread:$0]  %s7115_s15, 32, %s173_s21, [#allocation17], %s6307_s25, %s6307_s25, %s6308_s5  }
  0xa4   :  { %s6324_s16 = smov [#allocation21]   ;;  %s6325_s10 = smov [#allocation24]  }
  0xa5   :  { %s196_s1 = sshll.u32 %s6324_s16, 4  ;;  %s220_s4 = sshll.u32 %s6325_s10, 4  ;;  %s197_s1 = int_to_ptr.vmem [resolvable:$true] %s196_s1  ;;  %s221_s4 = int_to_ptr.vmem [resolvable:$true] %s220_s4 }
  0xa6   :  { %s6236_s13 = scalar_lea.vmem %s197_s1, 32  ;;  %p6241_p1 = scmp.lt.s32.totalorder %s197_s1, %s197_s1 }
  0xa7   :  { %p6237_p0 = scmp.ne.s32.totalorder %s197_s1, %s6236_s13  ;;  %p6242_p2 = scmp.lt.s32.totalorder %s6236_s13, %s6236_s13 }
  0xa9   :  { %p6243_p3 = por %p6242_p2, %p6241_p1 }
  0xab   :  { %p6244_p4 = pnand %p6243_p3, %p6237_p0 }
  0xad   :  { %6247 = shalt.err (!%p6244_p4)
}
  0xae   :  { %202 = dma.hbm_to_vmem [thread:$0]  %s7117_s17, 32, %s197_s1, [#allocation20], %s6307_s25, %s6307_s25, %s6308_s5  }
  0xaf   :  { %s6256_s15 = scalar_lea.vmem %s221_s4, 32  ;;  %p6261_p6 = scmp.lt.s32.totalorder %s221_s4, %s221_s4 }
  0xb0   :  { %p6257_p5 = scmp.ne.s32.totalorder %s221_s4, %s6256_s15  ;;  %p6262_p7 = scmp.lt.s32.totalorder %s6256_s15, %s6256_s15 }
  0xb2   :  { %p6263_p8 = por %p6262_p7, %p6261_p6 }
  0xb4   :  { %p6264_p9 = pnand %p6263_p8, %p6257_p5 }
  0xb6   :  { %6267 = shalt.err (!%p6264_p9)
}
  0xb7   :  { %226 = dma.hbm_to_vmem [thread:$0]  %s7119_s19, 32, %s221_s4, [#allocation23], %s6307_s25, %s6307_s25, %s6308_s5  }
  0xb8   :  { %s6326_s7 = smov [#allocation27]  }
  0xb9   :  { %s244_s18 = sshll.u32 %s6326_s7, 4  ;;  %s245_s18 = int_to_ptr.vmem [resolvable:$true] %s244_s18 }
  0xba   :  { %s6276_s28 = scalar_lea.vmem %s245_s18, 512  ;;  %p6281_p11 = scmp.lt.s32.totalorder %s245_s18, %s245_s18 }
  0xbb   :  { %p6277_p10 = scmp.ne.s32.totalorder %s245_s18, %s6276_s28  ;;  %p6282_p12 = scmp.lt.s32.totalorder %s6276_s28, %s6276_s28 }
  0xbd   :  { %p6283_p13 = por %p6282_p12, %p6281_p11 }
  0xbf   :  { %p6284_p0 = pnand %p6283_p13, %p6277_p10 }
  0xc1   :  { %6287 = shalt.err (!%p6284_p0)
}
  0xc2   :  { %250 = dma.hbm_to_vmem [thread:$0]  %s7122_s22, 512, %s245_s18, [#allocation26], %s6312_s26, %s6312_s26, %s6313_s2  }
  0xc3   :  { %6288 = dma.done.wait [#allocation3], 256  }
  0xc4   :  { %6289 = vsyncadd [#allocation3], 4294967040 }
  0xc5   :  { %6290 = dma.done.wait [#allocation5], 64  }
  0xc6   :  { %6291 = vsyncadd [#allocation5], 4294967232 }
  0xc7   :  { %6292 = dma.done.wait [#allocation8], 64  }
  0xc8   :  { %6293 = vsyncadd [#allocation8], 4294967232 }
  0xc9   :  { %6294 = dma.done.wait [#allocation11], 1056  }
  0xca   :  { %6295 = vsyncadd [#allocation11], 4294966240 }
  0xcb   :  { %6296 = dma.done.wait [#allocation14], 1056  }
  0xcc   :  { %6297 = vsyncadd [#allocation14], 4294966240 }
  0xcd   :  { %6298 = dma.done.wait [#allocation17], 64  }
  0xce   :  { %6299 = vsyncadd [#allocation17], 4294967232 }
  0xcf   :  { %6300 = dma.done.wait [#allocation20], 1056  }
  0xd0   :  { %6301 = vsyncadd [#allocation20], 4294966240 }
  0xd1   :  { %6302 = dma.done.wait [#allocation23], 1056  }
  0xd2   :  { %6303 = vsyncadd [#allocation23], 4294966240 }
  0xd3   :  { %6304 = dma.done.wait [#allocation26], 528  }
  0xd4   :  { %6305 = vsyncadd [#allocation26], 4294966768  ;;  %v6327_v0 = vmov 0   ;;  %s7140_s25 = sld [smem:[#allocation37_spill]]  ;;  %v341_v8 = vld [vmem:[#allocation2 + $0x8] sm:$0xff]  ;;  %v340_v9 = vld [vmem:[#allocation2] sm:$0xff]  ;;  %v304_v15 = vlaneseq }
  0xd5   :  { %5839 = vset.pattern.permute.xlu1 %v6327_v0  ;;  %5838 = vset.pattern.permute.xlu0 %v6327_v0  ;;  %s7141_s9 = sld [smem:[#allocation39_spill]]  ;;  %vm424_vm0 = vcmask 523264   ;;  %v6328_v19 = vmov 0.0   ;;  %vm342_vm3 = vcmask 130048   ;;  %vm511_vm6 = vcmask 261120   ;;  %v736_v45 = vld [vmem:[#allocation10 + $0x18] sm:$0xff] }
  0xd6   :  { %s7142_s30 = sld [smem:[#allocation38_spill]]  ;;  %5464 = vmatprep.subr.mxu0 %v341_v8  ;;  %v6589_v16 = vand.u32 127, %v304_v15  ;;  %v735_v47 = vld [vmem:[#allocation10 + $0x10] sm:$0xff]  ;;  %v734_v49 = vld [vmem:[#allocation10 + $0x8] sm:$0xff]  ;;  %v733_v51 = vld [vmem:[#allocation10] sm:$0xff]  ;;  %vm6329_vm7 = vmmov 0  }
  0xd7   :  { %5465 = vmatpush3.msra.mxu0 %v341_v8  ;;  %s7143_s22 = sld [smem:[#allocation43_spill]]  ;;  %v650_v52 = vld [vmem:[%s7108_s8 + $0x18] sm:$0xff]  ;;  %v5180_v60 = vld [vmem:[#allocation4] ss:$0 sm:$0xff]  ;;  %v5181_v62 = vld [vmem:[#allocation6] ss:$0 sm:$0xff] }
  0xd8   :  { %5466 = vmatprep.subr.mxu0 %v340_v9  ;;  %vm823_vm8 = vcmask 64512   ;;  %s6330_s4 = smov 120   ;;  %s6331_s13 = smov 112  }
  0xd9   :  { %5467 = vmatpush3.msra.mxu0 %v340_v9  ;;  %s6332_s6 = smov 104  }
  0xda   :  { %v303_v1 = vld [vmem:[%s7140_s25 + $0x8] sm:$0xff]  ;;  %v302_v2 = vld [vmem:[%s7140_s25] sm:$0xff] }
  0xdb   :  { %310 = vperm.xlu1 %5839, %v303_v1   ;;  %307 = vperm.xlu0 %5838, %v302_v2   ;;  %v339_v3 = vld [vmem:[%s7141_s9 + $0x38] sm:$0xff]  ;;  %v338_v4 = vld [vmem:[%s7141_s9 + $0x30] sm:$0xff]  ;;  %v337_v7 = vld [vmem:[%s7141_s9 + $0x28] sm:$0xff] }
  0xdc   :  { %v319_v5 = vld [vmem:[%s7142_s30 + $0x8] sm:$0xff]  ;;  %v318_v6 = vld [vmem:[%s7142_s30] sm:$0xff]  ;;  %5471 = vmatprep.subr.mxu1 %v339_v3  ;;  %v335_v11 = vld [vmem:[%s7141_s9 + $0x18] sm:$0xff] }
  0xdd   :  { %5472 = vmatpush3.msra.mxu1 %v339_v3  ;;  %v336_v10 = vld [vmem:[%s7141_s9 + $0x20] sm:$0xff]  ;;  %v334_v12 = vld [vmem:[%s7141_s9 + $0x10] sm:$0xff]  ;;  %v333_v13 = vld [vmem:[%s7141_s9 + $0x8] sm:$0xff] }
  0xde   :  { %5473 = vmatprep.subr.mxu1 %v338_v4  ;;  %v332_v14 = vld [vmem:[%s7141_s9] sm:$0xff]  ;;  %v558_v44 = vld [vmem:[%s7143_s22 + $0x18] sm:$0xff]  ;;  %v557_v46 = vld [vmem:[%s7143_s22 + $0x10] sm:$0xff] }
  0xdf   :  { %324 = vperm.xlu1 %5839, %v319_v5   ;;  %321 = vperm.xlu0 %5838, %v318_v6   ;;  %v556_v48 = vld [vmem:[%s7143_s22 + $0x8] sm:$0xff]  ;;  %v555_v50 = vld [vmem:[%s7143_s22] sm:$0xff]  ;;  %v649_v5 = vld [vmem:[%s7108_s8 + $0x10] sm:$0xff] }
  0xe0   :  { %5474 = vmatpush3.msra.mxu1 %v338_v4  ;;  %5490 = vmatprep.subr.mxu0 %v558_v44  ;;  %v648_v6 = vld [vmem:[%s7108_s8 + $0x8] sm:$0xff] }
  0xe1   :  { %5475 = vmatprep.subr.mxu1 %v337_v7 }
  0xe2   :  { %5476 = vmatpush3.msra.mxu1 %v337_v7  ;;  %v647_v7 = vld [vmem:[%s7108_s8] sm:$0xff] }
  0xe3   :  { %5477 = vmatprep.subr.mxu1 %v336_v10 }
  0xe4   :  { %5478 = vmatpush3.msra.mxu1 %v336_v10  ;;  %v5188_v10 = vld [vmem:[#allocation12] ss:$0 sm:$0xff] }
  0xe5   :  { %5479 = vmatprep.subr.mxu1 %v335_v11 }
  0xe6   :  { %5480 = vmatpush3.msra.mxu1 %v335_v11 }
  0xe7   :  { %5481 = vmatprep.subr.mxu1 %v334_v12 }
  0xe8   :  { %5482 = vmatpush3.msra.mxu1 %v334_v12 }
  0xe9   :  { %5483 = vmatprep.subr.mxu1 %v333_v13 }
  0xea   :  { %5484 = vmatpush3.msra.mxu1 %v333_v13 }
  0xeb   :  { %5485 = vmatprep.subr.mxu1 %v332_v14 }
  0xec   :  { %5486 = vmatpush3.msra.mxu1 %v332_v14 }
  0xed   :  { %5512 = vmatprep.subr.mxu1 %v736_v45 }
 0x156   :  { %v311_v17 = vpop.permute.xlu1 %310  ;;  %v308_v18 = vpop.permute.xlu0 %307 }
 0x157   :  { %vm313_vm1 = vcmp.eq.s32.totalorder %v311_v17, %v6589_v16  ;;  %vm312_vm2 = vcmp.eq.s32.totalorder %v308_v18, %v6589_v16  ;;  %v5185_v17 = vld [vmem:[#allocation9] ss:$0 sm:$0xff] }
 0x158   :  { %v5173_v20 = vsel %vm313_vm1, 1.0, %v6328_v19  ;;  %v5172_v21 = vsel %vm312_vm2, 1.0, %v6328_v19 }
 0x159   :  { %5487 = vmatprep.mubr.msk.f32.mxu1 %vm424_vm0, %v5172_v21  ;;  %v5182_v21 = vld [vmem:[#allocation7] ss:$0 sm:$0xff] }
 0x15a   :  { %v325_v22 = vpop.permute.xlu1 %324  ;;  %5488 = vmatmul.mubr.msk.f32.vlgmr.msra.gmra.mxu1 %vm424_vm0, %v5173_v20  ;;  %v322_v23 = vpop.permute.xlu0 %321 }
 0x15b   :  { %vm327_vm4 = vcmp.eq.s32.totalorder %v325_v22, %v6589_v16  ;;  %vm326_vm5 = vcmp.eq.s32.totalorder %v322_v23, %v6589_v16  ;;  %5513 = vmatpush3.msra.mxu1 %v736_v45 }
 0x15c   :  { %v5175_v24 = vsel %vm327_vm4, 1.0, %v6328_v19  ;;  %v5174_v25 = vsel %vm326_vm5, 1.0, %v6328_v19  ;;  %5514 = vmatprep.subr.mxu1 %v735_v47 }
 0x15d   :  { %5468 = vmatprep.mubr.msk.f32.mxu0 %vm342_vm3, %v5174_v25  ;;  %5515 = vmatpush3.msra.mxu1 %v735_v47 }
 0x15e   :  { %5469 = vmatmul.mubr.msk.f32.vlgmr.msra.gmra.mxu0 %vm342_vm3, %v5175_v24  ;;  %5516 = vmatprep.subr.mxu1 %v734_v49 }
 0x15f   :  { %5491 = vmatpush3.msra.mxu0 %v558_v44  ;;  %5517 = vmatpush3.msra.mxu1 %v734_v49 }
 0x160   :  { %5492 = vmatprep.subr.mxu0 %v557_v46  ;;  %5518 = vmatprep.subr.mxu1 %v733_v51 }
 0x161   :  { %5493 = vmatpush3.msra.mxu0 %v557_v46  ;;  %5519 = vmatpush3.msra.mxu1 %v733_v51 }
 0x162   :  { %5494 = vmatprep.subr.mxu0 %v556_v48  ;;  %5533 = vmatprep.subr.mxu1 %v6328_v19 }
 0x163   :  { %5495 = vmatpush3.msra.mxu0 %v556_v48 }
 0x164   :  { %5496 = vmatprep.subr.mxu0 %v555_v50 }
 0x165   :  { %5497 = vmatpush3.msra.mxu0 %v555_v50 }
 0x166   :  { %5501 = vmatprep.subr.mxu0 %v650_v52 }
 0x21a   :  { %v5489_v26 = vpop.f32.mrf.mxu1 }
 0x21c   :  { %v497_v29 = vpop.f32.mrf.mxu1 }
 0x21e   :  { %v5470_v27 = vpop.f32.mrf.mxu0 }
 0x21f   :  { %v6599_v28 = vadd.f32 %v5489_v26, %v5470_v27  ;;  %v507_v26 = vshrl.u32 %v304_v15, 7 }
 0x220   :  { %v415_v30 = vpop.f32.mrf.mxu0 }
 0x221   :  { %v6601_v31 = vadd.f32 %v497_v29, %v415_v30  ;;  %v515_v32 = vsel %vm511_vm6, %v6599_v28, 0.0  ;;  %vm6679_vm9 = vcmp.ge.s32.totalorder %v507_v26, %v6589_v16 }
 0x222   :  { %516 = vadd.xlane.f32.xlu1 %v515_v32 }
 0x223   :  { %v512_v33 = vsel %vm511_vm6, %v6601_v31, 0.0 }
 0x224   :  { %513 = vadd.xlane.f32.xlu0 %v512_v33 }
 0x2ab   :  { %v517_v34 = vpop.xlane.xlu1 %516 }
 0x2ac   :  { %v520_v35 = vmul.f32 0.03125, %v517_v34 }
 0x2ad   :  { %v514_v36 = vpop.xlane.xlu0 %513 }
 0x2ae   :  { %v519_v37 = vmul.f32 0.03125, %v514_v36  ;;  %v522_v38 = vsub.f32 %v6599_v28, %v520_v35 }
 0x2b0   :  { %v521_v39 = vsub.f32 %v6601_v31, %v519_v37  ;;  %v524_v42 = vmul.f32 %v522_v38, %v522_v38 }
 0x2b2   :  { %v523_v40 = vmul.f32 %v521_v39, %v521_v39  ;;  %v528_v43 = vsel %vm511_vm6, %v524_v42, 0.0 }
 0x2b4   :  { %v525_v41 = vsel %vm511_vm6, %v523_v40, 0.0 }
 0x2b5   :  { %526 = vadd.xlane.f32.xlu0 %v525_v41 }
 0x2b9   :  { %529 = vadd.xlane.f32.xlu0 %v528_v43 }
 0x33e   :  { %v527_v53 = vpop.xlane.xlu0 %526 }
 0x33f   :  { %v531_v54 = vmul.f32 0.03125, %v527_v53 }
 0x341   :  { %v533_v55 = vadd.f32 1e-05, %v531_v54 }
 0x342   :  { %v530_v56 = vpop.xlane.xlu0 %529 }
 0x343   :  { %5840 = vrsqrt.f32 %v533_v55  ;;  %v532_v57 = vmul.f32 0.03125, %v530_v56 }
 0x345   :  { %v534_v58 = vadd.f32 1e-05, %v532_v57 }
 0x347   :  { %5842 = vrsqrt.f32 %v534_v58 }
 0x350   :  { %v5841_v59 = vpop.eup %5840 }
 0x351   :  { %v537_v61 = vmul.f32 %v5841_v59, %v521_v39 }
 0x353   :  { %v545_v63 = vmul.f32 %v5180_v60, %v537_v61 }
 0x354   :  { %v5843_v0 = vpop.eup %5842 }
 0x355   :  { %v538_v1 = vmul.f32 %v5843_v0, %v522_v38  ;;  %v553_v2 = vadd.f32 %v5181_v62, %v545_v63 }
 0x357   :  { %v546_v3 = vmul.f32 %v5180_v60, %v538_v1  ;;  %5498 = vmatprep.mubr.msk.f32.mxu0 %vm511_vm6, %v553_v2  ;;  %5520 = vmatprep.mubr.msk.f32.mxu1 %vm511_vm6, %v553_v2 }
 0x359   :  { %v554_v4 = vadd.f32 %v5181_v62, %v546_v3 }
 0x35b   :  { %5499 = vmatmul.mubr.msk.f32.vlgmr.msra.gmra.mxu0 %vm511_vm6, %v554_v4  ;;  %5521 = vmatmul.mubr.msk.f32.vlgmr.msra.gmra.mxu1 %vm511_vm6, %v554_v4 }
 0x35c   :  { %5502 = vmatpush3.msra.mxu0 %v650_v52  ;;  %5509 = vmatprep.mubr.msk.f32.mxu0 %vm511_vm6, %v553_v2 }
 0x35d   :  { %5503 = vmatprep.subr.mxu0 %v649_v5  ;;  %5535 = vmatprep.mubr.msk.f32.mxu1 %vm6329_vm7, %v6328_v19 }
 0x35e   :  { %5504 = vmatpush3.msra.mxu0 %v649_v5 }
 0x35f   :  { %5505 = vmatprep.subr.mxu0 %v648_v6 }
 0x360   :  { %5506 = vmatpush3.msra.mxu0 %v648_v6 }
 0x361   :  { %5507 = vmatprep.subr.mxu0 %v647_v7 }
 0x362   :  { %5508 = vmatpush3.msra.mxu0 %v647_v7 }
 0x363   :  { %5510 = vmatmul.mubr.msk.f32.vlgmr.msra.gmra.mxu0 %vm511_vm6, %v554_v4  ;;  %5523 = vmatprep.subr.mxu0 %v6328_v19 }
 0x364   :  { %5525 = vmatprep.mubr.msk.f32.mxu0 %vm6329_vm7, %v6328_v19 }
 0x41b   :  { %v5522_v8 = vpop.f32.mrf.mxu1  ;;  %v5500_v9 = vpop.f32.mrf.mxu0 }
 0x41c   :  { %v6666_v24 = vadd.f32 %v5500_v9, %v5182_v21  ;;  %v6669_v25 = vadd.f32 %v5522_v8, %v5188_v10 }
 0x41d   :  { %v810_v11 = vpop.f32.mrf.mxu1  ;;  %v638_v13 = vpop.f32.mrf.mxu0 }
 0x41e   :  { %v6647_v12 = vadd.f32 %v5188_v10, %v810_v11  ;;  %v6655_v22 = vadd.f32 %v5182_v21, %v638_v13 }
 0x420   :  { %5534 = vmatpush3.msra.mxu1 %v6647_v12 }
 0x421   :  { %5543 = vmatprep.subr.mxu1 %v6328_v19 }
 0x423   :  { %v5511_v14 = vpop.f32.mrf.mxu0 }
 0x424   :  { %v6658_v23 = vadd.f32 %v5511_v14, %v5185_v17 }
 0x425   :  { %v724_v18 = vpop.f32.mrf.mxu0 }
 0x426   :  { %v6651_v20 = vadd.f32 %v5185_v17, %v724_v18 }
 0x428   :  { %5524 = vmatpush3.xpose.msk.msra.mxu0 %vm823_vm8, %v6651_v20 }
 0x429   :  { %5528 = vmatprep.subr.mxu0 %v6328_v19 }
 0x42b   :  { %5526 = vmatmul.mubr.msk.f32.vlgmr.msra.gmra.mxu0 %vm823_vm8, %v6655_v22 }
 0x42c   :  { %5529 = vmatpush3.xpose.msk.msra.mxu0 %vm823_vm8, %v6658_v23  ;;  %5530 = vmatprep.mubr.msk.f32.mxu0 %vm6329_vm7, %v6328_v19 }
 0x42d   :  { %5538 = vmatprep.subr.mxu0 %v6328_v19 }
 0x42f   :  { %5531 = vmatmul.mubr.msk.f32.vlgmr.msra.gmra.mxu0 %vm823_vm8, %v6666_v24 }
 0x430   :  { %5539 = vmatpush3.msra.mxu0 %v6669_v25  ;;  %5540 = vmatprep.mubr.msk.f32.mxu0 %vm6329_vm7, %v6328_v19 }
 0x431   :  { %5548 = vmatprep.subr.mxu0 %v6328_v19 }
 0x4eb   :  { %v896_v29 = vpop.f32.mrf.mxu0 }
 0x4ec   :  { %v976_v30 = vmul.f32 0.35355338, %v896_v29 }
 0x4ed   :  { %v5527_v32 = vpop.f32.mrf.mxu0 }
 0x4ee   :  { %v980_v33 = vsel %vm6679_vm9, %v976_v30, -10000.0 }
 0x4ef   :  { %v972_v34 = vpop.f32.mrf.mxu0  ;;  %v982_v35 = vsel %vm823_vm8, %v980_v33, -inf }
 0x4f0   :  { %v977_v36 = vmul.f32 0.35355338, %v972_v34  ;;  %983 = vmax.xlane.f32.xlu1 %v982_v35 }
 0x4f1   :  { %v5532_v37 = vpop.f32.mrf.mxu0 }
 0x4f2   :  { %v981_v15 = vsel %vm6679_vm9, %v977_v36, -10000.0 }
 0x4f3   :  { %v985_v16 = vsel %vm823_vm8, %v981_v15, -inf }
 0x4f4   :  { %986 = vmax.xlane.f32.xlu0 %v985_v16 }
 0x501   :  { %1152 = vrot.lane.b32.xlu1 %v6651_v20, %s6330_s4 }
 0x579   :  { %v984_v38 = vpop.xlane.xlu1 %983 }
 0x57a   :  { %v988_v39 = vsub.f32 %v980_v33, %v984_v38  ;;  %v819_v33 = vld [vmem:[#allocation13] sm:$0xff] }
 0x57c   :  { %v990_v40 = vmul.f32 1.442695, %v988_v39 }
 0x57d   :  { %v987_v41 = vpop.xlane.xlu0 %986  ;;  %v1153_v48 = vpop.permute.xlu1 %1152 }
 0x57e   :  { %5844 = vpow2.f32 %v990_v40  ;;  %v989_v42 = vsub.f32 %v981_v15, %v987_v41  ;;  %v820_v40 = vld [vmem:[#allocation13 + $0x8] sm:$0xff] }
 0x580   :  { %v992_v43 = vmul.f32 1.442695, %v989_v42 }
 0x582   :  { %5846 = vpow2.f32 %v992_v43 }
 0x58b   :  { %v5845_v44 = vpop.eup %5844 }
 0x58c   :  { %v994_v45 = vsel %vm823_vm8, %v5845_v44, 0.0 }
 0x58d   :  { %995 = vadd.xlane.f32.xlu1 %v994_v45 }
 0x58f   :  { %v5847_v46 = vpop.eup %5846 }
 0x590   :  { %v997_v47 = vsel %vm823_vm8, %v5847_v46, 0.0 }
 0x591   :  { %998 = vadd.xlane.f32.xlu0 %v997_v47 }
 0x59e   :  { %1150 = vrot.lane.b32.xlu1 %v6655_v22, %s6330_s4 }
 0x5a2   :  { %1228 = vrot.lane.b32.xlu1 %v6666_v24, %s6330_s4 }
 0x5a7   :  { %1230 = vrot.lane.b32.xlu0 %v6658_v23, %s6330_s4 }
 0x616   :  { %v996_v49 = vpop.xlane.xlu1 %995 }
 0x617   :  { %5848 = vrcp.f32 %v996_v49 }
 0x61a   :  { %v999_v50 = vpop.xlane.xlu0 %998  ;;  %v1151_v54 = vpop.permute.xlu1 %1150 }
 0x61b   :  { %5850 = vrcp.f32 %v999_v50 }
 0x61e   :  { %v1231_v56 = vpop.permute.xlu0 %1230  ;;  %v1229_v57 = vpop.permute.xlu1 %1228 }
 0x624   :  { %v5849_v51 = vpop.eup %5848 }
 0x625   :  { %v1002_v52 = vmul.f32 %v5849_v51, %v5845_v44 }
 0x627   :  { %5536 = vmatmul.mubr.msk.f32.vlgmr.msra.gmra.mxu1 %vm823_vm8, %v1002_v52 }
 0x628   :  { %v5851_v53 = vpop.eup %5850  ;;  %5544 = vmatpush3.xpose.msk.msra.mxu1 %vm823_vm8, %v1153_v48  ;;  %5545 = vmatprep.mubr.msk.f32.mxu1 %vm6329_vm7, %v6328_v19 }
 0x629   :  { %v1003_v55 = vmul.f32 %v5851_v53, %v5847_v46  ;;  %5553 = vmatprep.subr.mxu1 %v6328_v19 }
 0x62b   :  { %5541 = vmatmul.mubr.msk.f32.vlgmr.msra.gmra.mxu0 %vm823_vm8, %v1003_v55  ;;  %5546 = vmatmul.mubr.msk.f32.vlgmr.msra.gmra.mxu1 %vm823_vm8, %v1151_v54 }
 0x62c   :  { %5549 = vmatpush3.xpose.msk.msra.mxu0 %vm823_vm8, %v1231_v56  ;;  %5550 = vmatprep.mubr.msk.f32.mxu0 %vm6329_vm7, %v6328_v19 }
 0x62d   :  { %5558 = vmatprep.subr.mxu0 %v6328_v19  ;;  %5555 = vmatprep.mubr.msk.f32.mxu1 %vm6329_vm7, %v6328_v19 }
 0x62f   :  { %5551 = vmatmul.mubr.msk.f32.vlgmr.msra.gmra.mxu0 %vm823_vm8, %v1229_v57 }
 0x630   :  { %5560 = vmatprep.mubr.msk.f32.mxu0 %vm6329_vm7, %v6328_v19 }
 0x6e7   :  { %v1073_v58 = vpop.f32.mrf.mxu1 }
 0x6e9   :  { %v5537_v59 = vpop.f32.mrf.mxu1 }
 0x6eb   :  { %v1146_v60 = vpop.f32.mrf.mxu0  ;;  %v1224_v61 = vpop.f32.mrf.mxu1 }
 0x6ec   :  { %v1306_v62 = vmul.f32 0.35355338, %v1224_v61 }
 0x6ed   :  { %v5542_v63 = vpop.f32.mrf.mxu0  ;;  %v5547_v0 = vpop.f32.mrf.mxu1 }
 0x6ee   :  { %v1308_v1 = vsel %vm6679_vm9, %v1306_v62, -10000.0 }
 0x6ef   :  { %v1302_v2 = vpop.f32.mrf.mxu0  ;;  %v1310_v3 = vsel %vm823_vm8, %v1308_v1, -inf }
 0x6f0   :  { %v1307_v4 = vmul.f32 0.35355338, %v1302_v2  ;;  %1311 = vmax.xlane.f32.xlu0 %v1310_v3 }
 0x6f1   :  { %v5552_v5 = vpop.f32.mrf.mxu0 }
 0x6f2   :  { %v1309_v6 = vsel %vm6679_vm9, %v1307_v4, -10000.0 }
 0x6f3   :  { %v1313_v7 = vsel %vm823_vm8, %v1309_v6, -inf }
 0x6f4   :  { %1314 = vmax.xlane.f32.xlu1 %v1313_v7 }
 0x705   :  { %1333 = vrot.lane.b32.xlu1 %v6647_v12, %s6330_s4 }
 0x709   :  { %1650 = vrot.lane.b32.xlu1 %v6651_v20, %s6331_s13 }
 0x70d   :  { %1728 = vrot.lane.b32.xlu1 %v6658_v23, %s6331_s13 }
 0x711   :  { %1726 = vrot.lane.b32.xlu1 %v6666_v24, %s6331_s13 }
 0x779   :  { %v1312_v8 = vpop.xlane.xlu0 %1311 }
 0x77a   :  { %v1316_v9 = vsub.f32 %v1308_v1, %v1312_v8 }
 0x77c   :  { %v1318_v10 = vmul.f32 1.442695, %v1316_v9 }
 0x77d   :  { %v1315_v11 = vpop.xlane.xlu1 %1314 }
 0x77e   :  { %5852 = vpow2.f32 %v1318_v10  ;;  %v1317_v13 = vsub.f32 %v1309_v6, %v1315_v11 }
 0x780   :  { %v1320_v14 = vmul.f32 1.442695, %v1317_v13  ;;  %v821_v13 = vld [vmem:[#allocation13 + $0x10] sm:$0xff] }
 0x781   :  { %v1334_v17 = vpop.permute.xlu1 %1333 }
 0x782   :  { %5854 = vpow2.f32 %v1320_v14  ;;  %5554 = vmatpush3.msra.mxu1 %v1334_v17 }
 0x783   :  { %5563 = vmatprep.subr.mxu1 %v820_v40 }
 0x785   :  { %v1651_v37 = vpop.permute.xlu1 %1650 }
 0x789   :  { %v1729_v38 = vpop.permute.xlu1 %1728 }
 0x78b   :  { %v5853_v18 = vpop.eup %5852 }
 0x78c   :  { %v1322_v21 = vsel %vm823_vm8, %v5853_v18, 0.0 }
 0x78d   :  { %1323 = vadd.xlane.f32.xlu0 %v1322_v21  ;;  %v1727_v39 = vpop.permute.xlu1 %1726 }
 0x78f   :  { %v5855_v26 = vpop.eup %5854 }
 0x790   :  { %v1325_v29 = vsel %vm823_vm8, %v5855_v26, 0.0 }
 0x791   :  { %1326 = vadd.xlane.f32.xlu0 %v1325_v29 }
 0x7a7   :  { %1410 = vrot.lane.b32.xlu0 %v6669_v25, %s6330_s4 }
 0x7ab   :  { %1648 = vrot.lane.b32.xlu0 %v6655_v22, %s6331_s13 }
 0x816   :  { %v1324_v30 = vpop.xlane.xlu0 %1323 }
 0x817   :  { %5856 = vrcp.f32 %v1324_v30 }
 0x81a   :  { %v1327_v32 = vpop.xlane.xlu0 %1326 }
 0x81b   :  { %5858 = vrcp.f32 %v1327_v32 }
 0x81e   :  { %v1411_v34 = vpop.permute.xlu0 %1410 }
 0x81f   :  { %5559 = vmatpush3.msra.mxu0 %v1411_v34 }
 0x820   :  { %5568 = vmatprep.subr.mxu0 %v819_v33 }
 0x822   :  { %v1649_v45 = vpop.permute.xlu0 %1648 }
 0x824   :  { %v5857_v35 = vpop.eup %5856 }
 0x825   :  { %v1330_v36 = vmul.f32 %v5857_v35, %v5853_v18 }
 0x827   :  { %5556 = vmatmul.mubr.msk.f32.vlgmr.msra.gmra.mxu1 %vm823_vm8, %v1330_v36 }
 0x828   :  { %v5859_v15 = vpop.eup %5858  ;;  %5564 = vmatpush3.msra.mxu1 %v820_v40 }
 0x829   :  { %v1331_v16 = vmul.f32 %v5859_v15, %v5855_v26  ;;  %5573 = vmatprep.subr.mxu1 %v6328_v19 }
 0x82b   :  { %5561 = vmatmul.mubr.msk.f32.vlgmr.msra.gmra.mxu0 %vm823_vm8, %v1331_v16 }
 0x82c   :  { %5570 = vmatprep.mubr.msk.f32.mxu0 %vm823_vm8, %v1073_v58  ;;  %5569 = vmatpush3.msra.mxu0 %v819_v33 }
 0x82d   :  { %5578 = vmatprep.subr.mxu0 %v6328_v19 }
 0x82f   :  { %5571 = vmatmul.mubr.msk.f32.vlgmr.msra.gmra.mxu0 %vm823_vm8, %v1146_v60 }
 0x830   :  { %5579 = vmatpush3.xpose.msk.msra.mxu0 %vm823_vm8, %v1729_v38  ;;  %5580 = vmatprep.mubr.msk.f32.mxu0 %vm6329_vm7, %v6328_v19 }
 0x831   :  { %5588 = vmatprep.subr.mxu0 %v6328_v19 }
 0x833   :  { %5581 = vmatmul.mubr.msk.f32.vlgmr.msra.gmra.mxu0 %vm823_vm8, %v1727_v39 }
 0x834   :  { %5590 = vmatprep.mubr.msk.f32.mxu0 %vm6329_vm7, %v6328_v19 }
 0x8e7   :  { %v1405_v41 = vpop.f32.mrf.mxu1 }
 0x8e8   :  { %5565 = vmatprep.mubr.msk.f32.mxu1 %vm823_vm8, %v1405_v41 }
 0x8e9   :  { %v5557_v42 = vpop.f32.mrf.mxu1 }
 0x8eb   :  { %v1482_v43 = vpop.f32.mrf.mxu0 }
 0x8ec   :  { %5566 = vmatmul.mubr.msk.f32.vlgmr.msra.gmra.mxu1 %vm823_vm8, %v1482_v43 }
 0x8ed   :  { %5574 = vmatpush3.xpose.msk.msra.mxu1 %vm823_vm8, %v1651_v37  ;;  %v5562_v44 = vpop.f32.mrf.mxu0  ;;  %5575 = vmatprep.mubr.msk.f32.mxu1 %vm6329_vm7, %v6328_v19 }
 0x8ee   :  { %5583 = vmatprep.subr.mxu1 %v6328_v19 }
 0x8ef   :  { %v6754_v46 = vpop.f32.mrf.mxu0 }
 0x8f0   :  { %5576 = vmatmul.mubr.msk.f32.vlgmr.msra.gmra.mxu1 %vm823_vm8, %v1649_v45 }
 0x8f1   :  { %v6757_v47 = vpop.f32.mrf.mxu0  ;;  %5585 = vmatprep.mubr.msk.f32.mxu1 %vm6329_vm7, %v6328_v19 }
 0x8f3   :  { %v1800_v48 = vpop.f32.mrf.mxu0 }
 0x8f4   :  { %v1805_v49 = vmul.f32 0.35355338, %v1800_v48 }
 0x8f5   :  { %v5582_v50 = vpop.f32.mrf.mxu0 }
 0x8f6   :  { %v1807_v51 = vsel %vm6679_vm9, %v1805_v49, -10000.0 }
 0x8f7   :  { %v1811_v52 = vsel %vm823_vm8, %v1807_v51, -inf }
 0x8f8   :  { %1812 = vmax.xlane.f32.xlu1 %v1811_v52 }
 0x909   :  { %1830 = vrot.lane.b32.xlu1 %v6647_v12, %s6331_s13 }
 0x90d   :  { %2067 = vrot.lane.b32.xlu1 %v6651_v20, %s6332_s6 }
 0x911   :  { %2145 = vrot.lane.b32.xlu1 %v6658_v23, %s6332_s6 }
 0x915   :  { %2143 = vrot.lane.b32.xlu1 %v6666_v24, %s6332_s6 }
 0x981   :  { %v1813_v53 = vpop.xlane.xlu1 %1812 }
 0x982   :  { %v1815_v55 = vsub.f32 %v1807_v51, %v1813_v53 }
 0x984   :  { %v1818_v56 = vmul.f32 1.442695, %v1815_v55 }
 0x985   :  { %v1831_v54 = vpop.permute.xlu1 %1830 }
 0x986   :  { %5584 = vmatpush3.msra.mxu1 %v1831_v54  ;;  %5860 = vpow2.f32 %v1818_v56 }
 0x987   :  { %5593 = vmatprep.subr.mxu1 %v821_v13 }
 0x989   :  { %v2068_v9 = vpop.permute.xlu1 %2067 }
 0x98d   :  { %v2146_v32 = vpop.permute.xlu1 %2145 }
 0x991   :  { %v2144_v35 = vpop.permute.xlu1 %2143 }
 0x993   :  { %v5861_v62 = vpop.eup %5860 }
 0x994   :  { %v1823_v24 = vsel %vm823_vm8, %v5861_v62, 0.0 }
 0x9ac   :  { %v6772_v57 = vpop.f32.mrf.mxu1 }
 0x9ad   :  { %v1645_v39 = vadd.f32 %v6754_v46, %v6772_v57 }
 0x9ae   :  { %v6774_v58 = vpop.f32.mrf.mxu1 }
 0x9af   :  { %v1640_v41 = vadd.f32 %v6757_v47, %v6774_v58 }
 0x9b0   :  { %v1722_v59 = vpop.f32.mrf.mxu1 }
 0x9b1   :  { %v1804_v60 = vmul.f32 0.35355338, %v1722_v59 }
 0x9b2   :  { %v5577_v61 = vpop.f32.mrf.mxu1 }
 0x9b3   :  { %v1806_v20 = vsel %vm6679_vm9, %v1804_v60, -10000.0 }
 0x9b4   :  { %v1808_v23 = vsel %vm823_vm8, %v1806_v20, -inf }
 0x9b5   :  { %1809 = vmax.xlane.f32.xlu0 %v1808_v23 }
 0x9b9   :  { %1824 = vadd.xlane.f32.xlu0 %v1823_v24 }
 0xa3e   :  { %v1810_v63 = vpop.xlane.xlu0 %1809 }
 0xa3f   :  { %v1814_v0 = vsub.f32 %v1806_v20, %v1810_v63 }
 0xa41   :  { %v1816_v1 = vmul.f32 1.442695, %v1814_v0 }
 0xa42   :  { %v1825_v4 = vpop.xlane.xlu0 %1824 }
 0xa43   :  { %5862 = vpow2.f32 %v1816_v1  ;;  %v5223_v1 = vld [vmem:[#allocation15] ss:$0 sm:$0xff] }
 0xa44   :  { %5864 = vrcp.f32 %v1825_v4 }
 0xa50   :  { %v5863_v2 = vpop.eup %5862 }
 0xa51   :  { %v1820_v3 = vsel %vm823_vm8, %v5863_v2, 0.0  ;;  %v5865_v6 = vpop.eup %5864 }
 0xa52   :  { %1821 = vadd.xlane.f32.xlu0 %v1820_v3  ;;  %v1829_v8 = vmul.f32 %v5865_v6, %v5861_v62 }
 0xa68   :  { %1906 = vrot.lane.b32.xlu0 %v6669_v25, %s6331_s13 }
 0xa6c   :  { %2065 = vrot.lane.b32.xlu0 %v6655_v22, %s6332_s6 }
 0xadb   :  { %v1822_v5 = vpop.xlane.xlu0 %1821 }
 0xadc   :  { %5866 = vrcp.f32 %v1822_v5 }
 0xadf   :  { %v1907_v7 = vpop.permute.xlu0 %1906 }
 0xae0   :  { %5589 = vmatpush3.msra.mxu0 %v1907_v7 }
 0xae1   :  { %5591 = vmatmul.mubr.msk.f32.vlgmr.msra.gmra.mxu0 %vm823_vm8, %v1829_v8  ;;  %5598 = vmatprep.subr.mxu0 %v6328_v19 }
 0xae2   :  { %5599 = vmatpush3.xpose.msk.msra.mxu0 %vm823_vm8, %v2068_v9  ;;  %5600 = vmatprep.mubr.msk.f32.mxu0 %vm6329_vm7, %v6328_v19 }
 0xae3   :  { %v2066_v10 = vpop.permute.xlu0 %2065  ;;  %5608 = vmatprep.subr.mxu0 %v6328_v19 }
 0xae5   :  { %5601 = vmatmul.mubr.msk.f32.vlgmr.msra.gmra.mxu0 %vm823_vm8, %v2066_v10 }
 0xae6   :  { %5610 = vmatprep.mubr.msk.f32.mxu0 %vm6329_vm7, %v6328_v19 }
 0xae9   :  { %v5867_v22 = vpop.eup %5866 }
 0xaea   :  { %v1828_v11 = vmul.f32 %v5867_v22, %v5863_v2 }
 0xaec   :  { %5586 = vmatmul.mubr.msk.f32.vlgmr.msra.gmra.mxu1 %vm823_vm8, %v1828_v11 }
 0xaed   :  { %5594 = vmatpush3.msra.mxu1 %v821_v13 }
 0xaee   :  { %5603 = vmatprep.subr.mxu1 %v6328_v19 }
 0xba1   :  { %v1978_v14 = vpop.f32.mrf.mxu0 }
 0xba3   :  { %v5592_v17 = vpop.f32.mrf.mxu0 }
 0xba5   :  { %v2139_v18 = vpop.f32.mrf.mxu0 }
 0xba6   :  { %v2221_v21 = vmul.f32 0.35355338, %v2139_v18 }
 0xba7   :  { %v5602_v26 = vpop.f32.mrf.mxu0 }
 0xba8   :  { %v2223_v29 = vsel %vm6679_vm9, %v2221_v21, -10000.0  ;;  %v2540_v26 = vld [vmem:[#allocation19 + $0x18] sm:$0xff] }
 0xba9   :  { %v2225_v30 = vsel %vm823_vm8, %v2223_v29, -inf }
 0xbaa   :  { %2226 = vmax.xlane.f32.xlu0 %v2225_v30  ;;  %v2538_v30 = vld [vmem:[#allocation19 + $0x8] sm:$0xff] }
 0xbac   :  { %v1902_v33 = vpop.f32.mrf.mxu1 }
 0xbad   :  { %5595 = vmatprep.mubr.msk.f32.mxu1 %vm823_vm8, %v1902_v33 }
 0xbae   :  { %v5587_v34 = vpop.f32.mrf.mxu1  ;;  %5596 = vmatmul.mubr.msk.f32.vlgmr.msra.gmra.mxu1 %vm823_vm8, %v1978_v14 }
 0xbaf   :  { %5604 = vmatpush3.xpose.msk.msra.mxu1 %vm823_vm8, %v2146_v32  ;;  %5605 = vmatprep.mubr.msk.f32.mxu1 %vm6329_vm7, %v6328_v19  ;;  %v2537_v32 = vld [vmem:[#allocation19] sm:$0xff] }
 0xbb0   :  { %5613 = vmatprep.subr.mxu1 %v6328_v19 }
 0xbb2   :  { %5606 = vmatmul.mubr.msk.f32.vlgmr.msra.gmra.mxu1 %vm823_vm8, %v2144_v35 }
 0xbb3   :  { %5615 = vmatprep.mubr.msk.f32.mxu1 %vm6329_vm7, %v6328_v19 }
 0xc33   :  { %v2227_v36 = vpop.xlane.xlu0 %2226 }
 0xc34   :  { %v2231_v37 = vsub.f32 %v2223_v29, %v2227_v36  ;;  %v2539_v29 = vld [vmem:[#allocation19 + $0x10] sm:$0xff] }
 0xc36   :  { %v2233_v15 = vmul.f32 1.442695, %v2231_v37 }
 0xc38   :  { %5868 = vpow2.f32 %v2233_v15 }
 0xc45   :  { %v5869_v16 = vpop.eup %5868 }
 0xc46   :  { %v2237_v38 = vsel %vm823_vm8, %v5869_v16, 0.0 }
 0xc47   :  { %2238 = vadd.xlane.f32.xlu0 %v2237_v38  ;;  %v5224_v38 = vld [vmem:[#allocation16] ss:$0 sm:$0xff] }
 0xc6e   :  { %v5597_v40 = vpop.f32.mrf.mxu1 }
 0xc6f   :  { %v2064_v42 = vadd.f32 %v5597_v40, %v1645_v39 }
 0xc70   :  { %v2054_v43 = vpop.f32.mrf.mxu1 }
 0xc71   :  { %v2063_v44 = vadd.f32 %v2054_v43, %v1640_v41  ;;  %v5225_v43 = vld [vmem:[#allocation18] ss:$0 sm:$0xff] }
 0xc72   :  { %v2217_v45 = vpop.f32.mrf.mxu1 }
 0xc73   :  { %v2222_v48 = vmul.f32 0.35355338, %v2217_v45 }
 0xc74   :  { %v5607_v49 = vpop.f32.mrf.mxu1 }
 0xc75   :  { %v2224_v50 = vsel %vm6679_vm9, %v2222_v48, -10000.0  ;;  %v2672_v49 = vld [vmem:[#allocation22 + $0x18] sm:$0xff] }
 0xc76   :  { %v2228_v51 = vsel %vm823_vm8, %v2224_v50, -inf }
 0xc77   :  { %2229 = vmax.xlane.f32.xlu1 %v2228_v51  ;;  %v2670_v51 = vld [vmem:[#allocation22 + $0x8] sm:$0xff] }
 0xc88   :  { %2247 = vrot.lane.b32.xlu1 %v6647_v12, %s6332_s6  ;;  %v822_v12 = vld [vmem:[#allocation13 + $0x18] sm:$0xff] }
 0xcd0   :  { %v2239_v46 = vpop.xlane.xlu0 %2238 }
 0xcd1   :  { %5870 = vrcp.f32 %v2239_v46  ;;  %v2669_v46 = vld [vmem:[#allocation22] sm:$0xff] }
 0xcde   :  { %v5871_v53 = vpop.eup %5870 }
 0xcdf   :  { %v2245_v56 = vmul.f32 %v5871_v53, %v5869_v16 }
 0xd00   :  { %v2230_v52 = vpop.xlane.xlu1 %2229 }
 0xd01   :  { %v2232_v47 = vsub.f32 %v2224_v50, %v2230_v52  ;;  %v2671_v50 = vld [vmem:[#allocation22 + $0x10] sm:$0xff]  ;;  %v5226_v52 = vld [vmem:[#allocation21] ss:$0 sm:$0xff] }
 0xd03   :  { %v2235_v54 = vmul.f32 1.442695, %v2232_v47 }
 0xd04   :  { %v2248_v55 = vpop.permute.xlu1 %2247 }
 0xd05   :  { %5872 = vpow2.f32 %v2235_v54  ;;  %5609 = vmatpush3.msra.mxu0 %v2248_v55 }
 0xd06   :  { %5611 = vmatmul.mubr.msk.f32.vlgmr.msra.gmra.mxu0 %vm823_vm8, %v2245_v56  ;;  %5618 = vmatprep.subr.mxu0 %v822_v12 }
 0xd07   :  { %5619 = vmatpush3.msra.mxu0 %v822_v12 }
 0xd08   :  { %5634 = vmatprep.subr.mxu0 %v2672_v49 }
 0xd12   :  { %v5873_v57 = vpop.eup %5872 }
 0xd13   :  { %v2240_v58 = vsel %vm823_vm8, %v5873_v57, 0.0 }
 0xd14   :  { %2241 = vadd.xlane.f32.xlu0 %v2240_v58 }
 0xd2a   :  { %2323 = vrot.lane.b32.xlu0 %v6669_v25, %s6332_s6 }
 0xd9d   :  { %v2242_v59 = vpop.xlane.xlu0 %2241 }
 0xd9e   :  { %5874 = vrcp.f32 %v2242_v59 }
 0xda1   :  { %v2324_v60 = vpop.permute.xlu0 %2323 }
 0xda2   :  { %5614 = vmatpush3.msra.mxu1 %v2324_v60 }
 0xda3   :  { %5623 = vmatprep.subr.mxu1 %v2540_v26 }
 0xdab   :  { %v5875_v61 = vpop.eup %5874 }
 0xdac   :  { %v2246_v20 = vmul.f32 %v5875_v61, %v5873_v57 }
 0xdae   :  { %5616 = vmatmul.mubr.msk.f32.vlgmr.msra.gmra.mxu1 %vm823_vm8, %v2246_v20 }
 0xdaf   :  { %5624 = vmatpush3.msra.mxu1 %v2540_v26 }
 0xdb0   :  { %5625 = vmatprep.subr.mxu1 %v2539_v29 }
 0xdb1   :  { %5626 = vmatpush3.msra.mxu1 %v2539_v29 }
 0xdb2   :  { %5627 = vmatprep.subr.mxu1 %v2538_v30 }
 0xdb3   :  { %5628 = vmatpush3.msra.mxu1 %v2538_v30 }
 0xdb4   :  { %5629 = vmatprep.subr.mxu1 %v2537_v32 }
 0xdb5   :  { %5630 = vmatpush3.msra.mxu1 %v2537_v32  ;;  %v5229_v32 = vld [vmem:[#allocation24] ss:$0 sm:$0xff] }
 0xdc6   :  { %v2319_v23 = vpop.f32.mrf.mxu0 }
 0xdc7   :  { %5620 = vmatprep.mubr.msk.f32.mxu0 %vm823_vm8, %v2319_v23 }
 0xdc8   :  { %v5612_v62 = vpop.f32.mrf.mxu0 }
 0xe6e   :  { %v2395_v24 = vpop.f32.mrf.mxu1 }
 0xe6f   :  { %5621 = vmatmul.mubr.msk.f32.vlgmr.msra.gmra.mxu0 %vm823_vm8, %v2395_v24 }
 0xe70   :  { %v5617_v63 = vpop.f32.mrf.mxu1  ;;  %5635 = vmatpush3.msra.mxu0 %v2672_v49  ;;  %v5237_v49 = vld [vmem:[%s7143_s22 + $0x38] sm:$0xff] }
 0xe71   :  { %5636 = vmatprep.subr.mxu0 %v2671_v50  ;;  %5645 = vmatprep.subr.mxu1 %v5237_v49 }
 0xe72   :  { %5637 = vmatpush3.msra.mxu0 %v2671_v50  ;;  %v5244_v50 = vld [vmem:[%s7108_s8 + $0x38] sm:$0xff] }
 0xe73   :  { %5638 = vmatprep.subr.mxu0 %v2670_v51 }
 0xe74   :  { %5639 = vmatpush3.msra.mxu0 %v2670_v51  ;;  %v5236_v51 = vld [vmem:[%s7143_s22 + $0x30] sm:$0xff] }
 0xe75   :  { %5640 = vmatprep.subr.mxu0 %v2669_v46 }
 0xe76   :  { %5641 = vmatpush3.msra.mxu0 %v2669_v46  ;;  %v5243_v46 = vld [vmem:[%s7108_s8 + $0x30] sm:$0xff] }
 0xe77   :  { %5656 = vmatprep.subr.mxu0 %v5244_v50 }
 0xf2f   :  { %v5622_v25 = vpop.f32.mrf.mxu0 }
 0xf30   :  { %v2481_v0 = vadd.f32 %v5622_v25, %v2064_v42 }
 0xf31   :  { %v2471_v2 = vpop.f32.mrf.mxu0 }
 0xf32   :  { %v2483_v3 = vadd.f32 %v2481_v0, %v6599_v28  ;;  %v2480_v4 = vadd.f32 %v2471_v2, %v2063_v44 }
 0xf34   :  { %v6826_v5 = vadd.f32 %v5223_v1, %v2483_v3  ;;  %v2482_v6 = vadd.f32 %v2480_v4, %v6601_v31 }
 0xf36   :  { %v6829_v7 = vadd.f32 %v5223_v1, %v2482_v6  ;;  %v2498_v8 = vsel %vm511_vm6, %v6826_v5, 0.0 }
 0xf37   :  { %2499 = vadd.xlane.f32.xlu0 %v2498_v8 }
 0xf38   :  { %v2495_v9 = vsel %vm511_vm6, %v6829_v7, 0.0 }
 0xf39   :  { %2496 = vadd.xlane.f32.xlu1 %v2495_v9 }
 0xfc0   :  { %v2500_v10 = vpop.xlane.xlu0 %2499 }
 0xfc1   :  { %v2502_v22 = vmul.f32 0.03125, %v2500_v10 }
 0xfc2   :  { %v2497_v11 = vpop.xlane.xlu1 %2496 }
 0xfc3   :  { %v2504_v28 = vsub.f32 %v6826_v5, %v2502_v22  ;;  %v2501_v13 = vmul.f32 0.03125, %v2497_v11 }
 0xfc5   :  { %v2503_v14 = vsub.f32 %v6829_v7, %v2501_v13  ;;  %v2506_v17 = vmul.f32 %v2504_v28, %v2504_v28 }
 0xfc7   :  { %v2510_v31 = vsel %vm511_vm6, %v2506_v17, 0.0  ;;  %v2505_v18 = vmul.f32 %v2503_v14, %v2503_v14 }
 0xfc8   :  { %2511 = vadd.xlane.f32.xlu0 %v2510_v31 }
 0xfc9   :  { %v2507_v21 = vsel %vm511_vm6, %v2505_v18, 0.0 }
 0xfca   :  { %2508 = vadd.xlane.f32.xlu1 %v2507_v21 }
0x1051   :  { %v2512_v33 = vpop.xlane.xlu0 %2511 }
0x1052   :  { %v2514_v34 = vmul.f32 0.03125, %v2512_v33 }
0x1053   :  { %v2509_v35 = vpop.xlane.xlu1 %2508 }
0x1054   :  { %v2516_v36 = vadd.f32 1e-05, %v2514_v34  ;;  %v2513_v37 = vmul.f32 0.03125, %v2509_v35 }
0x1056   :  { %5876 = vrsqrt.f32 %v2516_v36  ;;  %v2515_v15 = vadd.f32 1e-05, %v2513_v37 }
0x1058   :  { %5878 = vrsqrt.f32 %v2515_v15 }
0x1063   :  { %v5877_v16 = vpop.eup %5876 }
0x1064   :  { %v2520_v39 = vmul.f32 %v5877_v16, %v2504_v28 }
0x1065   :  { %v5879_v40 = vpop.eup %5878 }
0x1066   :  { %v2519_v41 = vmul.f32 %v5879_v40, %v2503_v14  ;;  %v2528_v42 = vmul.f32 %v5224_v38, %v2520_v39 }
0x1068   :  { %v2527_v44 = vmul.f32 %v5224_v38, %v2519_v41  ;;  %v2536_v48 = vadd.f32 %v5225_v43, %v2528_v42 }
0x106a   :  { %v2535_v45 = vadd.f32 %v5225_v43, %v2527_v44 }
0x106c   :  { %5631 = vmatprep.mubr.msk.f32.mxu1 %vm511_vm6, %v2535_v45 }
0x106d   :  { %5632 = vmatmul.mubr.msk.f32.vlgmr.msra.gmra.mxu1 %vm511_vm6, %v2536_v48 }
0x106e   :  { %5646 = vmatpush3.msra.mxu1 %v5237_v49 }
0x106f   :  { %5647 = vmatprep.subr.mxu1 %v5236_v51 }
0x1070   :  { %5648 = vmatpush3.msra.mxu1 %v5236_v51 }
0x112d   :  { %v5633_v53 = vpop.f32.mrf.mxu1 }
0x112e   :  { %v2626_v47 = vadd.f32 %v5633_v53, %v5226_v52  ;;  %v5242_v53 = vld [vmem:[%s7108_s8 + $0x28] sm:$0xff] }
0x112f   :  { %v2620_v54 = vpop.f32.mrf.mxu1 }
0x1130   :  { %v2636_v55 = vand.u32 2147483647, %v2626_v47  ;;  %v2621_v56 = vadd.f32 %v5226_v52, %v2620_v54  ;;  %v2630_v9 = vmax.f32 %v2626_v47, 0.0  ;;  %vm2632_vm12 = vcmp.ne.f32.partialorder %v2626_v47, %v2626_v47  ;;  %v5235_v52 = vld [vmem:[%s7143_s22 + $0x28] sm:$0xff]  ;;  %v5241_v54 = vld [vmem:[%s7108_s8 + $0x20] sm:$0xff] }
0x1131   :  { %5649 = vmatprep.subr.mxu1 %v5235_v52 }
0x1132   :  { %v2638_v57 = vsub.f32 0.0, %v2636_v55  ;;  %v2635_v58 = vand.u32 2147483647, %v2621_v56  ;;  %v2629_v13 = vmax.f32 %v2621_v56, 0.0  ;;  %vm2631_vm13 = vcmp.ne.f32.partialorder %v2621_v56, %v2621_v56  ;;  %5650 = vmatpush3.msra.mxu1 %v5235_v52  ;;  %v2995_v55 = vld [vmem:[#allocation10 + $0x38] sm:$0xff] }
0x1134   :  { %v2641_v12 = vmul.f32 1.442695, %v2638_v57  ;;  %v2637_v59 = vsub.f32 0.0, %v2635_v58 }
0x1136   :  { %5880 = vpow2.f32 %v2641_v12  ;;  %v2639_v60 = vmul.f32 1.442695, %v2637_v59 }
0x1138   :  { %5882 = vpow2.f32 %v2639_v60 }
0x1143   :  { %v5881_v61 = vpop.eup %5880 }
0x1144   :  { %v2652_v20 = vadd.f32 1.0, %v5881_v61  ;;  %v2655_v24 = vmul.f32 -0.5, %v5881_v61  ;;  %v2658_v0 = vand.u32 2147483647, %v5881_v61 }
0x1145   :  { %v5883_v23 = vpop.eup %5882 }
0x1146   :  { %5884 = vlog2.f32 %v2652_v20  ;;  %v2643_v62 = vadd.f32 1.0, %v5883_v23  ;;  %v2646_v63 = vmul.f32 -0.5, %v5883_v23  ;;  %v2656_v25 = vadd.f32 1.0, %v2655_v24  ;;  %v5232_v20 = vld [vmem:[#allocation4 + $0x1] ss:$0 sm:$0xff] }
0x1147   :  { %v2649_v3 = vand.u32 2147483647, %v5883_v23  ;;  %vm2659_vm10 = vcmp.lt.f32.partialorder %v2658_v0, 0.0004427343 }
0x1148   :  { %5886 = vlog2.f32 %v2643_v62  ;;  %v2647_v1 = vadd.f32 1.0, %v2646_v63  ;;  %v2657_v6 = vmul.f32 %v5881_v61, %v2656_v25  ;;  %v5233_v25 = vld [vmem:[#allocation6 + $0x1] ss:$0 sm:$0xff] }
0x1149   :  { %vm2650_vm11 = vcmp.lt.f32.partialorder %v2649_v3, 0.0004427343  ;;  %v2994_v3 = vld [vmem:[#allocation10 + $0x30] sm:$0xff] }
0x114a   :  { %v2648_v11 = vmul.f32 %v5883_v23, %v2647_v1 }
0x1153   :  { %v5885_v2 = vpop.eup %5884 }
0x1154   :  { %v2654_v4 = vmul.f32 0.6931472, %v5885_v2 }
0x1155   :  { %v5887_v8 = vpop.eup %5886 }
0x1156   :  { %v2660_v10 = vsel %vm2659_vm10, %v2657_v6, %v2654_v4  ;;  %v2645_v22 = vmul.f32 0.6931472, %v5887_v8  ;;  %v2993_v4 = vld [vmem:[#allocation10 + $0x28] sm:$0xff]  ;;  %v2992_v6 = vld [vmem:[#allocation10 + $0x20] sm:$0xff] }
0x1157   :  { %v2662_v28 = vadd.f32 %v2660_v10, %v2630_v9  ;;  %v5245_v10 = vld [vmem:[#allocation9 + $0x1] ss:$0 sm:$0xff] }
0x1158   :  { %v2651_v14 = vsel %vm2650_vm11, %v2648_v11, %v2645_v22 }
0x1159   :  { %v2664_v17 = vsel %vm2632_vm12, %v2626_v47, %v2662_v28  ;;  %v2661_v31 = vadd.f32 %v2651_v14, %v2629_v13  ;;  %v5238_v13 = vld [vmem:[#allocation7 + $0x1] ss:$0 sm:$0xff] }
0x115a   :  { %5888 = vtanh.f32 %v2664_v17 }
0x115b   :  { %v2663_v18 = vsel %vm2631_vm13, %v2621_v56, %v2661_v31 }
0x115c   :  { %5890 = vtanh.f32 %v2663_v18  ;;  %v5248_v18 = vld [vmem:[#allocation12 + $0x1] ss:$0 sm:$0xff] }
0x1167   :  { %v5889_v21 = vpop.eup %5888 }
0x1168   :  { %v2668_v30 = vmul.f32 %v5889_v21, %v2626_v47  ;;  %v5234_v47 = vld [vmem:[%s7143_s22 + $0x20] sm:$0xff] }
0x1169   :  { %v5891_v26 = vpop.eup %5890  ;;  %5651 = vmatprep.subr.mxu1 %v5234_v47 }
0x116a   :  { %v2667_v29 = vmul.f32 %v5891_v26, %v2621_v56  ;;  %5652 = vmatpush3.msra.mxu1 %v5234_v47 }
0x116b   :  { %5667 = vmatprep.subr.mxu1 %v2995_v55 }
0x116c   :  { %5642 = vmatprep.mubr.msk.f32.mxu0 %vm511_vm6, %v2667_v29 }
0x116d   :  { %5643 = vmatmul.mubr.msk.f32.vlgmr.msra.gmra.mxu0 %vm511_vm6, %v2668_v30 }
0x116e   :  { %5657 = vmatpush3.msra.mxu0 %v5244_v50 }
0x116f   :  { %5658 = vmatprep.subr.mxu0 %v5243_v46 }
0x1170   :  { %5659 = vmatpush3.msra.mxu0 %v5243_v46 }
0x1171   :  { %5660 = vmatprep.subr.mxu0 %v5242_v53 }
0x1172   :  { %5661 = vmatpush3.msra.mxu0 %v5242_v53 }
0x1173   :  { %5662 = vmatprep.subr.mxu0 %v5241_v54 }
0x1174   :  { %5663 = vmatpush3.msra.mxu0 %v5241_v54 }
0x1175   :  { %5678 = vmatprep.subr.mxu0 %v6328_v19 }
0x122d   :  { %v5644_v33 = vpop.f32.mrf.mxu0 }
0x122e   :  { %v2758_v34 = vadd.f32 %v5644_v33, %v5229_v32 }
0x122f   :  { %v2752_v35 = vpop.f32.mrf.mxu0 }
0x1230   :  { %v6844_v36 = vadd.f32 %v2758_v34, %v6826_v5  ;;  %v2753_v37 = vadd.f32 %v5229_v32, %v2752_v35 }
0x1232   :  { %v6847_v15 = vadd.f32 %v2753_v37, %v6829_v7  ;;  %v2770_v16 = vsel %vm511_vm6, %v6844_v36, 0.0 }
0x1233   :  { %2771 = vadd.xlane.f32.xlu0 %v2770_v16 }
0x1234   :  { %v2767_v38 = vsel %vm511_vm6, %v6847_v15, 0.0 }
0x1235   :  { %2768 = vadd.xlane.f32.xlu1 %v2767_v38 }
0x12bc   :  { %v2772_v39 = vpop.xlane.xlu0 %2771 }
0x12bd   :  { %v2774_v40 = vmul.f32 0.03125, %v2772_v39 }
0x12be   :  { %v2769_v41 = vpop.xlane.xlu1 %2768 }
0x12bf   :  { %v2776_v42 = vsub.f32 %v6844_v36, %v2774_v40  ;;  %v2773_v43 = vmul.f32 0.03125, %v2769_v41 }
0x12c1   :  { %v2775_v5 = vsub.f32 %v6847_v15, %v2773_v43  ;;  %v2778_v44 = vmul.f32 %v2776_v42, %v2776_v42 }
0x12c3   :  { %v2782_v7 = vsel %vm511_vm6, %v2778_v44, 0.0  ;;  %v2777_v45 = vmul.f32 %v2775_v5, %v2775_v5 }
0x12c4   :  { %2783 = vadd.xlane.f32.xlu0 %v2782_v7 }
0x12c5   :  { %v2779_v48 = vsel %vm511_vm6, %v2777_v45, 0.0 }
0x12c6   :  { %2780 = vadd.xlane.f32.xlu1 %v2779_v48 }
0x134d   :  { %v2784_v56 = vpop.xlane.xlu0 %2783 }
0x134e   :  { %v2786_v57 = vmul.f32 0.03125, %v2784_v56 }
0x134f   :  { %v2781_v58 = vpop.xlane.xlu1 %2780 }
0x1350   :  { %v2788_v12 = vadd.f32 1e-05, %v2786_v57  ;;  %v2785_v59 = vmul.f32 0.03125, %v2781_v58 }
0x1352   :  { %5892 = vrsqrt.f32 %v2788_v12  ;;  %v2787_v60 = vadd.f32 1e-05, %v2785_v59 }
0x1354   :  { %5894 = vrsqrt.f32 %v2787_v60 }
0x135f   :  { %v5893_v61 = vpop.eup %5892 }
0x1360   :  { %v2792_v23 = vmul.f32 %v5893_v61, %v2776_v42 }
0x1361   :  { %v5895_v62 = vpop.eup %5894 }
0x1362   :  { %v2791_v24 = vmul.f32 %v5895_v62, %v2775_v5  ;;  %v2800_v63 = vmul.f32 %v5232_v20, %v2792_v23 }
0x1364   :  { %v2799_v0 = vmul.f32 %v5232_v20, %v2791_v24  ;;  %v2808_v2 = vadd.f32 %v5233_v25, %v2800_v63 }
0x1366   :  { %v2807_v1 = vadd.f32 %v5233_v25, %v2799_v0 }
0x1368   :  { %5653 = vmatprep.mubr.msk.f32.mxu1 %vm511_vm6, %v2807_v1  ;;  %5664 = vmatprep.mubr.msk.f32.mxu0 %vm511_vm6, %v2807_v1 }
0x1369   :  { %5654 = vmatmul.mubr.msk.f32.vlgmr.msra.gmra.mxu1 %vm511_vm6, %v2808_v2  ;;  %5665 = vmatmul.mubr.msk.f32.vlgmr.msra.gmra.mxu0 %vm511_vm6, %v2808_v2 }
0x136a   :  { %5668 = vmatpush3.msra.mxu1 %v2995_v55  ;;  %5675 = vmatprep.mubr.msk.f32.mxu1 %vm511_vm6, %v2807_v1 }
0x136b   :  { %5669 = vmatprep.subr.mxu1 %v2994_v3  ;;  %5680 = vmatprep.mubr.msk.f32.mxu0 %vm6329_vm7, %v6328_v19 }
0x136c   :  { %5670 = vmatpush3.msra.mxu1 %v2994_v3 }
0x136d   :  { %5671 = vmatprep.subr.mxu1 %v2993_v4 }
0x136e   :  { %5672 = vmatpush3.msra.mxu1 %v2993_v4 }
0x136f   :  { %5673 = vmatprep.subr.mxu1 %v2992_v6 }
0x1370   :  { %5674 = vmatpush3.msra.mxu1 %v2992_v6 }
0x1371   :  { %5676 = vmatmul.mubr.msk.f32.vlgmr.msra.gmra.mxu1 %vm511_vm6, %v2808_v2  ;;  %5688 = vmatprep.subr.mxu1 %v6328_v19 }
0x1372   :  { %5690 = vmatprep.mubr.msk.f32.mxu1 %vm6329_vm7, %v6328_v19 }
0x1429   :  { %v5655_v8 = vpop.f32.mrf.mxu1  ;;  %v5666_v9 = vpop.f32.mrf.mxu0 }
0x142a   :  { %v6900_v17 = vadd.f32 %v5666_v9, %v5245_v10  ;;  %v6908_v21 = vadd.f32 %v5655_v8, %v5238_v13 }
0x142b   :  { %v2982_v22 = vpop.f32.mrf.mxu0  ;;  %v2894_v11 = vpop.f32.mrf.mxu1 }
0x142c   :  { %v6893_v28 = vadd.f32 %v5245_v10, %v2982_v22  ;;  %v6897_v14 = vadd.f32 %v5238_v13, %v2894_v11 }
0x142e   :  { %5679 = vmatpush3.xpose.msk.msra.mxu0 %vm823_vm8, %v6893_v28 }
0x142f   :  { %5683 = vmatprep.subr.mxu0 %v6328_v19 }
0x1431   :  { %v5677_v31 = vpop.f32.mrf.mxu1  ;;  %5681 = vmatmul.mubr.msk.f32.vlgmr.msra.gmra.mxu0 %vm823_vm8, %v6897_v14 }
0x1432   :  { %5684 = vmatpush3.xpose.msk.msra.mxu0 %vm823_vm8, %v6900_v17  ;;  %5685 = vmatprep.mubr.msk.f32.mxu0 %vm6329_vm7, %v6328_v19  ;;  %v6911_v29 = vadd.f32 %v5677_v31, %v5248_v18 }
0x1433   :  { %v3070_v26 = vpop.f32.mrf.mxu1  ;;  %5693 = vmatprep.subr.mxu0 %v6328_v19 }
0x1434   :  { %v6913_v30 = vadd.f32 %v5248_v18, %v3070_v26 }
0x1435   :  { %5686 = vmatmul.mubr.msk.f32.vlgmr.msra.gmra.mxu0 %vm823_vm8, %v6908_v21 }
0x1436   :  { %5689 = vmatpush3.msra.mxu1 %v6913_v30  ;;  %5694 = vmatpush3.msra.mxu0 %v6911_v29 }
0x1437   :  { %5698 = vmatprep.subr.mxu1 %v6328_v19  ;;  %5695 = vmatprep.mubr.msk.f32.mxu0 %vm6329_vm7, %v6328_v19 }
0x1438   :  { %5703 = vmatprep.subr.mxu0 %v6328_v19 }
0x14f1   :  { %v3156_v32 = vpop.f32.mrf.mxu0 }
0x14f2   :  { %v3236_v33 = vmul.f32 0.35355338, %v3156_v32 }
0x14f3   :  { %v5682_v34 = vpop.f32.mrf.mxu0 }
0x14f4   :  { %v3238_v35 = vsel %vm6679_vm9, %v3236_v33, -10000.0 }
0x14f5   :  { %v3232_v37 = vpop.f32.mrf.mxu0  ;;  %v3240_v16 = vsel %vm823_vm8, %v3238_v35, -inf }
0x14f6   :  { %v3237_v38 = vmul.f32 0.35355338, %v3232_v37  ;;  %3241 = vmax.xlane.f32.xlu1 %v3240_v16 }
0x14f7   :  { %v5687_v39 = vpop.f32.mrf.mxu0 }
0x14f8   :  { %v3239_v40 = vsel %vm6679_vm9, %v3237_v38, -10000.0 }
0x14f9   :  { %v3243_v41 = vsel %vm823_vm8, %v3239_v40, -inf }
0x14fa   :  { %3244 = vmax.xlane.f32.xlu0 %v3243_v41 }
0x1507   :  { %3410 = vrot.lane.b32.xlu1 %v6893_v28, %s6330_s4 }
0x157f   :  { %v3242_v42 = vpop.xlane.xlu1 %3241 }
0x1580   :  { %v3246_v43 = vsub.f32 %v3238_v35, %v3242_v42  ;;  %v3080_v35 = vld [vmem:[#allocation13 + $0x20] sm:$0xff] }
0x1582   :  { %v3248_v5 = vmul.f32 1.442695, %v3246_v43 }
0x1583   :  { %v3245_v44 = vpop.xlane.xlu0 %3244  ;;  %v3411_v46 = vpop.permute.xlu1 %3410 }
0x1584   :  { %5896 = vpow2.f32 %v3248_v5  ;;  %v3247_v7 = vsub.f32 %v3239_v40, %v3245_v44  ;;  %v3081_v5 = vld [vmem:[#allocation13 + $0x28] sm:$0xff] }
0x1586   :  { %v3250_v45 = vmul.f32 1.442695, %v3247_v7 }
0x1588   :  { %5898 = vpow2.f32 %v3250_v45 }
0x1591   :  { %v5897_v48 = vpop.eup %5896 }
0x1592   :  { %v3252_v49 = vsel %vm823_vm8, %v5897_v48, 0.0 }
0x1593   :  { %3253 = vadd.xlane.f32.xlu1 %v3252_v49 }
0x1595   :  { %v5899_v50 = vpop.eup %5898 }
0x1596   :  { %v3255_v51 = vsel %vm823_vm8, %v5899_v50, 0.0 }
0x1597   :  { %3256 = vadd.xlane.f32.xlu0 %v3255_v51 }
0x15a4   :  { %3408 = vrot.lane.b32.xlu1 %v6897_v14, %s6330_s4 }
0x15a8   :  { %3486 = vrot.lane.b32.xlu1 %v6908_v21, %s6330_s4 }
0x15ad   :  { %3488 = vrot.lane.b32.xlu0 %v6900_v17, %s6330_s4 }
0x161c   :  { %v3254_v52 = vpop.xlane.xlu1 %3253 }
0x161d   :  { %5900 = vrcp.f32 %v3254_v52 }
0x1620   :  { %v3257_v53 = vpop.xlane.xlu0 %3256  ;;  %v3409_v56 = vpop.permute.xlu1 %3408 }
0x1621   :  { %5902 = vrcp.f32 %v3257_v53 }
0x1624   :  { %v3489_v58 = vpop.permute.xlu0 %3488  ;;  %v3487_v12 = vpop.permute.xlu1 %3486 }
0x162a   :  { %v5901_v47 = vpop.eup %5900 }
0x162b   :  { %v3260_v54 = vmul.f32 %v5901_v47, %v5897_v48 }
0x162d   :  { %5691 = vmatmul.mubr.msk.f32.vlgmr.msra.gmra.mxu1 %vm823_vm8, %v3260_v54 }
0x162e   :  { %v5903_v55 = vpop.eup %5902  ;;  %5699 = vmatpush3.xpose.msk.msra.mxu1 %vm823_vm8, %v3411_v46  ;;  %5700 = vmatprep.mubr.msk.f32.mxu1 %vm6329_vm7, %v6328_v19 }
0x162f   :  { %v3261_v57 = vmul.f32 %v5903_v55, %v5899_v50  ;;  %5708 = vmatprep.subr.mxu1 %v6328_v19 }
0x1631   :  { %5696 = vmatmul.mubr.msk.f32.vlgmr.msra.gmra.mxu0 %vm823_vm8, %v3261_v57  ;;  %5701 = vmatmul.mubr.msk.f32.vlgmr.msra.gmra.mxu1 %vm823_vm8, %v3409_v56 }
0x1632   :  { %5704 = vmatpush3.xpose.msk.msra.mxu0 %vm823_vm8, %v3489_v58  ;;  %5705 = vmatprep.mubr.msk.f32.mxu0 %vm6329_vm7, %v6328_v19 }
0x1633   :  { %5713 = vmatprep.subr.mxu0 %v6328_v19  ;;  %5710 = vmatprep.mubr.msk.f32.mxu1 %vm6329_vm7, %v6328_v19 }
0x1635   :  { %5706 = vmatmul.mubr.msk.f32.vlgmr.msra.gmra.mxu0 %vm823_vm8, %v3487_v12 }
0x1636   :  { %5715 = vmatprep.mubr.msk.f32.mxu0 %vm6329_vm7, %v6328_v19 }
0x16ed   :  { %v3331_v59 = vpop.f32.mrf.mxu1 }
0x16ef   :  { %v5692_v60 = vpop.f32.mrf.mxu1 }
0x16f1   :  { %v3404_v61 = vpop.f32.mrf.mxu0  ;;  %v3482_v20 = vpop.f32.mrf.mxu1 }
0x16f2   :  { %v3564_v23 = vmul.f32 0.35355338, %v3482_v20 }
0x16f3   :  { %v5697_v62 = vpop.f32.mrf.mxu0  ;;  %v5702_v24 = vpop.f32.mrf.mxu1 }
0x16f4   :  { %v3566_v63 = vsel %vm6679_vm9, %v3564_v23, -10000.0 }
0x16f5   :  { %v3560_v25 = vpop.f32.mrf.mxu0  ;;  %v3568_v0 = vsel %vm823_vm8, %v3566_v63, -inf }
0x16f6   :  { %v3565_v1 = vmul.f32 0.35355338, %v3560_v25  ;;  %3569 = vmax.xlane.f32.xlu0 %v3568_v0 }
0x16f7   :  { %v5707_v2 = vpop.f32.mrf.mxu0 }
0x16f8   :  { %v3567_v3 = vsel %vm6679_vm9, %v3565_v1, -10000.0 }
0x16f9   :  { %v3571_v4 = vsel %vm823_vm8, %v3567_v3, -inf }
0x16fa   :  { %3572 = vmax.xlane.f32.xlu1 %v3571_v4 }
0x170b   :  { %3591 = vrot.lane.b32.xlu1 %v6913_v30, %s6330_s4 }
0x170f   :  { %3908 = vrot.lane.b32.xlu1 %v6893_v28, %s6331_s13 }
0x1713   :  { %3986 = vrot.lane.b32.xlu1 %v6900_v17, %s6331_s13 }
0x1717   :  { %3984 = vrot.lane.b32.xlu1 %v6908_v21, %s6331_s13 }
0x177f   :  { %v3570_v6 = vpop.xlane.xlu0 %3569 }
0x1780   :  { %v3574_v8 = vsub.f32 %v3566_v63, %v3570_v6 }
0x1782   :  { %v3576_v9 = vmul.f32 1.442695, %v3574_v8 }
0x1783   :  { %v3573_v10 = vpop.xlane.xlu1 %3572 }
0x1784   :  { %5904 = vpow2.f32 %v3576_v9  ;;  %v3575_v22 = vsub.f32 %v3567_v3, %v3573_v10 }
0x1786   :  { %v3578_v11 = vmul.f32 1.442695, %v3575_v22  ;;  %v3082_v22 = vld [vmem:[#allocation13 + $0x30] sm:$0xff] }
0x1787   :  { %v3592_v13 = vpop.permute.xlu1 %3591 }
0x1788   :  { %5906 = vpow2.f32 %v3578_v11  ;;  %5709 = vmatpush3.msra.mxu1 %v3592_v13 }
0x1789   :  { %5718 = vmatprep.subr.mxu1 %v3081_v5 }
0x178b   :  { %v3909_v39 = vpop.permute.xlu1 %3908 }
0x178f   :  { %v3987_v42 = vpop.permute.xlu1 %3986 }
0x1791   :  { %v5905_v31 = vpop.eup %5904 }
0x1792   :  { %v3580_v18 = vsel %vm823_vm8, %v5905_v31, 0.0 }
0x1793   :  { %3581 = vadd.xlane.f32.xlu0 %v3580_v18  ;;  %v3985_v43 = vpop.permute.xlu1 %3984 }
0x1795   :  { %v5907_v26 = vpop.eup %5906 }
0x1796   :  { %v3583_v32 = vsel %vm823_vm8, %v5907_v26, 0.0 }
0x1797   :  { %3584 = vadd.xlane.f32.xlu0 %v3583_v32 }
0x17ad   :  { %3668 = vrot.lane.b32.xlu0 %v6911_v29, %s6330_s4 }
0x17b1   :  { %3906 = vrot.lane.b32.xlu0 %v6897_v14, %s6331_s13 }
0x181c   :  { %v3582_v33 = vpop.xlane.xlu0 %3581 }
0x181d   :  { %5908 = vrcp.f32 %v3582_v33 }
0x1820   :  { %v3585_v34 = vpop.xlane.xlu0 %3584 }
0x1821   :  { %5910 = vrcp.f32 %v3585_v34 }
0x1824   :  { %v3669_v37 = vpop.permute.xlu0 %3668 }
0x1825   :  { %5714 = vmatpush3.msra.mxu0 %v3669_v37 }
0x1826   :  { %5723 = vmatprep.subr.mxu0 %v3080_v35 }
0x1828   :  { %v3907_v49 = vpop.permute.xlu0 %3906 }
0x182a   :  { %v5909_v16 = vpop.eup %5908 }
0x182b   :  { %v3588_v38 = vmul.f32 %v5909_v16, %v5905_v31 }
0x182d   :  { %5711 = vmatmul.mubr.msk.f32.vlgmr.msra.gmra.mxu1 %vm823_vm8, %v3588_v38 }
0x182e   :  { %v5911_v40 = vpop.eup %5910  ;;  %5719 = vmatpush3.msra.mxu1 %v3081_v5 }
0x182f   :  { %v3589_v41 = vmul.f32 %v5911_v40, %v5907_v26  ;;  %5728 = vmatprep.subr.mxu1 %v6328_v19 }
0x1831   :  { %5716 = vmatmul.mubr.msk.f32.vlgmr.msra.gmra.mxu0 %vm823_vm8, %v3589_v41 }
0x1832   :  { %5725 = vmatprep.mubr.msk.f32.mxu0 %vm823_vm8, %v3331_v59  ;;  %5724 = vmatpush3.msra.mxu0 %v3080_v35 }
0x1833   :  { %5733 = vmatprep.subr.mxu0 %v6328_v19 }
0x1835   :  { %5726 = vmatmul.mubr.msk.f32.vlgmr.msra.gmra.mxu0 %vm823_vm8, %v3404_v61 }
0x1836   :  { %5734 = vmatpush3.xpose.msk.msra.mxu0 %vm823_vm8, %v3987_v42  ;;  %5735 = vmatprep.mubr.msk.f32.mxu0 %vm6329_vm7, %v6328_v19 }
0x1837   :  { %5743 = vmatprep.subr.mxu0 %v6328_v19 }
0x1839   :  { %5736 = vmatmul.mubr.msk.f32.vlgmr.msra.gmra.mxu0 %vm823_vm8, %v3985_v43 }
0x183a   :  { %5745 = vmatprep.mubr.msk.f32.mxu0 %vm6329_vm7, %v6328_v19 }
0x18ed   :  { %v3663_v44 = vpop.f32.mrf.mxu1 }
0x18ee   :  { %5720 = vmatprep.mubr.msk.f32.mxu1 %vm823_vm8, %v3663_v44 }
0x18ef   :  { %v5712_v7 = vpop.f32.mrf.mxu1 }
0x18f1   :  { %v3740_v45 = vpop.f32.mrf.mxu0 }
0x18f2   :  { %5721 = vmatmul.mubr.msk.f32.vlgmr.msra.gmra.mxu1 %vm823_vm8, %v3740_v45 }
0x18f3   :  { %5729 = vmatpush3.xpose.msk.msra.mxu1 %vm823_vm8, %v3909_v39  ;;  %v5717_v48 = vpop.f32.mrf.mxu0  ;;  %5730 = vmatprep.mubr.msk.f32.mxu1 %vm6329_vm7, %v6328_v19 }
0x18f4   :  { %5738 = vmatprep.subr.mxu1 %v6328_v19 }
0x18f5   :  { %v6994_v50 = vpop.f32.mrf.mxu0 }
0x18f6   :  { %5731 = vmatmul.mubr.msk.f32.vlgmr.msra.gmra.mxu1 %vm823_vm8, %v3907_v49 }
0x18f7   :  { %v6997_v51 = vpop.f32.mrf.mxu0  ;;  %5740 = vmatprep.mubr.msk.f32.mxu1 %vm6329_vm7, %v6328_v19 }
0x18f9   :  { %v4058_v46 = vpop.f32.mrf.mxu0 }
0x18fa   :  { %v4063_v52 = vmul.f32 0.35355338, %v4058_v46 }
0x18fb   :  { %v5737_v53 = vpop.f32.mrf.mxu0 }
0x18fc   :  { %v4065_v47 = vsel %vm6679_vm9, %v4063_v52, -10000.0 }
0x18fd   :  { %v4069_v54 = vsel %vm823_vm8, %v4065_v47, -inf }
0x18fe   :  { %4070 = vmax.xlane.f32.xlu1 %v4069_v54 }
0x190f   :  { %4088 = vrot.lane.b32.xlu1 %v6913_v30, %s6331_s13 }
0x1913   :  { %4325 = vrot.lane.b32.xlu1 %v6893_v28, %s6332_s6 }
0x1917   :  { %4403 = vrot.lane.b32.xlu1 %v6900_v17, %s6332_s6 }
0x191b   :  { %4401 = vrot.lane.b32.xlu1 %v6908_v21, %s6332_s6 }
0x1987   :  { %v4071_v55 = vpop.xlane.xlu1 %4070 }
0x1988   :  { %v4073_v57 = vsub.f32 %v4065_v47, %v4071_v55 }
0x198a   :  { %v4076_v58 = vmul.f32 1.442695, %v4073_v57 }
0x198b   :  { %v4089_v56 = vpop.permute.xlu1 %4088 }
0x198c   :  { %5739 = vmatpush3.msra.mxu1 %v4089_v56  ;;  %5912 = vpow2.f32 %v4076_v58 }
0x198d   :  { %5748 = vmatprep.subr.mxu1 %v3082_v22 }
0x198f   :  { %v4326_v8 = vpop.permute.xlu1 %4325 }
0x1993   :  { %v4404_v34 = vpop.permute.xlu1 %4403 }
0x1997   :  { %v4402_v16 = vpop.permute.xlu1 %4401 }
0x1999   :  { %v5913_v23 = vpop.eup %5912 }
0x199a   :  { %v4081_v21 = vsel %vm823_vm8, %v5913_v23, 0.0 }
0x19b2   :  { %v7012_v12 = vpop.f32.mrf.mxu1 }
0x19b3   :  { %v3903_v43 = vadd.f32 %v6994_v50, %v7012_v12 }
0x19b4   :  { %v7014_v59 = vpop.f32.mrf.mxu1 }
0x19b5   :  { %v3898_v44 = vadd.f32 %v6997_v51, %v7014_v59 }
0x19b6   :  { %v3980_v60 = vpop.f32.mrf.mxu1 }
0x19b7   :  { %v4062_v61 = vmul.f32 0.35355338, %v3980_v60 }
0x19b8   :  { %v5732_v20 = vpop.f32.mrf.mxu1 }
0x19b9   :  { %v4064_v28 = vsel %vm6679_vm9, %v4062_v61, -10000.0 }
0x19ba   :  { %v4066_v17 = vsel %vm823_vm8, %v4064_v28, -inf }
0x19bb   :  { %4067 = vmax.xlane.f32.xlu0 %v4066_v17 }
0x19bf   :  { %4082 = vadd.xlane.f32.xlu0 %v4081_v21 }
0x1a44   :  { %v4068_v62 = vpop.xlane.xlu0 %4067 }
0x1a45   :  { %v4072_v24 = vsub.f32 %v4064_v28, %v4068_v62  ;;  %v5283_v62 = vld [vmem:[#allocation15 + $0x1] ss:$0 sm:$0xff] }
0x1a47   :  { %v4074_v63 = vmul.f32 1.442695, %v4072_v24 }
0x1a48   :  { %v4083_v1 = vpop.xlane.xlu0 %4082 }
0x1a49   :  { %5914 = vpow2.f32 %v4074_v63 }
0x1a4a   :  { %5916 = vrcp.f32 %v4083_v1 }
0x1a56   :  { %v5915_v25 = vpop.eup %5914 }
0x1a57   :  { %v4078_v0 = vsel %vm823_vm8, %v5915_v25, 0.0  ;;  %v5917_v3 = vpop.eup %5916 }
0x1a58   :  { %4079 = vadd.xlane.f32.xlu0 %v4078_v0  ;;  %v4087_v6 = vmul.f32 %v5917_v3, %v5913_v23 }
0x1a6e   :  { %4164 = vrot.lane.b32.xlu0 %v6911_v29, %s6331_s13 }
0x1a72   :  { %4323 = vrot.lane.b32.xlu0 %v6897_v14, %s6332_s6 }
0x1ae1   :  { %v4080_v2 = vpop.xlane.xlu0 %4079 }
0x1ae2   :  { %5918 = vrcp.f32 %v4080_v2 }
0x1ae5   :  { %v4165_v4 = vpop.permute.xlu0 %4164 }
0x1ae6   :  { %5744 = vmatpush3.msra.mxu0 %v4165_v4 }
0x1ae7   :  { %5746 = vmatmul.mubr.msk.f32.vlgmr.msra.gmra.mxu0 %vm823_vm8, %v4087_v6  ;;  %5753 = vmatprep.subr.mxu0 %v6328_v19 }
0x1ae8   :  { %5754 = vmatpush3.xpose.msk.msra.mxu0 %vm823_vm8, %v4326_v8  ;;  %5755 = vmatprep.mubr.msk.f32.mxu0 %vm6329_vm7, %v6328_v19 }
0x1ae9   :  { %v4324_v9 = vpop.permute.xlu0 %4323  ;;  %5763 = vmatprep.subr.mxu0 %v6328_v19 }
0x1aeb   :  { %5756 = vmatmul.mubr.msk.f32.vlgmr.msra.gmra.mxu0 %vm823_vm8, %v4324_v9 }
0x1aec   :  { %5765 = vmatprep.mubr.msk.f32.mxu0 %vm6329_vm7, %v6328_v19 }
0x1aef   :  { %v5919_v14 = vpop.eup %5918 }
0x1af0   :  { %v4086_v10 = vmul.f32 %v5919_v14, %v5915_v25 }
0x1af2   :  { %5741 = vmatmul.mubr.msk.f32.vlgmr.msra.gmra.mxu1 %vm823_vm8, %v4086_v10 }
0x1af3   :  { %5749 = vmatpush3.msra.mxu1 %v3082_v22 }
0x1af4   :  { %5758 = vmatprep.subr.mxu1 %v6328_v19 }
0x1ba7   :  { %v4236_v11 = vpop.f32.mrf.mxu0 }
0x1ba9   :  { %v5747_v13 = vpop.f32.mrf.mxu0 }
0x1bab   :  { %v4397_v31 = vpop.f32.mrf.mxu0 }
0x1bac   :  { %v4479_v18 = vmul.f32 0.35355338, %v4397_v31  ;;  %v4802_v31 = vld [vmem:[#allocation19 + $0x38] sm:$0xff] }
0x1bad   :  { %v5757_v26 = vpop.f32.mrf.mxu0 }
0x1bae   :  { %v4481_v32 = vsel %vm6679_vm9, %v4479_v18, -10000.0  ;;  %v4801_v18 = vld [vmem:[#allocation19 + $0x30] sm:$0xff]  ;;  %v4800_v26 = vld [vmem:[#allocation19 + $0x28] sm:$0xff] }
0x1baf   :  { %v4483_v33 = vsel %vm823_vm8, %v4481_v32, -inf }
0x1bb0   :  { %4484 = vmax.xlane.f32.xlu0 %v4483_v33 }
0x1bb2   :  { %v4160_v35 = vpop.f32.mrf.mxu1 }
0x1bb3   :  { %5750 = vmatprep.mubr.msk.f32.mxu1 %vm823_vm8, %v4160_v35 }
0x1bb4   :  { %v5742_v37 = vpop.f32.mrf.mxu1  ;;  %5751 = vmatmul.mubr.msk.f32.vlgmr.msra.gmra.mxu1 %vm823_vm8, %v4236_v11 }
0x1bb5   :  { %5759 = vmatpush3.xpose.msk.msra.mxu1 %vm823_vm8, %v4404_v34  ;;  %5760 = vmatprep.mubr.msk.f32.mxu1 %vm6329_vm7, %v6328_v19 }
0x1bb6   :  { %5768 = vmatprep.subr.mxu1 %v6328_v19 }
0x1bb8   :  { %5761 = vmatmul.mubr.msk.f32.vlgmr.msra.gmra.mxu1 %vm823_vm8, %v4402_v16 }
0x1bb9   :  { %5770 = vmatprep.mubr.msk.f32.mxu1 %vm6329_vm7, %v6328_v19 }
0x1c39   :  { %v4485_v38 = vpop.xlane.xlu0 %4484 }
0x1c3a   :  { %v4489_v39 = vsub.f32 %v4481_v32, %v4485_v38  ;;  %v4799_v32 = vld [vmem:[#allocation19 + $0x20] sm:$0xff] }
0x1c3c   :  { %v4491_v40 = vmul.f32 1.442695, %v4489_v39 }
0x1c3e   :  { %5920 = vpow2.f32 %v4491_v40  ;;  %v5284_v40 = vld [vmem:[#allocation16 + $0x1] ss:$0 sm:$0xff] }
0x1c4b   :  { %v5921_v41 = vpop.eup %5920 }
0x1c4c   :  { %v4495_v42 = vsel %vm823_vm8, %v5921_v41, 0.0 }
0x1c4d   :  { %4496 = vadd.xlane.f32.xlu0 %v4495_v42 }
0x1c74   :  { %v5752_v5 = vpop.f32.mrf.mxu1 }
0x1c75   :  { %v4322_v7 = vadd.f32 %v5752_v5, %v3903_v43 }
0x1c76   :  { %v4312_v45 = vpop.f32.mrf.mxu1 }
0x1c77   :  { %v4321_v48 = vadd.f32 %v4312_v45, %v3898_v44  ;;  %v5285_v44 = vld [vmem:[#allocation18 + $0x1] ss:$0 sm:$0xff] }
0x1c78   :  { %v4475_v49 = vpop.f32.mrf.mxu1 }
0x1c79   :  { %v4480_v19 = vmul.f32 0.35355338, %v4475_v49  ;;  %v4936_v49 = vld [vmem:[#allocation22 + $0x38] sm:$0xff] }
0x1c7a   :  { %v5762_v46 = vpop.f32.mrf.mxu1 }
0x1c7b   :  { %v4482_v52 = vsel %vm6679_vm9, %v4480_v19, -10000.0  ;;  %v4935_v19 = vld [vmem:[#allocation22 + $0x30] sm:$0xff]  ;;  %v4934_v46 = vld [vmem:[#allocation22 + $0x28] sm:$0xff] }
0x1c7c   :  { %v4486_v53 = vsel %vm823_vm8, %v4482_v52, -inf }
0x1c7d   :  { %4487 = vmax.xlane.f32.xlu1 %v4486_v53  ;;  %v5286_v53 = vld [vmem:[#allocation21 + $0x1] ss:$0 sm:$0xff] }
0x1c8e   :  { %4505 = vrot.lane.b32.xlu1 %v6913_v30, %s6332_s6  ;;  %v3083_v30 = vld [vmem:[#allocation13 + $0x38] sm:$0xff] }
0x1cd6   :  { %v4497_v50 = vpop.xlane.xlu0 %4496 }
0x1cd7   :  { %5922 = vrcp.f32 %v4497_v50 }
0x1ce4   :  { %v5923_v54 = vpop.eup %5922 }
0x1ce5   :  { %v4503_v57 = vmul.f32 %v5923_v54, %v5921_v41 }
0x1d06   :  { %v4488_v47 = vpop.xlane.xlu1 %4487 }
0x1d07   :  { %v4490_v51 = vsub.f32 %v4482_v52, %v4488_v47  ;;  %v4933_v52 = vld [vmem:[#allocation22 + $0x20] sm:$0xff] }
0x1d09   :  { %v4493_v55 = vmul.f32 1.442695, %v4490_v51 }
0x1d0a   :  { %v4506_v56 = vpop.permute.xlu1 %4505 }
0x1d0b   :  { %5924 = vpow2.f32 %v4493_v55  ;;  %5764 = vmatpush3.msra.mxu0 %v4506_v56 }
0x1d0c   :  { %5766 = vmatmul.mubr.msk.f32.vlgmr.msra.gmra.mxu0 %vm823_vm8, %v4503_v57  ;;  %5773 = vmatprep.subr.mxu0 %v3083_v30 }
0x1d0d   :  { %5774 = vmatpush3.msra.mxu0 %v3083_v30 }
0x1d0e   :  { %5789 = vmatprep.subr.mxu0 %v4936_v49 }
0x1d18   :  { %v5925_v27 = vpop.eup %5924 }
0x1d19   :  { %v4498_v58 = vsel %vm823_vm8, %v5925_v27, 0.0 }
0x1d1a   :  { %4499 = vadd.xlane.f32.xlu0 %v4498_v58 }
0x1d30   :  { %4581 = vrot.lane.b32.xlu0 %v6911_v29, %s6332_s6 }
0x1da3   :  { %v4500_v12 = vpop.xlane.xlu0 %4499 }
0x1da4   :  { %5926 = vrcp.f32 %v4500_v12 }
0x1da7   :  { %v4582_v59 = vpop.permute.xlu0 %4581 }
0x1da8   :  { %5769 = vmatpush3.msra.mxu1 %v4582_v59 }
0x1da9   :  { %5778 = vmatprep.subr.mxu1 %v4802_v31 }
0x1db1   :  { %v5927_v60 = vpop.eup %5926 }
0x1db2   :  { %v4504_v61 = vmul.f32 %v5927_v60, %v5925_v27 }
0x1db4   :  { %5771 = vmatmul.mubr.msk.f32.vlgmr.msra.gmra.mxu1 %vm823_vm8, %v4504_v61 }
0x1db5   :  { %5779 = vmatpush3.msra.mxu1 %v4802_v31 }
0x1db6   :  { %5780 = vmatprep.subr.mxu1 %v4801_v18 }
0x1db7   :  { %5781 = vmatpush3.msra.mxu1 %v4801_v18  ;;  %v5289_v18 = vld [vmem:[#allocation24 + $0x1] ss:$0 sm:$0xff] }
0x1db8   :  { %5782 = vmatprep.subr.mxu1 %v4800_v26 }
0x1db9   :  { %5783 = vmatpush3.msra.mxu1 %v4800_v26 }
0x1dba   :  { %5784 = vmatprep.subr.mxu1 %v4799_v32 }
0x1dbb   :  { %5785 = vmatpush3.msra.mxu1 %v4799_v32 }
0x1dcc   :  { %v4577_v20 = vpop.f32.mrf.mxu0 }
0x1dcd   :  { %5775 = vmatprep.mubr.msk.f32.mxu0 %vm823_vm8, %v4577_v20 }
0x1dce   :  { %v5767_v28 = vpop.f32.mrf.mxu0 }
0x1e74   :  { %v4653_v17 = vpop.f32.mrf.mxu1 }
0x1e75   :  { %5776 = vmatmul.mubr.msk.f32.vlgmr.msra.gmra.mxu0 %vm823_vm8, %v4653_v17 }
0x1e76   :  { %v5772_v23 = vpop.f32.mrf.mxu1  ;;  %5790 = vmatpush3.msra.mxu0 %v4936_v49  ;;  %v5073_v49 = vld [vmem:[#allocation27 + $0x8] sm:$0xff] }
0x1e77   :  { %5791 = vmatprep.subr.mxu0 %v4935_v19 }
0x1e78   :  { %5792 = vmatpush3.msra.mxu0 %v4935_v19  ;;  %v5072_v19 = vld [vmem:[#allocation27] sm:$0xff] }
0x1e79   :  { %5793 = vmatprep.subr.mxu0 %v4934_v46 }
0x1e7a   :  { %5794 = vmatpush3.msra.mxu0 %v4934_v46 }
0x1e7b   :  { %5795 = vmatprep.subr.mxu0 %v4933_v52 }
0x1e7c   :  { %5796 = vmatpush3.msra.mxu0 %v4933_v52 }
0x1f35   :  { %v5777_v29 = vpop.f32.mrf.mxu0 }
0x1f36   :  { %v4739_v21 = vadd.f32 %v5777_v29, %v4322_v7 }
0x1f37   :  { %v4729_v24 = vpop.f32.mrf.mxu0 }
0x1f38   :  { %v4741_v63 = vadd.f32 %v4739_v21, %v6844_v36  ;;  %v4738_v25 = vadd.f32 %v4729_v24, %v4321_v48 }
0x1f3a   :  { %v7066_v0 = vadd.f32 %v5283_v62, %v4741_v63  ;;  %v4740_v1 = vadd.f32 %v4738_v25, %v6847_v15 }
0x1f3c   :  { %v7069_v2 = vadd.f32 %v5283_v62, %v4740_v1  ;;  %v4759_v3 = vsel %vm511_vm6, %v7066_v0, 0.0 }
0x1f3d   :  { %4760 = vadd.xlane.f32.xlu0 %v4759_v3 }
0x1f3e   :  { %v4756_v4 = vsel %vm511_vm6, %v7069_v2, 0.0 }
0x1f3f   :  { %4757 = vadd.xlane.f32.xlu1 %v4756_v4 }
0x1fc6   :  { %v4761_v6 = vpop.xlane.xlu0 %4760 }
0x1fc7   :  { %v4763_v8 = vmul.f32 0.03125, %v4761_v6 }
0x1fc8   :  { %v4758_v9 = vpop.xlane.xlu1 %4757 }
0x1fc9   :  { %v4765_v36 = vsub.f32 %v7066_v0, %v4763_v8  ;;  %v4762_v14 = vmul.f32 0.03125, %v4758_v9 }
0x1fcb   :  { %v4764_v10 = vsub.f32 %v7069_v2, %v4762_v14  ;;  %v4767_v22 = vmul.f32 %v4765_v36, %v4765_v36 }
0x1fcd   :  { %v4771_v15 = vsel %vm511_vm6, %v4767_v22, 0.0  ;;  %v4766_v11 = vmul.f32 %v4764_v10, %v4764_v10 }
0x1fce   :  { %4772 = vadd.xlane.f32.xlu0 %v4771_v15 }
0x1fcf   :  { %v4768_v13 = vsel %vm511_vm6, %v4766_v11, 0.0 }
0x1fd0   :  { %4769 = vadd.xlane.f32.xlu1 %v4768_v13 }
0x2057   :  { %v4773_v33 = vpop.xlane.xlu0 %4772 }
0x2058   :  { %v4775_v34 = vmul.f32 0.03125, %v4773_v33 }
0x2059   :  { %v4770_v35 = vpop.xlane.xlu1 %4769 }
0x205a   :  { %v4777_v37 = vadd.f32 1e-05, %v4775_v34  ;;  %v4774_v16 = vmul.f32 0.03125, %v4770_v35 }
0x205c   :  { %5928 = vrsqrt.f32 %v4777_v37  ;;  %v4776_v38 = vadd.f32 1e-05, %v4774_v16 }
0x205e   :  { %5930 = vrsqrt.f32 %v4776_v38 }
0x2069   :  { %v5929_v39 = vpop.eup %5928 }
0x206a   :  { %v4781_v41 = vmul.f32 %v5929_v39, %v4765_v36 }
0x206b   :  { %v5931_v42 = vpop.eup %5930 }
0x206c   :  { %v4780_v43 = vmul.f32 %v5931_v42, %v4764_v10  ;;  %v4789_v5 = vmul.f32 %v5284_v40, %v4781_v41 }
0x206e   :  { %v4788_v7 = vmul.f32 %v5284_v40, %v4780_v43  ;;  %v4797_v48 = vadd.f32 %v5285_v44, %v4789_v5 }
0x2070   :  { %v4796_v45 = vadd.f32 %v5285_v44, %v4788_v7 }
0x2072   :  { %5786 = vmatprep.mubr.msk.f32.mxu1 %vm511_vm6, %v4796_v45 }
0x2073   :  { %5787 = vmatmul.mubr.msk.f32.vlgmr.msra.gmra.mxu1 %vm511_vm6, %v4797_v48  ;;  %v5075_v48 = vld [vmem:[#allocation27 + $0x18] sm:$0xff] }
0x2074   :  { %5800 = vmatprep.subr.mxu1 %v5075_v48 }
0x2075   :  { %5801 = vmatpush3.msra.mxu1 %v5075_v48 }
0x2133   :  { %v5788_v50 = vpop.f32.mrf.mxu1 }
0x2134   :  { %v4889_v47 = vadd.f32 %v5788_v50, %v5286_v53 }
0x2135   :  { %v4883_v54 = vpop.f32.mrf.mxu1 }
0x2136   :  { %v4899_v51 = vand.u32 2147483647, %v4889_v47  ;;  %v4884_v55 = vadd.f32 %v5286_v53, %v4883_v54  ;;  %v4893_v1 = vmax.f32 %v4889_v47, 0.0  ;;  %vm4895_vm0 = vcmp.ne.f32.partialorder %v4889_v47, %v4889_v47 }
0x2138   :  { %v4901_v56 = vsub.f32 0.0, %v4899_v51  ;;  %v4898_v57 = vand.u32 2147483647, %v4884_v55  ;;  %v4892_v9 = vmax.f32 %v4884_v55, 0.0  ;;  %vm4894_vm1 = vcmp.ne.f32.partialorder %v4884_v55, %v4884_v55 }
0x213a   :  { %v4904_v27 = vmul.f32 1.442695, %v4901_v56  ;;  %v4900_v58 = vsub.f32 0.0, %v4898_v57 }
0x213c   :  { %5932 = vpow2.f32 %v4904_v27  ;;  %v4902_v30 = vmul.f32 1.442695, %v4900_v58 }
0x213e   :  { %5934 = vpow2.f32 %v4902_v30  ;;  %v5293_v30 = vld [vmem:[#allocation25] ss:$0 sm:$0xff] }
0x2149   :  { %v5933_v12 = vpop.eup %5932 }
0x214a   :  { %v4915_v59 = vadd.f32 1.0, %v5933_v12  ;;  %v4918_v20 = vmul.f32 -0.5, %v5933_v12  ;;  %v4921_v23 = vand.u32 2147483647, %v5933_v12 }
0x214b   :  { %v5935_v60 = vpop.eup %5934 }
0x214c   :  { %5936 = vlog2.f32 %v4915_v59  ;;  %v4906_v61 = vadd.f32 1.0, %v5935_v60  ;;  %v4909_v28 = vmul.f32 -0.5, %v5935_v60  ;;  %v4919_v17 = vadd.f32 1.0, %v4918_v20 }
0x214d   :  { %v4912_v62 = vand.u32 2147483647, %v5935_v60  ;;  %vm4922_vm14 = vcmp.lt.f32.partialorder %v4921_v23, 0.0004427343 }
0x214e   :  { %5938 = vlog2.f32 %v4906_v61  ;;  %v4910_v29 = vadd.f32 1.0, %v4909_v28  ;;  %v4920_v63 = vmul.f32 %v5933_v12, %v4919_v17 }
0x214f   :  { %vm4913_vm15 = vcmp.lt.f32.partialorder %v4912_v62, 0.0004427343 }
0x2150   :  { %v4911_v6 = vmul.f32 %v5935_v60, %v4910_v29 }
0x2159   :  { %v5937_v21 = vpop.eup %5936 }
0x215a   :  { %v4917_v24 = vmul.f32 0.6931472, %v5937_v21 }
0x215b   :  { %v5939_v25 = vpop.eup %5938 }
0x215c   :  { %v4923_v3 = vsel %vm4922_vm14, %v4920_v63, %v4917_v24  ;;  %v4908_v4 = vmul.f32 0.6931472, %v5939_v25 }
0x215d   :  { %v4925_v8 = vadd.f32 %v4923_v3, %v4893_v1 }
0x215e   :  { %v4914_v36 = vsel %vm4913_vm15, %v4911_v6, %v4908_v4 }
0x215f   :  { %v4927_v14 = vsel %vm4895_vm0, %v4889_v47, %v4925_v8  ;;  %v4924_v10 = vadd.f32 %v4914_v36, %v4892_v9 }
0x2160   :  { %5940 = vtanh.f32 %v4927_v14 }
0x2161   :  { %v4926_v22 = vsel %vm4894_vm1, %v4884_v55, %v4924_v10 }
0x2162   :  { %5942 = vtanh.f32 %v4926_v22 }
0x216d   :  { %v5941_v15 = vpop.eup %5940 }
0x216e   :  { %v4931_v31 = vmul.f32 %v5941_v15, %v4889_v47 }
0x216f   :  { %v5943_v11 = vpop.eup %5942 }
0x2170   :  { %v4930_v13 = vmul.f32 %v5943_v11, %v4884_v55  ;;  %v5292_v55 = vld [vmem:[%s7120_s20] ss:$0 sm:$0xff] }
0x2172   :  { %5797 = vmatprep.mubr.msk.f32.mxu0 %vm511_vm6, %v4930_v13 }
0x2173   :  { %5798 = vmatmul.mubr.msk.f32.vlgmr.msra.gmra.mxu0 %vm511_vm6, %v4931_v31 }
0x2233   :  { %v5799_v26 = vpop.f32.mrf.mxu0 }
0x2234   :  { %v5023_v32 = vadd.f32 %v5799_v26, %v5289_v18 }
0x2235   :  { %v5017_v33 = vpop.f32.mrf.mxu0 }
0x2236   :  { %v5018_v34 = vadd.f32 %v5289_v18, %v5017_v33  ;;  %v5027_v35 = vadd.f32 %v5023_v32, %v7066_v0 }
0x2238   :  { %v5033_v37 = vsel %vm511_vm6, %v5027_v35, 0.0  ;;  %v5026_v16 = vadd.f32 %v5018_v34, %v7069_v2  ;;  %v5074_v2 = vld [vmem:[#allocation27 + $0x10] sm:$0xff] }
0x2239   :  { %5034 = vadd.xlane.f32.xlu0 %v5033_v37  ;;  %5802 = vmatprep.subr.mxu1 %v5074_v2 }
0x223a   :  { %v5030_v38 = vsel %vm511_vm6, %v5026_v16, 0.0  ;;  %5803 = vmatpush3.msra.mxu1 %v5074_v2 }
0x223b   :  { %5031 = vadd.xlane.f32.xlu1 %v5030_v38  ;;  %5804 = vmatprep.subr.mxu1 %v5073_v49 }
0x223c   :  { %5805 = vmatpush3.msra.mxu1 %v5073_v49 }
0x223d   :  { %5806 = vmatprep.subr.mxu1 %v5072_v19 }
0x223e   :  { %5807 = vmatpush3.msra.mxu1 %v5072_v19 }
0x22c2   :  { %v5035_v39 = vpop.xlane.xlu0 %5034 }
0x22c3   :  { %v5037_v40 = vmul.f32 0.03125, %v5035_v39 }
0x22c4   :  { %v5032_v41 = vpop.xlane.xlu1 %5031 }
0x22c5   :  { %v5039_v42 = vsub.f32 %v5027_v35, %v5037_v40  ;;  %v5036_v43 = vmul.f32 0.03125, %v5032_v41 }
0x22c7   :  { %v5038_v5 = vsub.f32 %v5026_v16, %v5036_v43  ;;  %v5041_v44 = vmul.f32 %v5039_v42, %v5039_v42 }
0x22c9   :  { %v5045_v7 = vsel %vm511_vm6, %v5041_v44, 0.0  ;;  %v5040_v45 = vmul.f32 %v5038_v5, %v5038_v5 }
0x22ca   :  { %5046 = vadd.xlane.f32.xlu0 %v5045_v7 }
0x22cb   :  { %v5042_v0 = vsel %vm511_vm6, %v5040_v45, 0.0 }
0x22cc   :  { %5043 = vadd.xlane.f32.xlu1 %v5042_v0 }
0x2353   :  { %v5047_v46 = vpop.xlane.xlu0 %5046 }
0x2354   :  { %v5049_v52 = vmul.f32 0.03125, %v5047_v46 }
0x2355   :  { %v5044_v53 = vpop.xlane.xlu1 %5043 }
0x2356   :  { %v5051_v50 = vadd.f32 1e-05, %v5049_v52  ;;  %v5048_v47 = vmul.f32 0.03125, %v5044_v53 }
0x2358   :  { %5944 = vrsqrt.f32 %v5051_v50  ;;  %v5050_v54 = vadd.f32 1e-05, %v5048_v47 }
0x235a   :  { %5946 = vrsqrt.f32 %v5050_v54 }
0x2365   :  { %v5945_v51 = vpop.eup %5944 }
0x2366   :  { %v5055_v56 = vmul.f32 %v5945_v51, %v5039_v42 }
0x2367   :  { %v5947_v57 = vpop.eup %5946 }
0x2368   :  { %v5054_v27 = vmul.f32 %v5947_v57, %v5038_v5  ;;  %v5063_v58 = vmul.f32 %v5292_v55, %v5055_v56 }
0x236a   :  { %v5062_v12 = vmul.f32 %v5292_v55, %v5054_v27  ;;  %v5071_v60 = vadd.f32 %v5293_v30, %v5063_v58 }
0x236c   :  { %v5070_v59 = vadd.f32 %v5293_v30, %v5062_v12 }
0x236e   :  { %5808 = vmatprep.mubr.msk.f32.mxu1 %vm511_vm6, %v5070_v59 }
0x236f   :  { %5809 = vmatmul.mubr.msk.f32.vlgmr.msra.gmra.mxu1 %vm511_vm6, %v5071_v60 }
0x242f   :  { %v5810_v61 = vpop.f32.mrf.mxu1 }
0x2430   :  { %5158 = vst [vmem:[%s7123_s23 + $0x8] sm:$0xff] %v5810_v61 }
0x2431   :  { %v5148_v20 = vpop.f32.mrf.mxu1 }
0x2432   :  { %5157 = vst [vmem:[%s7123_s23] sm:$0xff] %v5148_v20 }
0x2433   :  { %5163 = vsyncpa [#allocation3], 1 }
0x2434   :  { %5164 = vsyncpa [#allocation5], 1 }
0x2435   :  { %5165 = vsyncpa [#allocation8], 1 }
0x2436   :  { %5166 = vsyncpa [#allocation11], 1 }
0x2437   :  { %5167 = vsyncpa [#allocation14], 1 }
0x2438   :  { %5168 = vsyncpa [#allocation17], 1 }
0x2439   :  { %5169 = vsyncpa [#allocation20], 1 }
0x243a   :  { %5170 = vsyncpa [#allocation23], 1 }
0x243b   :  { %5171 = vsyncpa [#allocation26], 1 }

</bundles_post_ra>
